<compile_context>
chip_gen: v5e
topology: v5e:2x2
jax: 0.10.0
libtpu: 0.0.40
codegen_flags: <defaults>
</compile_context>

<pallas_src>
import functools

import jax
import jax.numpy as jnp
from jax.experimental import pallas as pl
from jax.experimental.pallas import tpu as pltpu


def _round_up(x, d):
    return (x + d - 1) // d * d


# ---------------------------------------------------------------------------
# Kernel 1: fused conv (matmul over pre-gathered corner patches) + bias + ReLU
#           + 2x2/stride-2/pad-1 max pool   (one kernel per conv block)
# ---------------------------------------------------------------------------
def _conv_relu_pool_kernel(c_ref, w_ref, b_ref, o_ref):
    w = w_ref[...]                       # (Kp, Cout) bf16, resident across grid
    b = b_ref[...]                       # (1, Cout) f32

    def corner(idx):
        acc = jnp.dot(c_ref[idx], w, preferred_element_type=jnp.float32)
        return jnp.maximum(acc + b, 0.0)        # bias + ReLU in f32

    pooled = jnp.maximum(jnp.maximum(corner(0), corner(1)),
                         jnp.maximum(corner(2), corner(3)))
    o_ref[...] = pooled.astype(o_ref.dtype)


def _im2col_pool_corners(x_nhwc, kh, kw, conv_pad):
    """Patch matrices for the 4 corners of every 2x2/stride-2/pad-1 pool window.

    Out-of-range corners are clamped to a valid corner of the same window
    (valid because ReLU precedes the pool).  Returns (4, n*ph*pw, kh*kw*cin).
    """
    n, h, w, cin = x_nhwc.shape
    ho = h + 2 * conv_pad - kh + 1
    wo = w + 2 * conv_pad - kw + 1
    ph, pw = ho // 2 + 1, wo // 2 + 1               # pool output extents
    xpad = jnp.pad(x_nhwc,
                   ((0, 0), (conv_pad,) * 2, (conv_pad,) * 2, (0, 0)))

    ab = jnp.arange(2)[:, None]
    rows = jnp.clip(2 * jnp.arange(ph)[None, :] - 1 + ab, 0, ho - 1)    # (2, ph)
    cols = jnp.clip(2 * jnp.arange(pw)[None, :] - 1 + ab, 0, wo - 1)    # (2, pw)
    r_idx = rows[:, :, None] + jnp.arange(kh)[None, None, :]            # (2, ph, kh)
    c_idx = cols[:, :, None] + jnp.arange(kw)[None, None, :]            # (2, pw, kw)

    g = jnp.take(xpad, r_idx, axis=1)       # (n, 2, ph, kh, Wp, cin)
    g = jnp.take(g, c_idx, axis=4)          # (n, 2, ph, kh, 2, pw, kw, cin)
    g = jnp.transpose(g, (1, 4, 0, 2, 5, 3, 6, 7))   # (2a, 2b, n, ph, pw, kh, kw, cin)
    g = g.reshape(4, n * ph * pw, kh * kw * cin)
    return g, (n, ph, pw)


def conv_relu_pool(x_nhwc, wm_bf16, bias_f32, *, kh, kw, conv_pad=1, tile_m=128):
    """relu(conv2d(x, w, b, padding=1)) followed by MaxPool2d((2,2), stride=2, pad=1)."""
    kp, cout = wm_bf16.shape
    g, (n, ph, pw) = _im2col_pool_corners(x_nhwc, kh, kw, conv_pad)
    m, k = g.shape[1], g.shape[2]

    tm = min(tile_m, _round_up(m, 8))               # sublane-aligned row tile
    m_pad = _round_up(m, tm)
    g = g.astype(jnp.bfloat16)                      # bf16 streaming of patches
    if m_pad != m or kp != k:
        g = jnp.pad(g, ((0, 0), (0, m_pad - m), (0, kp - k)))

    out = pl.pallas_call(
        _conv_relu_pool_kernel,
        out_shape=jax.ShapeDtypeStruct((m_pad, cout), jnp.bfloat16),
        grid=(m_pad // tm,),
        in_specs=[pl.BlockSpec((4, tm, kp), lambda i: (0, i, 0)),
                  pl.BlockSpec((kp, cout), lambda i: (0, 0)),
                  pl.BlockSpec((1, cout), lambda i: (0, 0))],
        out_specs=pl.BlockSpec((tm, cout), lambda i: (i, 0)),
        compiler_params=pltpu.CompilerParams(
            dimension_semantics=("parallel",)),
    )(g, wm_bf16, bias_f32)
    return out[:m].reshape(n, ph, pw, cout)


# ---------------------------------------------------------------------------
# Kernel 2: fused fc1 (bf16 weights, K-tiled f32 accumulate) + ReLU + fc2
#           (fc2 output padded to 128 lanes -> lane-dense final store)
# ---------------------------------------------------------------------------
FC_TILE_K = 640          # multiple of 128 -> lane-aligned contraction tiles


def _fc_fused_kernel(x_ref, w1_ref, b1_ref, w2_ref, b2_ref, o_ref, acc_ref):
    kk = pl.program_id(1)

    @pl.when(kk == 0)
    def _init():
        acc_ref[...] = jnp.zeros_like(acc_ref)

    acc_ref[...] += jnp.dot(x_ref[...], w1_ref[...],
                            preferred_element_type=jnp.float32)

    @pl.when(kk == pl.num_programs(1) - 1)
    def _finalize():
        h = jnp.maximum(acc_ref[...] + b1_ref[...], 0.0)        # f32 epilogue
        o_ref[...] = (jnp.dot(h, w2_ref[...],
                              preferred_element_type=jnp.float32) + b2_ref[...])


def fc_relu_fc(x_bf16, w1_bf16, b1_f32, w2_f32, b2_f32, *, tile_n=256):
    n, f = x_bf16.shape
    fp, hdim = w1_bf16.shape
    cp = w2_f32.shape[1]
    assert fp % FC_TILE_K == 0

    tn = min(tile_n, _round_up(n, 8))
    n_pad = _round_up(n, tn)
    x = x_bf16
    if n_pad != n or fp != f:
        x = jnp.pad(x, ((0, n_pad - n), (0, fp - f)))

    out = pl.pallas_call(
        _fc_fused_kernel,
        out_shape=jax.ShapeDtypeStruct((n_pad, cp), jnp.float32),
        grid=(n_pad // tn, fp // FC_TILE_K),
        in_specs=[pl.BlockSpec((tn, FC_TILE_K), lambda i, k: (i, k)),
                  pl.BlockSpec((FC_TILE_K, hdim), lambda i, k: (k, 0)),
                  pl.BlockSpec((1, hdim), lambda i, k: (0, 0)),
                  pl.BlockSpec((hdim, cp), lambda i, k: (0, 0)),
                  pl.BlockSpec((1, cp), lambda i, k: (0, 0))],
        out_specs=pl.BlockSpec((tn, cp), lambda i, k: (i, 0)),
        scratch_shapes=[pltpu.VMEM((tn, hdim), jnp.float32)],
        compiler_params=pltpu.CompilerParams(
            dimension_semantics=("parallel", "arbitrary")),
    )(x, w1_bf16, b1_f32, w2_f32, b2_f32)
    return out


# ---------------------------------------------------------------------------
# One-time parameter re-layout / cast (hoisted out of the forward pass)
# ---------------------------------------------------------------------------
def preprocess_params(params):
    def conv_mat(w, b):
        cout, cin, kh, kw = w.shape
        k = kh * kw * cin
        kp = _round_up(k, 8)                        # conv1: 25 -> 32
        wm = jnp.transpose(w, (2, 3, 1, 0)).reshape(k, cout)   # (kh,kw,cin) rows
        wm = jnp.pad(wm, ((0, kp - k), (0, 0))).astype(jnp.bfloat16)
        return wm, b.reshape(1, cout).astype(jnp.float32)

    c1w, c1b = conv_mat(params["conv1_w"], params["conv1_b"])
    c2w, c2b = conv_mat(params["conv2_w"], params["conv2_b"])

    # torch.flatten on NCHW is (c,h,w)-ordered; permute fc1's weight rows to
    # (h,w,c) so the NHWC activation needs no transpose at runtime.
    hdim, f = params["fc1_w"].shape
    c2 = params["conv2_w"].shape[0]
    side = int(round((f // c2) ** 0.5))
    w1 = (params["fc1_w"].reshape(hdim, c2, side, side)
          .transpose(2, 3, 1, 0).reshape(f, hdim))
    fpad = _round_up(f, FC_TILE_K)                  # 3136 -> 3200
    w1 = jnp.pad(w1, ((0, fpad - f), (0, 0))).astype(jnp.bfloat16)

    nc = params["fc2_w"].shape[0]
    cp = _round_up(nc, 128)
    w2 = jnp.pad(params["fc2_w"].T.astype(jnp.float32), ((0, 0), (0, cp - nc)))
    b2 = jnp.pad(params["fc2_b"].astype(jnp.float32), (0, cp - nc)).reshape(1, cp)

    return {
        "conv1_wm": c1w, "conv1_b": c1b,
        "conv2_wm": c2w, "conv2_b": c2b,
        "fc1_wm": w1,
        "fc1_b": params["fc1_b"].reshape(1, hdim).astype(jnp.float32),
        "fc2_wm": w2, "fc2_b": b2,
    }


# ---------------------------------------------------------------------------
# Full forward pass (mirrors Net.forward)
# ---------------------------------------------------------------------------
def net_forward(x_nchw, pp, *, num_classes):
    n = x_nchw.shape[0]
    x = jnp.transpose(x_nchw, (0, 2, 3, 1)).astype(jnp.bfloat16)       # NHWC bf16
    x = conv_relu_pool(x, pp["conv1_wm"], pp["conv1_b"], kh=5, kw=5)   # (N,14,14,32)
    x = conv_relu_pool(x, pp["conv2_wm"], pp["conv2_b"], kh=5, kw=5)   # (N, 7, 7,64)
    xf = x.reshape(n, -1)                                              # (h,w,c) order
    logits = fc_relu_fc(xf, pp["fc1_wm"], pp["fc1_b"],
                        pp["fc2_wm"], pp["fc2_b"])
    return logits[:n, :num_classes]


# ---------------------------------------------------------------------------
# Pure-JAX reference (PyTorch semantics) + params
# ---------------------------------------------------------------------------
def net_forward_reference(x_nchw, params):
    x = x_nchw.astype(jnp.float32)

    def conv(x, w, b):
        y = jax.lax.conv_general_dilated(
            x, w, (1, 1), ((1, 1), (1, 1)),
            dimension_numbers=("NCHW", "OIHW", "NCHW"))
        return jax.nn.relu(y + b[None, :, None, None])

    def pool(x):
        return jax.lax.reduce_window(
            x, -jnp.inf, jax.lax.max, (1, 1, 2, 2), (1, 1, 2, 2),
            ((0, 0), (0, 0), (1, 1), (1, 1)))

    x = pool(conv(x, params["conv1_w"], params["conv1_b"]))
    x = pool(conv(x, params["conv2_w"], params["conv2_b"]))
    x = x.reshape(x.shape[0], -1)                   # NCHW flatten = (c,h,w)
    x = jax.nn.relu(x @ params["fc1_w"].T + params["fc1_b"])
    return x @ params["fc2_w"].T + params["fc2_b"]


def init_params(key, num_classes):
    ks = jax.random.split(key, 8)

    def u(k, shape, scale):
        return jax.random.uniform(k, shape, jnp.float32, -1.0, 1.0) * scale

    return {
        "conv1_w": u(ks[0], (32, 1, 5, 5), 0.2),
        "conv1_b": u(ks[1], (32,), 0.2),
        "conv2_w": u(ks[2], (64, 32, 5, 5), 0.05),
        "conv2_b": u(ks[3], (64,), 0.05),
        "fc1_w": u(ks[4], (512, 64 * 7 * 7), 0.02),
        "fc1_b": u(ks[5], (512,), 0.02),
        "fc2_w": u(ks[6], (num_classes, 512), 0.05),
        "fc2_b": u(ks[7], (num_classes,), 0.05),
    }


if __name__ == "__main__":
    num_classes = 10
    key = jax.random.PRNGKey(0)
    kx, kparam = jax.random.split(key)

    # fc1 expects 64*7*7 features, which forces 28x28 single-channel input.
    x = jax.random.normal(kx, (2, 1, 28, 28), jnp.float32)
    params = init_params(kparam, num_classes)
    pp = preprocess_params(params)                  # one-time re-layout / cast

    fwd = jax.jit(functools.partial(net_forward, num_classes=num_classes))
    out = jax.block_until_ready(fwd(x, pp))

    assert out.shape == (2, num_classes), out.shape
    assert bool(jnp.all(jnp.isfinite(out)))

    ref = net_forward_reference(x, params)
    max_err = float(jnp.max(jnp.abs(out - ref)))
    assert max_err < 5e-2, f"max abs err vs reference: {max_err}"

    print("KERNEL_OK")
</pallas_src>

<mosaic_0001>
module attributes {stable_mosaic.version = 11 : i64} {
  func.func @_conv_relu_pool_kernel(%arg0: i32, %arg1: memref<4x128x32xbf16, #tpu.memory_space<vmem>>, %arg2: memref<32x32xbf16, #tpu.memory_space<vmem>>, %arg3: memref<1x32xf32, #tpu.memory_space<vmem>>, %arg4: memref<128x32xbf16, #tpu.memory_space<vmem>>) attributes {dimension_semantics = [#tpu.dimension_semantics<parallel>], iteration_bounds = array<i64: 4>, scalar_prefetch = 0 : i64, scratch_operands = 0 : i64, tpu.core_type = #tpu.core_type<tc>, window_params = [{transform_indices = @transform_0, window_bounds = array<i64: 4, 128, 32>}, {pipeline_mode = #tpu.pipeline_mode<synchronous>, transform_indices = @transform_1, window_bounds = array<i64: 32, 32>}, {pipeline_mode = #tpu.pipeline_mode<synchronous>, transform_indices = @transform_2, window_bounds = array<i64: 1, 32>}, {transform_indices = @transform_3, window_bounds = array<i64: 128, 32>}]} {
    %c0 = arith.constant 0 : index
    %c0_0 = arith.constant 0 : index
    %0 = vector.load %arg2[%c0, %c0_0] : memref<32x32xbf16, #tpu.memory_space<vmem>>, vector<32x32xbf16>
    %c0_1 = arith.constant 0 : index
    %c0_2 = arith.constant 0 : index
    %1 = vector.load %arg3[%c0_1, %c0_2] : memref<1x32xf32, #tpu.memory_space<vmem>>, vector<1x32xf32>
    %c0_3 = arith.constant 0 : index
    %c0_4 = arith.constant 0 : index
    %c0_5 = arith.constant 0 : index
    %2 = vector.load %arg1[%c0_3, %c0_4, %c0_5] : memref<4x128x32xbf16, #tpu.memory_space<vmem>>, vector<1x128x32xbf16>
    %3 = vector.shape_cast %2 : vector<1x128x32xbf16> to vector<128x32xbf16>
    %cst = arith.constant dense<0.000000e+00> : vector<128x32xf32>
    %4 = tpu.matmul %3, %0, %cst {dimension_numbers = #tpu.dot_dimension_numbers<[1], [0], [0], [1], [0, 0, 1, 1], [], []>} : vector<128x32xbf16>, vector<32x32xbf16>, vector<128x32xf32> -> vector<128x32xf32>
    %5 = vector.broadcast %1 : vector<1x32xf32> to vector<128x32xf32>
    %6 = arith.addf %4, %5 : vector<128x32xf32>
    %cst_6 = arith.constant 0.000000e+00 : f32
    %7 = vector.broadcast %cst_6 : f32 to vector<128x32xf32>
    %8 = arith.maximumf %6, %7 : vector<128x32xf32>
    %c1 = arith.constant 1 : index
    %c0_7 = arith.constant 0 : index
    %c0_8 = arith.constant 0 : index
    %9 = vector.load %arg1[%c1, %c0_7, %c0_8] : memref<4x128x32xbf16, #tpu.memory_space<vmem>>, vector<1x128x32xbf16>
    %10 = vector.shape_cast %9 : vector<1x128x32xbf16> to vector<128x32xbf16>
    %cst_9 = arith.constant dense<0.000000e+00> : vector<128x32xf32>
    %11 = tpu.matmul %10, %0, %cst_9 {dimension_numbers = #tpu.dot_dimension_numbers<[1], [0], [0], [1], [0, 0, 1, 1], [], []>} : vector<128x32xbf16>, vector<32x32xbf16>, vector<128x32xf32> -> vector<128x32xf32>
    %12 = vector.broadcast %1 : vector<1x32xf32> to vector<128x32xf32>
    %13 = arith.addf %11, %12 : vector<128x32xf32>
    %cst_10 = arith.constant 0.000000e+00 : f32
    %14 = vector.broadcast %cst_10 : f32 to vector<128x32xf32>
    %15 = arith.maximumf %13, %14 : vector<128x32xf32>
    %16 = arith.maximumf %8, %15 : vector<128x32xf32>
    %c2 = arith.constant 2 : index
    %c0_11 = arith.constant 0 : index
    %c0_12 = arith.constant 0 : index
    %17 = vector.load %arg1[%c2, %c0_11, %c0_12] : memref<4x128x32xbf16, #tpu.memory_space<vmem>>, vector<1x128x32xbf16>
    %18 = vector.shape_cast %17 : vector<1x128x32xbf16> to vector<128x32xbf16>
    %cst_13 = arith.constant dense<0.000000e+00> : vector<128x32xf32>
    %19 = tpu.matmul %18, %0, %cst_13 {dimension_numbers = #tpu.dot_dimension_numbers<[1], [0], [0], [1], [0, 0, 1, 1], [], []>} : vector<128x32xbf16>, vector<32x32xbf16>, vector<128x32xf32> -> vector<128x32xf32>
    %20 = vector.broadcast %1 : vector<1x32xf32> to vector<128x32xf32>
    %21 = arith.addf %19, %20 : vector<128x32xf32>
    %cst_14 = arith.constant 0.000000e+00 : f32
    %22 = vector.broadcast %cst_14 : f32 to vector<128x32xf32>
    %23 = arith.maximumf %21, %22 : vector<128x32xf32>
    %c3 = arith.constant 3 : index
    %c0_15 = arith.constant 0 : index
    %c0_16 = arith.constant 0 : index
    %24 = vector.load %arg1[%c3, %c0_15, %c0_16] : memref<4x128x32xbf16, #tpu.memory_space<vmem>>, vector<1x128x32xbf16>
    %25 = vector.shape_cast %24 : vector<1x128x32xbf16> to vector<128x32xbf16>
    %cst_17 = arith.constant dense<0.000000e+00> : vector<128x32xf32>
    %26 = tpu.matmul %25, %0, %cst_17 {dimension_numbers = #tpu.dot_dimension_numbers<[1], [0], [0], [1], [0, 0, 1, 1], [], []>} : vector<128x32xbf16>, vector<32x32xbf16>, vector<128x32xf32> -> vector<128x32xf32>
    %27 = vector.broadcast %1 : vector<1x32xf32> to vector<128x32xf32>
    %28 = arith.addf %26, %27 : vector<128x32xf32>
    %cst_18 = arith.constant 0.000000e+00 : f32
    %29 = vector.broadcast %cst_18 : f32 to vector<128x32xf32>
    %30 = arith.maximumf %28, %29 : vector<128x32xf32>
    %31 = arith.maximumf %23, %30 : vector<128x32xf32>
    %32 = arith.maximumf %16, %31 : vector<128x32xf32>
    %33 = arith.truncf %32 : vector<128x32xf32> to vector<128x32xbf16>
    %c0_19 = arith.constant 0 : index
    %c0_20 = arith.constant 0 : index
    %34 = vector.load %arg4[%c0_19, %c0_20] : memref<128x32xbf16, #tpu.memory_space<vmem>>, vector<128x32xbf16>
    tpu.vector_store %arg4[%c0_19, %c0_20], %33 {strides = array<i32>} : memref<128x32xbf16, #tpu.memory_space<vmem>>, vector<128x32xbf16>,
    return
  }
  func.func @transform_0(%arg0: i32) -> (i32, i32, i32) {
    %c0_i32 = arith.constant 0 : i32
    %c0_i32_0 = arith.constant 0 : i32
    %c0_i32_1 = arith.constant 0 : i32
    return %c0_i32, %arg0, %c0_i32_0 : i32, i32, i32
  }
  func.func @transform_1(%arg0: i32) -> (i32, i32) {
    %c0_i32 = arith.constant 0 : i32
    %c0_i32_0 = arith.constant 0 : i32
    %c0_i32_1 = arith.constant 0 : i32
    return %c0_i32, %c0_i32_0 : i32, i32
  }
  func.func @transform_2(%arg0: i32) -> (i32, i32) {
    %c0_i32 = arith.constant 0 : i32
    %c0_i32_0 = arith.constant 0 : i32
    %c0_i32_1 = arith.constant 0 : i32
    return %c0_i32, %c0_i32_0 : i32, i32
  }
  func.func @transform_3(%arg0: i32) -> (i32, i32) {
    %c0_i32 = arith.constant 0 : i32
    %c0_i32_0 = arith.constant 0 : i32
    return %arg0, %c0_i32 : i32, i32
  }
}

module attributes {stable_mosaic.version = 11 : i64} {
  func.func @_conv_relu_pool_kernel(%arg0: i32, %arg1: memref<4x104x800xbf16, #tpu.memory_space<vmem>>, %arg2: memref<800x64xbf16, #tpu.memory_space<vmem>>, %arg3: memref<1x64xf32, #tpu.memory_space<vmem>>, %arg4: memref<104x64xbf16, #tpu.memory_space<vmem>>) attributes {dimension_semantics = [#tpu.dimension_semantics<parallel>], iteration_bounds = array<i64: 1>, scalar_prefetch = 0 : i64, scratch_operands = 0 : i64, tpu.core_type = #tpu.core_type<tc>, window_params = [{transform_indices = @transform_0, window_bounds = array<i64: 4, 104, 800>}, {pipeline_mode = #tpu.pipeline_mode<synchronous>, transform_indices = @transform_1, window_bounds = array<i64: 800, 64>}, {pipeline_mode = #tpu.pipeline_mode<synchronous>, transform_indices = @transform_2, window_bounds = array<i64: 1, 64>}, {transform_indices = @transform_3, window_bounds = array<i64: 104, 64>}]} {
    %c0 = arith.constant 0 : index
    %c0_0 = arith.constant 0 : index
    %0 = vector.load %arg2[%c0, %c0_0] : memref<800x64xbf16, #tpu.memory_space<vmem>>, vector<800x64xbf16>
    %c0_1 = arith.constant 0 : index
    %c0_2 = arith.constant 0 : index
    %1 = vector.load %arg3[%c0_1, %c0_2] : memref<1x64xf32, #tpu.memory_space<vmem>>, vector<1x64xf32>
    %c0_3 = arith.constant 0 : index
    %c0_4 = arith.constant 0 : index
    %c0_5 = arith.constant 0 : index
    %2 = vector.load %arg1[%c0_3, %c0_4, %c0_5] : memref<4x104x800xbf16, #tpu.memory_space<vmem>>, vector<1x104x800xbf16>
    %3 = vector.shape_cast %2 : vector<1x104x800xbf16> to vector<104x800xbf16>
    %cst = arith.constant dense<0.000000e+00> : vector<104x64xf32>
    %4 = tpu.matmul %3, %0, %cst {dimension_numbers = #tpu.dot_dimension_numbers<[1], [0], [0], [1], [0, 0, 1, 1], [], []>} : vector<104x800xbf16>, vector<800x64xbf16>, vector<104x64xf32> -> vector<104x64xf32>
    %5 = vector.broadcast %1 : vector<1x64xf32> to vector<104x64xf32>
    %6 = arith.addf %4, %5 : vector<104x64xf32>
    %cst_6 = arith.constant 0.000000e+00 : f32
    %7 = vector.broadcast %cst_6 : f32 to vector<104x64xf32>
    %8 = arith.maximumf %6, %7 : vector<104x64xf32>
    %c1 = arith.constant 1 : index
    %c0_7 = arith.constant 0 : index
    %c0_8 = arith.constant 0 : index
    %9 = vector.load %arg1[%c1, %c0_7, %c0_8] : memref<4x104x800xbf16, #tpu.memory_space<vmem>>, vector<1x104x800xbf16>
    %10 = vector.shape_cast %9 : vector<1x104x800xbf16> to vector<104x800xbf16>
    %cst_9 = arith.constant dense<0.000000e+00> : vector<104x64xf32>
    %11 = tpu.matmul %10, %0, %cst_9 {dimension_numbers = #tpu.dot_dimension_numbers<[1], [0], [0], [1], [0, 0, 1, 1], [], []>} : vector<104x800xbf16>, vector<800x64xbf16>, vector<104x64xf32> -> vector<104x64xf32>
    %12 = vector.broadcast %1 : vector<1x64xf32> to vector<104x64xf32>
    %13 = arith.addf %11, %12 : vector<104x64xf32>
    %cst_10 = arith.constant 0.000000e+00 : f32
    %14 = vector.broadcast %cst_10 : f32 to vector<104x64xf32>
    %15 = arith.maximumf %13, %14 : vector<104x64xf32>
    %16 = arith.maximumf %8, %15 : vector<104x64xf32>
    %c2 = arith.constant 2 : index
    %c0_11 = arith.constant 0 : index
    %c0_12 = arith.constant 0 : index
    %17 = vector.load %arg1[%c2, %c0_11, %c0_12] : memref<4x104x800xbf16, #tpu.memory_space<vmem>>, vector<1x104x800xbf16>
    %18 = vector.shape_cast %17 : vector<1x104x800xbf16> to vector<104x800xbf16>
    %cst_13 = arith.constant dense<0.000000e+00> : vector<104x64xf32>
    %19 = tpu.matmul %18, %0, %cst_13 {dimension_numbers = #tpu.dot_dimension_numbers<[1], [0], [0], [1], [0, 0, 1, 1], [], []>} : vector<104x800xbf16>, vector<800x64xbf16>, vector<104x64xf32> -> vector<104x64xf32>
    %20 = vector.broadcast %1 : vector<1x64xf32> to vector<104x64xf32>
    %21 = arith.addf %19, %20 : vector<104x64xf32>
    %cst_14 = arith.constant 0.000000e+00 : f32
    %22 = vector.broadcast %cst_14 : f32 to vector<104x64xf32>
    %23 = arith.maximumf %21, %22 : vector<104x64xf32>
    %c3 = arith.constant 3 : index
    %c0_15 = arith.constant 0 : index
    %c0_16 = arith.constant 0 : index
    %24 = vector.load %arg1[%c3, %c0_15, %c0_16] : memref<4x104x800xbf16, #tpu.memory_space<vmem>>, vector<1x104x800xbf16>
    %25 = vector.shape_cast %24 : vector<1x104x800xbf16> to vector<104x800xbf16>
    %cst_17 = arith.constant dense<0.000000e+00> : vector<104x64xf32>
    %26 = tpu.matmul %25, %0, %cst_17 {dimension_numbers = #tpu.dot_dimension_numbers<[1], [0], [0], [1], [0, 0, 1, 1], [], []>} : vector<104x800xbf16>, vector<800x64xbf16>, vector<104x64xf32> -> vector<104x64xf32>
    %27 = vector.broadcast %1 : vector<1x64xf32> to vector<104x64xf32>
    %28 = arith.addf %26, %27 : vector<104x64xf32>
    %cst_18 = arith.constant 0.000000e+00 : f32
    %29 = vector.broadcast %cst_18 : f32 to vector<104x64xf32>
    %30 = arith.maximumf %28, %29 : vector<104x64xf32>
    %31 = arith.maximumf %23, %30 : vector<104x64xf32>
    %32 = arith.maximumf %16, %31 : vector<104x64xf32>
    %33 = arith.truncf %32 : vector<104x64xf32> to vector<104x64xbf16>
    %c0_19 = arith.constant 0 : index
    %c0_20 = arith.constant 0 : index
    %34 = vector.load %arg4[%c0_19, %c0_20] : memref<104x64xbf16, #tpu.memory_space<vmem>>, vector<104x64xbf16>
    tpu.vector_store %arg4[%c0_19, %c0_20], %33 {strides = array<i32>} : memref<104x64xbf16, #tpu.memory_space<vmem>>, vector<104x64xbf16>,
    return
  }
  func.func @transform_0(%arg0: i32) -> (i32, i32, i32) {
    %c0_i32 = arith.constant 0 : i32
    %c0_i32_0 = arith.constant 0 : i32
    %c0_i32_1 = arith.constant 0 : i32
    return %c0_i32, %arg0, %c0_i32_0 : i32, i32, i32
  }
  func.func @transform_1(%arg0: i32) -> (i32, i32) {
    %c0_i32 = arith.constant 0 : i32
    %c0_i32_0 = arith.constant 0 : i32
    %c0_i32_1 = arith.constant 0 : i32
    return %c0_i32, %c0_i32_0 : i32, i32
  }
  func.func @transform_2(%arg0: i32) -> (i32, i32) {
    %c0_i32 = arith.constant 0 : i32
    %c0_i32_0 = arith.constant 0 : i32
    %c0_i32_1 = arith.constant 0 : i32
    return %c0_i32, %c0_i32_0 : i32, i32
  }
  func.func @transform_3(%arg0: i32) -> (i32, i32) {
    %c0_i32 = arith.constant 0 : i32
    %c0_i32_0 = arith.constant 0 : i32
    return %arg0, %c0_i32 : i32, i32
  }
}

module attributes {stable_mosaic.version = 11 : i64} {
  func.func @_fc_fused_kernel(%arg0: i32, %arg1: i32, %arg2: memref<8x640xbf16, #tpu.memory_space<vmem>>, %arg3: memref<640x512xbf16, #tpu.memory_space<vmem>>, %arg4: memref<1x512xf32, #tpu.memory_space<vmem>>, %arg5: memref<512x128xf32, #tpu.memory_space<vmem>>, %arg6: memref<1x128xf32, #tpu.memory_space<vmem>>, %arg7: memref<8x128xf32, #tpu.memory_space<vmem>>, %arg8: memref<8x512xf32, #tpu.memory_space<vmem>>) attributes {dimension_semantics = [#tpu.dimension_semantics<parallel>, #tpu.dimension_semantics<arbitrary>], iteration_bounds = array<i64: 1, 5>, scalar_prefetch = 0 : i64, scratch_operands = 1 : i64, tpu.core_type = #tpu.core_type<tc>, window_params = [{transform_indices = @transform_0, window_bounds = array<i64: 8, 640>}, {transform_indices = @transform_1, window_bounds = array<i64: 640, 512>}, {pipeline_mode = #tpu.pipeline_mode<synchronous>, transform_indices = @transform_2, window_bounds = array<i64: 1, 512>}, {pipeline_mode = #tpu.pipeline_mode<synchronous>, transform_indices = @transform_3, window_bounds = array<i64: 512, 128>}, {pipeline_mode = #tpu.pipeline_mode<synchronous>, transform_indices = @transform_4, window_bounds = array<i64: 1, 128>}, {transform_indices = @transform_5, window_bounds = array<i64: 8, 128>}]} {
    %c0_i32 = arith.constant 0 : i32
    %0 = arith.cmpi eq, %arg1, %c0_i32 : i32
    %1 = arith.extui %0 : i1 to i32
    %c0_i32_0 = arith.constant 0 : i32
    %2 = arith.cmpi ne, %1, %c0_i32_0 : i32
    scf.if %2 {
      %cst_9 = arith.constant 0.000000e+00 : f32
      %12 = vector.broadcast %cst_9 : f32 to vector<8x512xf32>
      %c0_10 = arith.constant 0 : index
      %c0_11 = arith.constant 0 : index
      %13 = vector.load %arg8[%c0_10, %c0_11] : memref<8x512xf32, #tpu.memory_space<vmem>>, vector<8x512xf32>
      tpu.vector_store %arg8[%c0_10, %c0_11], %12 {strides = array<i32>} : memref<8x512xf32, #tpu.memory_space<vmem>>, vector<8x512xf32>,
    } else {
    }
    %c0 = arith.constant 0 : index
    %c0_1 = arith.constant 0 : index
    %3 = vector.load %arg8[%c0, %c0_1] : memref<8x512xf32, #tpu.memory_space<vmem>>, vector<8x512xf32>
    %c0_2 = arith.constant 0 : index
    %c0_3 = arith.constant 0 : index
    %4 = vector.load %arg2[%c0_2, %c0_3] : memref<8x640xbf16, #tpu.memory_space<vmem>>, vector<8x640xbf16>
    %c0_4 = arith.constant 0 : index
    %c0_5 = arith.constant 0 : index
    %5 = vector.load %arg3[%c0_4, %c0_5] : memref<640x512xbf16, #tpu.memory_space<vmem>>, vector<640x512xbf16>
    %cst = arith.constant dense<0.000000e+00> : vector<8x512xf32>
    %6 = tpu.matmul %4, %5, %cst {dimension_numbers = #tpu.dot_dimension_numbers<[1], [0], [0], [1], [0, 0, 1, 1], [], []>} : vector<8x640xbf16>, vector<640x512xbf16>, vector<8x512xf32> -> vector<8x512xf32>
    %7 = arith.addf %3, %6 : vector<8x512xf32>
    %c0_6 = arith.constant 0 : index
    %c0_7 = arith.constant 0 : index
    %8 = vector.load %arg8[%c0_6, %c0_7] : memref<8x512xf32, #tpu.memory_space<vmem>>, vector<8x512xf32>
    tpu.vector_store %arg8[%c0_6, %c0_7], %7 {strides = array<i32>} : memref<8x512xf32, #tpu.memory_space<vmem>>, vector<8x512xf32>,
    %c4_i32 = arith.constant 4 : i32
    %9 = arith.cmpi eq, %arg1, %c4_i32 : i32
    %10 = arith.extui %9 : i1 to i32
    %c0_i32_8 = arith.constant 0 : i32
    %11 = arith.cmpi ne, %10, %c0_i32_8 : i32
    scf.if %11 {
      %c0_9 = arith.constant 0 : index
      %c0_10 = arith.constant 0 : index
      %12 = vector.load %arg8[%c0_9, %c0_10] : memref<8x512xf32, #tpu.memory_space<vmem>>, vector<8x512xf32>
      %c0_11 = arith.constant 0 : index
      %c0_12 = arith.constant 0 : index
      %13 = vector.load %arg4[%c0_11, %c0_12] : memref<1x512xf32, #tpu.memory_space<vmem>>, vector<1x512xf32>
      %14 = vector.broadcast %13 : vector<1x512xf32> to vector<8x512xf32>
      %15 = arith.addf %12, %14 : vector<8x512xf32>
      %cst_13 = arith.constant 0.000000e+00 : f32
      %16 = vector.broadcast %cst_13 : f32 to vector<8x512xf32>
      %17 = arith.maximumf %15, %16 : vector<8x512xf32>
      %c0_14 = arith.constant 0 : index
      %c0_15 = arith.constant 0 : index
      %18 = vector.load %arg5[%c0_14, %c0_15] : memref<512x128xf32, #tpu.memory_space<vmem>>, vector<512x128xf32>
      %cst_16 = arith.constant dense<0.000000e+00> : vector<8x128xf32>
      %19 = tpu.matmul %17, %18, %cst_16 {dimension_numbers = #tpu.dot_dimension_numbers<[1], [0], [0], [1], [0, 0, 1, 1], [], []>} : vector<8x512xf32>, vector<512x128xf32>, vector<8x128xf32> -> vector<8x128xf32>
      %c0_17 = arith.constant 0 : index
      %c0_18 = arith.constant 0 : index
      %20 = vector.load %arg6[%c0_17, %c0_18] : memref<1x128xf32, #tpu.memory_space<vmem>>, vector<1x128xf32>
      %21 = vector.broadcast %20 : vector<1x128xf32> to vector<8x128xf32>
      %22 = arith.addf %19, %21 : vector<8x128xf32>
      %c0_19 = arith.constant 0 : index
      %c0_20 = arith.constant 0 : index
      %23 = vector.load %arg7[%c0_19, %c0_20] : memref<8x128xf32, #tpu.memory_space<vmem>>, vector<8x128xf32>
      tpu.vector_store %arg7[%c0_19, %c0_20], %22 {strides = array<i32>} : memref<8x128xf32, #tpu.memory_space<vmem>>, vector<8x128xf32>,
    } else {
    }
    return
  }
  func.func @transform_0(%arg0: i32, %arg1: i32) -> (i32, i32) {
    %c0_i32 = arith.constant 0 : i32
    return %arg0, %arg1 : i32, i32
  }
  func.func @transform_1(%arg0: i32, %arg1: i32) -> (i32, i32) {
    %c0_i32 = arith.constant 0 : i32
    %c0_i32_0 = arith.constant 0 : i32
    return %arg1, %c0_i32 : i32, i32
  }
  func.func @transform_2(%arg0: i32, %arg1: i32) -> (i32, i32) {
    %c0_i32 = arith.constant 0 : i32
    %c0_i32_0 = arith.constant 0 : i32
    %c0_i32_1 = arith.constant 0 : i32
    return %c0_i32, %c0_i32_0 : i32, i32
  }
  func.func @transform_3(%arg0: i32, %arg1: i32) -> (i32, i32) {
    %c0_i32 = arith.constant 0 : i32
    %c0_i32_0 = arith.constant 0 : i32
    %c0_i32_1 = arith.constant 0 : i32
    return %c0_i32, %c0_i32_0 : i32, i32
  }
  func.func @transform_4(%arg0: i32, %arg1: i32) -> (i32, i32) {
    %c0_i32 = arith.constant 0 : i32
    %c0_i32_0 = arith.constant 0 : i32
    %c0_i32_1 = arith.constant 0 : i32
    return %c0_i32, %c0_i32_0 : i32, i32
  }
  func.func @transform_5(%arg0: i32, %arg1: i32) -> (i32, i32) {
    %c0_i32 = arith.constant 0 : i32
    %c0_i32_0 = arith.constant 0 : i32
    return %arg0, %c0_i32 : i32, i32
  }
}

</mosaic_0001>

<bundles_post_ra>
// kernel: net_forward.3
= control target key start
LH: loop header
LB: loop body
LE: loop exit
PB: predicated region body
PF: predicated region fallthrough
CT: control target
= control target key end

     0   :  { %s1550_s12 = smov 0   ;;  %s1552_s13 = smov 0   ;;  %s1845_s0 = inlined_call_operand.vmem [shape: bf16[4,512,32], index: 0, kind: input, shape index: {}]   ;;  %s1846_s1 = inlined_call_operand.vmem [shape: bf16[32,32], index: 1, kind: input, shape index: {}]   ;;  %s1847_s2 = inlined_call_operand.vmem [shape: f32[1,32], index: 2, kind: input, shape index: {}]   ;;  %s1848_s3 = inlined_call_operand.vmem [shape: bf16[512,32], index: 3, kind: output, shape index: {}]  }
   0x1   :  { %s1554_s14 = smov 0  }
   0x2 LB: > { %s1217_s15 = sadd.s32 4294967295, %s1528_s14   ;;  %s1567_s16 = sadd.s32 1, %s1528_s14   ;;  %s1528_s14 = sphi %s1554_s14, %s1851_s14   ;;  %s1524_s13 = sphi %s1552_s13, %s1850_s13   ;;  %s1520_s12 = sphi %s1550_s12, %s1849_s12  }
   0x3   : > { %s17_s17 = ssub.s32 %s1528_s14, %s1567_s16  ;;  %s20_s18 = sadd.s32 1, %s1524_s13 }
   0x4   : > { %p18_p0 = scmp.eq.s32.totalorder %s17_s17, 0  ;;  %p27_p1 = scmp.ne.s32.totalorder %s1524_s13, %s1520_s12 }
   0x5   : > { %p28_p2 = scmp.eq.s32.totalorder %s1528_s14, 0  ;;  %p1220_p4 = scmp.ge.s32.totalorder %s1528_s14, 4 }
   0x6   : > { %s1576_s19 = scalar_select %p18_p0, %s1524_s13, %s20_s18  }
   0x7   : > { %p29_p3 = por %p28_p2, %p27_p1  ;;  %127 = sbr.rel (%p1220_p4) target bundleno = 48 (0x30), region = 24 }
   0xc   : > { %130 = sbr.rel (!%p29_p3) target bundleno = 48 (0x30), region = 28  ;;  %s132_s20 = sand.u32 (%p29_p3), 1, %s1524_s13  }
   0xd   : > { %s1446_s21 = sshll.u32 (%p29_p3), %s1528_s14, 6  ;;  %s1221_s22 = sshll.u32 (%p29_p3), %s132_s20, 8 }
   0xe   : > { %s1584_s25 = scalar_lea.vmem (%p29_p3), %s1845_s0, %s1446_s21  ;;  %s1589_s26 = scalar_lea.vmem (%p29_p3), [#allocation2], %s1221_s22 }
   0xf   : > { %v154_v0 = vld [vmem:[%s1584_s25] sm:$0xff] (%p29_p3)   ;;  %v158_v1 = vld [vmem:[%s1584_s25 + $0x8] sm:$0xff] (%p29_p3)   ;;  %v162_v2 = vld [vmem:[%s1584_s25 + $0x10] sm:$0xff] (%p29_p3)  }
  0x10   : > { %155 = vst [vmem:[%s1589_s26] sm:$0xff] (%p29_p3), %v154_v0   ;;  %v166_v3 = vld [vmem:[%s1584_s25 + $0x18] sm:$0xff] (%p29_p3)   ;;  %v170_v4 = vld [vmem:[%s1584_s25 + $0x20] sm:$0xff] (%p29_p3)   ;;  %v174_v5 = vld [vmem:[%s1584_s25 + $0x28] sm:$0xff] (%p29_p3)  }
  0x11   : > { %159 = vst [vmem:[%s1589_s26 + $0x8] sm:$0xff] %v158_v1   ;;  %v178_v6 = vld [vmem:[%s1584_s25 + $0x30] sm:$0xff]   ;;  %v182_v7 = vld [vmem:[%s1584_s25 + $0x38] sm:$0xff]   ;;  %v186_v8 = vld [vmem:[%s1584_s25 + $0x100] sm:$0xff]  }
  0x12   : > { %163 = vst [vmem:[%s1589_s26 + $0x10] sm:$0xff] %v162_v2   ;;  %v190_v9 = vld [vmem:[%s1584_s25 + $0x108] sm:$0xff]   ;;  %v194_v10 = vld [vmem:[%s1584_s25 + $0x110] sm:$0xff]   ;;  %v198_v11 = vld [vmem:[%s1584_s25 + $0x118] sm:$0xff]  }
  0x13   : > { %167 = vst [vmem:[%s1589_s26 + $0x18] sm:$0xff] %v166_v3   ;;  %v202_v12 = vld [vmem:[%s1584_s25 + $0x120] sm:$0xff]   ;;  %v206_v13 = vld [vmem:[%s1584_s25 + $0x128] sm:$0xff]   ;;  %v210_v14 = vld [vmem:[%s1584_s25 + $0x130] sm:$0xff]  }
  0x14   : > { %171 = vst [vmem:[%s1589_s26 + $0x20] sm:$0xff] %v170_v4   ;;  %v214_v15 = vld [vmem:[%s1584_s25 + $0x138] sm:$0xff]   ;;  %v218_v16 = vld [vmem:[%s1584_s25 + $0x200] sm:$0xff]   ;;  %v222_v17 = vld [vmem:[%s1584_s25 + $0x208] sm:$0xff]  }
  0x15   : > { %175 = vst [vmem:[%s1589_s26 + $0x28] sm:$0xff] %v174_v5   ;;  %v226_v18 = vld [vmem:[%s1584_s25 + $0x210] sm:$0xff]   ;;  %v230_v19 = vld [vmem:[%s1584_s25 + $0x218] sm:$0xff]   ;;  %v234_v20 = vld [vmem:[%s1584_s25 + $0x220] sm:$0xff]  }
  0x16   : > { %179 = vst [vmem:[%s1589_s26 + $0x30] sm:$0xff] %v178_v6   ;;  %v238_v21 = vld [vmem:[%s1584_s25 + $0x228] sm:$0xff]   ;;  %v242_v22 = vld [vmem:[%s1584_s25 + $0x230] sm:$0xff]   ;;  %v246_v23 = vld [vmem:[%s1584_s25 + $0x238] sm:$0xff]  }
  0x17   : > { %183 = vst [vmem:[%s1589_s26 + $0x38] sm:$0xff] %v182_v7   ;;  %v250_v24 = vld [vmem:[%s1584_s25 + $0x300] sm:$0xff]   ;;  %v254_v25 = vld [vmem:[%s1584_s25 + $0x308] sm:$0xff]   ;;  %v258_v26 = vld [vmem:[%s1584_s25 + $0x310] sm:$0xff]  }
  0x18   : > { %187 = vst [vmem:[%s1589_s26 + $0x40] sm:$0xff] %v186_v8   ;;  %v262_v27 = vld [vmem:[%s1584_s25 + $0x318] sm:$0xff]   ;;  %v266_v28 = vld [vmem:[%s1584_s25 + $0x320] sm:$0xff]   ;;  %v270_v29 = vld [vmem:[%s1584_s25 + $0x328] sm:$0xff]  }
  0x19   : > { %191 = vst [vmem:[%s1589_s26 + $0x48] sm:$0xff] %v190_v9   ;;  %v274_v30 = vld [vmem:[%s1584_s25 + $0x330] sm:$0xff]   ;;  %v278_v31 = vld [vmem:[%s1584_s25 + $0x338] sm:$0xff]  }
  0x1a   : > { %195 = vst [vmem:[%s1589_s26 + $0x50] sm:$0xff] %v194_v10  }
  0x1b   : > { %199 = vst [vmem:[%s1589_s26 + $0x58] sm:$0xff] %v198_v11  }
  0x1c   : > { %203 = vst [vmem:[%s1589_s26 + $0x60] sm:$0xff] %v202_v12  }
  0x1d   : > { %207 = vst [vmem:[%s1589_s26 + $0x68] sm:$0xff] %v206_v13  }
  0x1e   : > { %211 = vst [vmem:[%s1589_s26 + $0x70] sm:$0xff] %v210_v14  }
  0x1f   : > { %215 = vst [vmem:[%s1589_s26 + $0x78] sm:$0xff] %v214_v15  }
  0x20   : > { %219 = vst [vmem:[%s1589_s26 + $0x80] sm:$0xff] %v218_v16  }
  0x21   : > { %223 = vst [vmem:[%s1589_s26 + $0x88] sm:$0xff] %v222_v17  }
  0x22   : > { %227 = vst [vmem:[%s1589_s26 + $0x90] sm:$0xff] %v226_v18  }
  0x23   : > { %231 = vst [vmem:[%s1589_s26 + $0x98] sm:$0xff] %v230_v19  }
  0x24   : > { %235 = vst [vmem:[%s1589_s26 + $0xa0] sm:$0xff] %v234_v20  }
  0x25   : > { %239 = vst [vmem:[%s1589_s26 + $0xa8] sm:$0xff] %v238_v21  }
  0x26   : > { %243 = vst [vmem:[%s1589_s26 + $0xb0] sm:$0xff] %v242_v22  }
  0x27   : > { %247 = vst [vmem:[%s1589_s26 + $0xb8] sm:$0xff] %v246_v23  }
  0x28   : > { %251 = vst [vmem:[%s1589_s26 + $0xc0] sm:$0xff] %v250_v24  }
  0x29   : > { %255 = vst [vmem:[%s1589_s26 + $0xc8] sm:$0xff] %v254_v25  }
  0x2a   : > { %259 = vst [vmem:[%s1589_s26 + $0xd0] sm:$0xff] %v258_v26  }
  0x2b   : > { %263 = vst [vmem:[%s1589_s26 + $0xd8] sm:$0xff] %v262_v27  }
  0x2c   : > { %267 = vst [vmem:[%s1589_s26 + $0xe0] sm:$0xff] %v266_v28  }
  0x2d   : > { %271 = vst [vmem:[%s1589_s26 + $0xe8] sm:$0xff] %v270_v29  }
  0x2e   : > { %275 = vst [vmem:[%s1589_s26 + $0xf0] sm:$0xff] %v274_v30  }
  0x2f   : > { %279 = vst [vmem:[%s1589_s26 + $0xf8] sm:$0xff] %v278_v31  }
  0x30 PF: > { %p1224_p5 = scmp.ge.s32.totalorder %s1528_s14, 1  ;;  %p432_p6 = scmp.lt.s32.totalorder %s1528_s14, 5 }
  0x32   : > { %p433_p7 = pnand %p1224_p5, %p432_p6 }
  0x33   : > { %s439_s29 = sand.u32 (!%p433_p7), 1, %s1520_s12   ;;  %s1226_s9 = sshll.u32 (!%p433_p7), %s1217_s15, 4 }
  0x34   : > { %436 = sbr.rel (%p433_p7) target bundleno = 329 (0x149), region = 69  ;;  %s1225_s30 = sshll.u32 (!%p433_p7), %s439_s29, 8 }
  0x35   : > { %s1661_s6 = scalar_lea.vmem (!%p433_p7), [#allocation2], %s1225_s30  ;;  %p464_p8 = scmp.lt.s32.totalorder (!%p433_p7), %s1226_s9, 63 }
  0x39   : > { %v1448_v32 = vld [vmem:[%s1846_s1 + $0x8] sm:$0xff]  ;;  %v1447_v33 = vld [vmem:[%s1846_s1] sm:$0xff]  ;;  %vm546_vm0 = vcmask 261120   ;;  %v1451_v42 = vld [vmem:[%s1661_s6 + $0x10] sm:$0xff]  ;;  %s1853_s9 = smov (!%p464_p8, %s1226_s9), 63  ;;  %vm1138_vm1 = vcmask 257024  }
  0x3a   : > { %577 = vmatpush.bf16.msra.mxu0 %v1448_v32  ;;  %723 = vmatpush.bf16.msra.mxu1 %v1448_v32  ;;  %v1449_v34 = vld [vmem:[%s1661_s6] sm:$0xff]  ;;  %v1450_v38 = vld [vmem:[%s1661_s6 + $0x8] sm:$0xff]  ;;  %v1459_v43 = vld [vmem:[%s1661_s6 + $0x50] sm:$0xff]  ;;  %s1227_s10 = sshll.u32 %s1853_s9, 2 }
  0x3b   : > { %885 = vmatpush.bf16.msra.mxu2 %v1448_v32  ;;  %1031 = vmatpush.bf16.msra.mxu3 %v1448_v32  ;;  %v1457_v35 = vld [vmem:[%s1661_s6 + $0x40] sm:$0xff]  ;;  %v1458_v39 = vld [vmem:[%s1661_s6 + $0x48] sm:$0xff]  ;;  %v1467_v44 = vld [vmem:[%s1661_s6 + $0x90] sm:$0xff]  ;;  %s1743_s14 = scalar_lea.vmem %s1848_s3, %s1227_s10 }
  0x3c   : > { %v1465_v36 = vld [vmem:[%s1661_s6 + $0x80] sm:$0xff]  ;;  %v1466_v40 = vld [vmem:[%s1661_s6 + $0x88] sm:$0xff]  ;;  %v1475_v45 = vld [vmem:[%s1661_s6 + $0xd0] sm:$0xff] }
  0x3d   : > { %v1473_v37 = vld [vmem:[%s1661_s6 + $0xc0] sm:$0xff]  ;;  %v1474_v41 = vld [vmem:[%s1661_s6 + $0xc8] sm:$0xff]  ;;  %v1452_v46 = vld [vmem:[%s1661_s6 + $0x18] sm:$0xff] }
  0x3e   : > { %578 = vmatpush.bf16.msra.mxu0 %v1447_v33  ;;  %724 = vmatpush.bf16.msra.mxu1 %v1447_v33  ;;  %v1460_v47 = vld [vmem:[%s1661_s6 + $0x58] sm:$0xff]  ;;  %v1453_v50 = vld [vmem:[%s1661_s6 + $0x20] sm:$0xff]  ;;  %v1454_v54 = vld [vmem:[%s1661_s6 + $0x28] sm:$0xff] }
  0x3f   : > { %886 = vmatpush.bf16.msra.mxu2 %v1447_v33  ;;  %1032 = vmatpush.bf16.msra.mxu3 %v1447_v33  ;;  %v1468_v48 = vld [vmem:[%s1661_s6 + $0x98] sm:$0xff]  ;;  %v1461_v51 = vld [vmem:[%s1661_s6 + $0x60] sm:$0xff]  ;;  %v1462_v55 = vld [vmem:[%s1661_s6 + $0x68] sm:$0xff] }
  0x40   : > { %v1476_v49 = vld [vmem:[%s1661_s6 + $0xd8] sm:$0xff]  ;;  %v1469_v52 = vld [vmem:[%s1661_s6 + $0xa0] sm:$0xff]  ;;  %v1470_v56 = vld [vmem:[%s1661_s6 + $0xa8] sm:$0xff] }
  0x41   : > { %1268 = vmatmul.msk.bf16.vlgmr.msra.gmra.mxu0 %vm546_vm0, %v1449_v34  ;;  %1324 = vmatmul.msk.bf16.vlgmr.msra.gmra.mxu1 %vm546_vm0, %v1457_v35  ;;  %v1477_v53 = vld [vmem:[%s1661_s6 + $0xe0] sm:$0xff]  ;;  %v1478_v57 = vld [vmem:[%s1661_s6 + $0xe8] sm:$0xff]  ;;  %v1455_v58 = vld [vmem:[%s1661_s6 + $0x30] sm:$0xff] }
  0x42   : > { %1380 = vmatmul.msk.bf16.vlgmr.msra.gmra.mxu2 %vm546_vm0, %v1465_v36  ;;  %1436 = vmatmul.msk.bf16.vlgmr.msra.gmra.mxu3 %vm546_vm0, %v1473_v37  ;;  %v1463_v59 = vld [vmem:[%s1661_s6 + $0x70] sm:$0xff]  ;;  %v1456_v62 = vld [vmem:[%s1661_s6 + $0x38] sm:$0xff]  ;;  %v1730_v2 = vld [vmem:[%s1847_s2] ss:$0 sm:$0xff] }
  0x43   : > { %v1471_v60 = vld [vmem:[%s1661_s6 + $0xb0] sm:$0xff]  ;;  %v1464_v63 = vld [vmem:[%s1661_s6 + $0x78] sm:$0xff] }
  0x44   : > { %v1479_v61 = vld [vmem:[%s1661_s6 + $0xf0] sm:$0xff]  ;;  %v1472_v0 = vld [vmem:[%s1661_s6 + $0xb8] sm:$0xff] }
  0x45   : > { %v1480_v1 = vld [vmem:[%s1661_s6 + $0xf8] sm:$0xff] }
  0x51   : > { %1269 = vmatmul.msk.bf16.gmra.mxu0 %vm546_vm0, %v1450_v38  ;;  %1325 = vmatmul.msk.bf16.gmra.mxu1 %vm546_vm0, %v1458_v39 }
  0x52   : > { %1381 = vmatmul.msk.bf16.gmra.mxu2 %vm546_vm0, %v1466_v40  ;;  %1437 = vmatmul.msk.bf16.gmra.mxu3 %vm546_vm0, %v1474_v41 }
  0x61   : > { %1270 = vmatmul.msk.bf16.gmra.mxu0 %vm546_vm0, %v1451_v42  ;;  %1326 = vmatmul.msk.bf16.gmra.mxu1 %vm546_vm0, %v1459_v43 }
  0x62   : > { %1382 = vmatmul.msk.bf16.gmra.mxu2 %vm546_vm0, %v1467_v44  ;;  %1438 = vmatmul.msk.bf16.gmra.mxu3 %vm546_vm0, %v1475_v45 }
  0x71   : > { %1271 = vmatmul.msk.bf16.gmra.mxu0 %vm546_vm0, %v1452_v46  ;;  %1327 = vmatmul.msk.bf16.gmra.mxu1 %vm546_vm0, %v1460_v47 }
  0x72   : > { %1383 = vmatmul.msk.bf16.gmra.mxu2 %vm546_vm0, %v1468_v48  ;;  %1439 = vmatmul.msk.bf16.gmra.mxu3 %vm546_vm0, %v1476_v49 }
  0x81   : > { %1272 = vmatmul.msk.bf16.gmra.mxu0 %vm546_vm0, %v1453_v50  ;;  %1328 = vmatmul.msk.bf16.gmra.mxu1 %vm546_vm0, %v1461_v51 }
  0x82   : > { %1384 = vmatmul.msk.bf16.gmra.mxu2 %vm546_vm0, %v1469_v52  ;;  %1440 = vmatmul.msk.bf16.gmra.mxu3 %vm546_vm0, %v1477_v53 }
  0x91   : > { %1273 = vmatmul.msk.bf16.gmra.mxu0 %vm546_vm0, %v1454_v54  ;;  %1329 = vmatmul.msk.bf16.gmra.mxu1 %vm546_vm0, %v1462_v55 }
  0x92   : > { %1385 = vmatmul.msk.bf16.gmra.mxu2 %vm546_vm0, %v1470_v56  ;;  %1441 = vmatmul.msk.bf16.gmra.mxu3 %vm546_vm0, %v1478_v57 }
  0xa1   : > { %1274 = vmatmul.msk.bf16.gmra.mxu0 %vm546_vm0, %v1455_v58  ;;  %1330 = vmatmul.msk.bf16.gmra.mxu1 %vm546_vm0, %v1463_v59 }
  0xa2   : > { %1386 = vmatmul.msk.bf16.gmra.mxu2 %vm546_vm0, %v1471_v60  ;;  %1442 = vmatmul.msk.bf16.gmra.mxu3 %vm546_vm0, %v1479_v61 }
  0xb1   : > { %1275 = vmatmul.msk.bf16.gmra.mxu0 %vm546_vm0, %v1456_v62  ;;  %1331 = vmatmul.msk.bf16.gmra.mxu1 %vm546_vm0, %v1464_v63 }
  0xb2   : > { %1387 = vmatmul.msk.bf16.gmra.mxu2 %vm546_vm0, %v1472_v0  ;;  %1443 = vmatmul.msk.bf16.gmra.mxu3 %vm546_vm0, %v1480_v1 }
  0xbe   : > { %v580_v3 = vpop.f32.mrf.mxu0  ;;  %v726_v4 = vpop.f32.mrf.mxu1 }
  0xbf   : > { %v581_v5 = vadd.f32 %v1730_v2, %v580_v3  ;;  %v727_v6 = vadd.f32 %v1730_v2, %v726_v4 }
  0xc1   : > { %v620_v7 = vmax.f32 %v581_v5, 0.0  ;;  %v766_v8 = vmax.f32 %v727_v6, 0.0 }
  0xc3   : > { %v782_v15 = vmax.f32 %v620_v7, %v766_v8 }
  0xc5   : > { %v888_v9 = vpop.f32.mrf.mxu2  ;;  %v1034_v10 = vpop.f32.mrf.mxu3 }
  0xc6   : > { %v889_v11 = vadd.f32 %v1730_v2, %v888_v9  ;;  %v1035_v12 = vadd.f32 %v1730_v2, %v1034_v10  ;;  %v582_v13 = vpop.f32.mrf.mxu0  ;;  %v728_v14 = vpop.f32.mrf.mxu1 }
  0xc7   : > { %v583_v18 = vadd.f32 %v1730_v2, %v582_v13  ;;  %v729_v20 = vadd.f32 %v1730_v2, %v728_v14 }
  0xc8   : > { %v928_v16 = vmax.f32 %v889_v11, 0.0  ;;  %v1074_v17 = vmax.f32 %v1035_v12, 0.0 }
  0xc9   : > { %v621_v22 = vmax.f32 %v583_v18, 0.0  ;;  %v767_v26 = vmax.f32 %v729_v20, 0.0 }
  0xca   : > { %v1090_v19 = vmax.f32 %v928_v16, %v1074_v17 }
  0xcb   : > { %v783_v35 = vmax.f32 %v621_v22, %v767_v26 }
  0xcc   : > { %v1106_v21 = vmax.f32 %v782_v15, %v1090_v19 }
  0xcd   : > { %v890_v23 = vpop.f32.mrf.mxu2  ;;  %v1036_v24 = vpop.f32.mrf.mxu3 }
  0xce   : > { %v1122_v25 = vpack.c.bf16 %v1106_v21, %v1106_v21  ;;  %v891_v27 = vadd.f32 %v1730_v2, %v890_v23  ;;  %v1037_v28 = vadd.f32 %v1730_v2, %v1036_v24  ;;  %v585_v29 = vpop.f32.mrf.mxu0  ;;  %v731_v30 = vpop.f32.mrf.mxu1 }
  0xcf   : > { %v586_v33 = vadd.f32 %v1730_v2, %v585_v29  ;;  %v732_v34 = vadd.f32 %v1730_v2, %v731_v30 }
  0xd0   : > { %1139 = vst.msk [vmem:[%s1743_s14] sm:$0xf] %vm1138_vm1, %v1122_v25  ;;  %v929_v31 = vmax.f32 %v891_v27, 0.0  ;;  %v1075_v32 = vmax.f32 %v1037_v28, 0.0 }
  0xd1   : > { %v622_v38 = vmax.f32 %v586_v33, 0.0  ;;  %v768_v39 = vmax.f32 %v732_v34, 0.0 }
  0xd2   : > { %v1091_v36 = vmax.f32 %v929_v31, %v1075_v32 }
  0xd3   : > { %v784_v47 = vmax.f32 %v622_v38, %v768_v39 }
  0xd4   : > { %v1107_v37 = vmax.f32 %v783_v35, %v1091_v36 }
  0xd5   : > { %v893_v40 = vpop.f32.mrf.mxu2  ;;  %v1039_v41 = vpop.f32.mrf.mxu3 }
  0xd6   : > { %v1123_v42 = vpack.c.bf16 %v1107_v37, %v1107_v37  ;;  %v894_v43 = vadd.f32 %v1730_v2, %v893_v40  ;;  %v1040_v44 = vadd.f32 %v1730_v2, %v1039_v41  ;;  %v587_v45 = vpop.f32.mrf.mxu0  ;;  %v733_v46 = vpop.f32.mrf.mxu1 }
  0xd7   : > { %v588_v50 = vadd.f32 %v1730_v2, %v587_v45  ;;  %v734_v52 = vadd.f32 %v1730_v2, %v733_v46 }
  0xd8   : > { %1140 = vst.msk [vmem:[%s1743_s14 + $0x4] sm:$0xf] %vm1138_vm1, %v1123_v42  ;;  %v930_v48 = vmax.f32 %v894_v43, 0.0  ;;  %v1076_v49 = vmax.f32 %v1040_v44, 0.0 }
  0xd9   : > { %v623_v54 = vmax.f32 %v588_v50, 0.0  ;;  %v769_v58 = vmax.f32 %v734_v52, 0.0 }
  0xda   : > { %v1092_v51 = vmax.f32 %v930_v48, %v1076_v49 }
  0xdb   : > { %v785_v4 = vmax.f32 %v623_v54, %v769_v58 }
  0xdc   : > { %v1108_v53 = vmax.f32 %v784_v47, %v1092_v51 }
  0xdd   : > { %v895_v55 = vpop.f32.mrf.mxu2  ;;  %v1041_v56 = vpop.f32.mrf.mxu3 }
  0xde   : > { %v1124_v57 = vpack.c.bf16 %v1108_v53, %v1108_v53  ;;  %v896_v59 = vadd.f32 %v1730_v2, %v895_v55  ;;  %v1042_v60 = vadd.f32 %v1730_v2, %v1041_v56  ;;  %v590_v61 = vpop.f32.mrf.mxu0  ;;  %v736_v62 = vpop.f32.mrf.mxu1 }
  0xdf   : > { %v591_v1 = vadd.f32 %v1730_v2, %v590_v61  ;;  %v737_v3 = vadd.f32 %v1730_v2, %v736_v62 }
  0xe0   : > { %1141 = vst.msk [vmem:[%s1743_s14 + $0x8] sm:$0xf] %vm1138_vm1, %v1124_v57  ;;  %v931_v63 = vmax.f32 %v896_v59, 0.0  ;;  %v1077_v0 = vmax.f32 %v1042_v60, 0.0 }
  0xe1   : > { %v624_v7 = vmax.f32 %v591_v1, 0.0  ;;  %v770_v8 = vmax.f32 %v737_v3, 0.0 }
  0xe2   : > { %v1093_v5 = vmax.f32 %v931_v63, %v1077_v0 }
  0xe3   : > { %v786_v16 = vmax.f32 %v624_v7, %v770_v8 }
  0xe4   : > { %v1109_v6 = vmax.f32 %v785_v4, %v1093_v5 }
  0xe5   : > { %v898_v9 = vpop.f32.mrf.mxu2  ;;  %v1044_v10 = vpop.f32.mrf.mxu3 }
  0xe6   : > { %v1125_v11 = vpack.c.bf16 %v1109_v6, %v1109_v6  ;;  %v899_v12 = vadd.f32 %v1730_v2, %v898_v9  ;;  %v1045_v13 = vadd.f32 %v1730_v2, %v1044_v10  ;;  %v592_v14 = vpop.f32.mrf.mxu0  ;;  %v738_v15 = vpop.f32.mrf.mxu1 }
  0xe7   : > { %v593_v19 = vadd.f32 %v1730_v2, %v592_v14  ;;  %v739_v21 = vadd.f32 %v1730_v2, %v738_v15 }
  0xe8   : > { %1142 = vst.msk [vmem:[%s1743_s14 + $0xc] sm:$0xf] %vm1138_vm1, %v1125_v11  ;;  %v932_v17 = vmax.f32 %v899_v12, 0.0  ;;  %v1078_v18 = vmax.f32 %v1045_v13, 0.0 }
  0xe9   : > { %v625_v23 = vmax.f32 %v593_v19, 0.0  ;;  %v771_v27 = vmax.f32 %v739_v21, 0.0 }
  0xea   : > { %v1094_v20 = vmax.f32 %v932_v17, %v1078_v18 }
  0xeb   : > { %v787_v36 = vmax.f32 %v625_v23, %v771_v27 }
  0xec   : > { %v1110_v22 = vmax.f32 %v786_v16, %v1094_v20 }
  0xed   : > { %v900_v24 = vpop.f32.mrf.mxu2  ;;  %v1046_v25 = vpop.f32.mrf.mxu3 }
  0xee   : > { %v1126_v26 = vpack.c.bf16 %v1110_v22, %v1110_v22  ;;  %v901_v28 = vadd.f32 %v1730_v2, %v900_v24  ;;  %v1047_v29 = vadd.f32 %v1730_v2, %v1046_v25  ;;  %v595_v30 = vpop.f32.mrf.mxu0  ;;  %v741_v31 = vpop.f32.mrf.mxu1 }
  0xef   : > { %v596_v34 = vadd.f32 %v1730_v2, %v595_v30  ;;  %v742_v35 = vadd.f32 %v1730_v2, %v741_v31 }
  0xf0   : > { %1143 = vst.msk [vmem:[%s1743_s14 + $0x10] sm:$0xf] %vm1138_vm1, %v1126_v26  ;;  %v933_v32 = vmax.f32 %v901_v28, 0.0  ;;  %v1079_v33 = vmax.f32 %v1047_v29, 0.0 }
  0xf1   : > { %v626_v39 = vmax.f32 %v596_v34, 0.0  ;;  %v772_v40 = vmax.f32 %v742_v35, 0.0 }
  0xf2   : > { %v1095_v37 = vmax.f32 %v933_v32, %v1079_v33 }
  0xf3   : > { %v788_v48 = vmax.f32 %v626_v39, %v772_v40 }
  0xf4   : > { %v1111_v38 = vmax.f32 %v787_v36, %v1095_v37 }
  0xf5   : > { %v903_v41 = vpop.f32.mrf.mxu2  ;;  %v1049_v42 = vpop.f32.mrf.mxu3 }
  0xf6   : > { %v1127_v43 = vpack.c.bf16 %v1111_v38, %v1111_v38  ;;  %v904_v44 = vadd.f32 %v1730_v2, %v903_v41  ;;  %v1050_v45 = vadd.f32 %v1730_v2, %v1049_v42  ;;  %v597_v46 = vpop.f32.mrf.mxu0  ;;  %v743_v47 = vpop.f32.mrf.mxu1 }
  0xf7   : > { %v598_v51 = vadd.f32 %v1730_v2, %v597_v46  ;;  %v744_v53 = vadd.f32 %v1730_v2, %v743_v47 }
  0xf8   : > { %1144 = vst.msk [vmem:[%s1743_s14 + $0x14] sm:$0xf] %vm1138_vm1, %v1127_v43  ;;  %v934_v49 = vmax.f32 %v904_v44, 0.0  ;;  %v1080_v50 = vmax.f32 %v1050_v45, 0.0 }
  0xf9   : > { %v627_v55 = vmax.f32 %v598_v51, 0.0  ;;  %v773_v59 = vmax.f32 %v744_v53, 0.0 }
  0xfa   : > { %v1096_v52 = vmax.f32 %v934_v49, %v1080_v50 }
  0xfb   : > { %v789_v5 = vmax.f32 %v627_v55, %v773_v59 }
  0xfc   : > { %v1112_v54 = vmax.f32 %v788_v48, %v1096_v52 }
  0xfd   : > { %v905_v56 = vpop.f32.mrf.mxu2  ;;  %v1051_v57 = vpop.f32.mrf.mxu3 }
  0xfe   : > { %v1128_v58 = vpack.c.bf16 %v1112_v54, %v1112_v54  ;;  %v906_v60 = vadd.f32 %v1730_v2, %v905_v56  ;;  %v1052_v61 = vadd.f32 %v1730_v2, %v1051_v57  ;;  %v600_v62 = vpop.f32.mrf.mxu0  ;;  %v746_v63 = vpop.f32.mrf.mxu1 }
  0xff   : > { %v601_v3 = vadd.f32 %v1730_v2, %v600_v62  ;;  %v747_v4 = vadd.f32 %v1730_v2, %v746_v63 }
 0x100   : > { %1145 = vst.msk [vmem:[%s1743_s14 + $0x18] sm:$0xf] %vm1138_vm1, %v1128_v58  ;;  %v935_v0 = vmax.f32 %v906_v60, 0.0  ;;  %v1081_v1 = vmax.f32 %v1052_v61, 0.0 }
 0x101   : > { %v628_v8 = vmax.f32 %v601_v3, 0.0  ;;  %v774_v9 = vmax.f32 %v747_v4, 0.0 }
 0x102   : > { %v1097_v6 = vmax.f32 %v935_v0, %v1081_v1 }
 0x103   : > { %v790_v17 = vmax.f32 %v628_v8, %v774_v9 }
 0x104   : > { %v1113_v7 = vmax.f32 %v789_v5, %v1097_v6 }
 0x105   : > { %v908_v10 = vpop.f32.mrf.mxu2  ;;  %v1054_v11 = vpop.f32.mrf.mxu3 }
 0x106   : > { %v1129_v12 = vpack.c.bf16 %v1113_v7, %v1113_v7  ;;  %v909_v13 = vadd.f32 %v1730_v2, %v908_v10  ;;  %v1055_v14 = vadd.f32 %v1730_v2, %v1054_v11  ;;  %v602_v15 = vpop.f32.mrf.mxu0  ;;  %v748_v16 = vpop.f32.mrf.mxu1 }
 0x107   : > { %v603_v20 = vadd.f32 %v1730_v2, %v602_v15  ;;  %v749_v22 = vadd.f32 %v1730_v2, %v748_v16 }
 0x108   : > { %1146 = vst.msk [vmem:[%s1743_s14 + $0x1c] sm:$0xf] %vm1138_vm1, %v1129_v12  ;;  %v936_v18 = vmax.f32 %v909_v13, 0.0  ;;  %v1082_v19 = vmax.f32 %v1055_v14, 0.0 }
 0x109   : > { %v629_v24 = vmax.f32 %v603_v20, 0.0  ;;  %v775_v28 = vmax.f32 %v749_v22, 0.0 }
 0x10a   : > { %v1098_v21 = vmax.f32 %v936_v18, %v1082_v19 }
 0x10b   : > { %v791_v37 = vmax.f32 %v629_v24, %v775_v28 }
 0x10c   : > { %v1114_v23 = vmax.f32 %v790_v17, %v1098_v21 }
 0x10d   : > { %v910_v25 = vpop.f32.mrf.mxu2  ;;  %v1056_v26 = vpop.f32.mrf.mxu3 }
 0x10e   : > { %v1130_v27 = vpack.c.bf16 %v1114_v23, %v1114_v23  ;;  %v911_v29 = vadd.f32 %v1730_v2, %v910_v25  ;;  %v1057_v30 = vadd.f32 %v1730_v2, %v1056_v26  ;;  %v605_v31 = vpop.f32.mrf.mxu0  ;;  %v751_v32 = vpop.f32.mrf.mxu1 }
 0x10f   : > { %v606_v35 = vadd.f32 %v1730_v2, %v605_v31  ;;  %v752_v36 = vadd.f32 %v1730_v2, %v751_v32 }
 0x110   : > { %1147 = vst.msk [vmem:[%s1743_s14 + $0x20] sm:$0xf] %vm1138_vm1, %v1130_v27  ;;  %v937_v33 = vmax.f32 %v911_v29, 0.0  ;;  %v1083_v34 = vmax.f32 %v1057_v30, 0.0 }
 0x111   : > { %v630_v40 = vmax.f32 %v606_v35, 0.0  ;;  %v776_v41 = vmax.f32 %v752_v36, 0.0 }
 0x112   : > { %v1099_v38 = vmax.f32 %v937_v33, %v1083_v34 }
 0x113   : > { %v792_v49 = vmax.f32 %v630_v40, %v776_v41 }
 0x114   : > { %v1115_v39 = vmax.f32 %v791_v37, %v1099_v38 }
 0x115   : > { %v913_v42 = vpop.f32.mrf.mxu2  ;;  %v1059_v43 = vpop.f32.mrf.mxu3 }
 0x116   : > { %v1131_v44 = vpack.c.bf16 %v1115_v39, %v1115_v39  ;;  %v914_v45 = vadd.f32 %v1730_v2, %v913_v42  ;;  %v1060_v46 = vadd.f32 %v1730_v2, %v1059_v43  ;;  %v607_v47 = vpop.f32.mrf.mxu0  ;;  %v753_v48 = vpop.f32.mrf.mxu1 }
 0x117   : > { %v608_v52 = vadd.f32 %v1730_v2, %v607_v47  ;;  %v754_v54 = vadd.f32 %v1730_v2, %v753_v48 }
 0x118   : > { %1148 = vst.msk [vmem:[%s1743_s14 + $0x24] sm:$0xf] %vm1138_vm1, %v1131_v44  ;;  %v938_v50 = vmax.f32 %v914_v45, 0.0  ;;  %v1084_v51 = vmax.f32 %v1060_v46, 0.0 }
 0x119   : > { %v631_v56 = vmax.f32 %v608_v52, 0.0  ;;  %v777_v60 = vmax.f32 %v754_v54, 0.0 }
 0x11a   : > { %v1100_v53 = vmax.f32 %v938_v50, %v1084_v51 }
 0x11b   : > { %v793_v6 = vmax.f32 %v631_v56, %v777_v60 }
 0x11c   : > { %v1116_v55 = vmax.f32 %v792_v49, %v1100_v53 }
 0x11d   : > { %v915_v57 = vpop.f32.mrf.mxu2  ;;  %v1061_v58 = vpop.f32.mrf.mxu3 }
 0x11e   : > { %v1132_v59 = vpack.c.bf16 %v1116_v55, %v1116_v55  ;;  %v916_v61 = vadd.f32 %v1730_v2, %v915_v57  ;;  %v1062_v62 = vadd.f32 %v1730_v2, %v1061_v58  ;;  %v610_v63 = vpop.f32.mrf.mxu0  ;;  %v756_v0 = vpop.f32.mrf.mxu1 }
 0x11f   : > { %v611_v4 = vadd.f32 %v1730_v2, %v610_v63  ;;  %v757_v5 = vadd.f32 %v1730_v2, %v756_v0 }
 0x120   : > { %1149 = vst.msk [vmem:[%s1743_s14 + $0x28] sm:$0xf] %vm1138_vm1, %v1132_v59  ;;  %v939_v1 = vmax.f32 %v916_v61, 0.0  ;;  %v1085_v3 = vmax.f32 %v1062_v62, 0.0 }
 0x121   : > { %v632_v9 = vmax.f32 %v611_v4, 0.0  ;;  %v778_v10 = vmax.f32 %v757_v5, 0.0 }
 0x122   : > { %v1101_v7 = vmax.f32 %v939_v1, %v1085_v3 }
 0x123   : > { %v794_v18 = vmax.f32 %v632_v9, %v778_v10 }
 0x124   : > { %v1117_v8 = vmax.f32 %v793_v6, %v1101_v7 }
 0x125   : > { %v918_v11 = vpop.f32.mrf.mxu2  ;;  %v1064_v12 = vpop.f32.mrf.mxu3 }
 0x126   : > { %v1133_v13 = vpack.c.bf16 %v1117_v8, %v1117_v8  ;;  %v919_v14 = vadd.f32 %v1730_v2, %v918_v11  ;;  %v1065_v15 = vadd.f32 %v1730_v2, %v1064_v12  ;;  %v612_v16 = vpop.f32.mrf.mxu0  ;;  %v758_v17 = vpop.f32.mrf.mxu1 }
 0x127   : > { %v613_v21 = vadd.f32 %v1730_v2, %v612_v16  ;;  %v759_v23 = vadd.f32 %v1730_v2, %v758_v17 }
 0x128   : > { %1150 = vst.msk [vmem:[%s1743_s14 + $0x2c] sm:$0xf] %vm1138_vm1, %v1133_v13  ;;  %v940_v19 = vmax.f32 %v919_v14, 0.0  ;;  %v1086_v20 = vmax.f32 %v1065_v15, 0.0 }
 0x129   : > { %v633_v25 = vmax.f32 %v613_v21, 0.0  ;;  %v779_v29 = vmax.f32 %v759_v23, 0.0 }
 0x12a   : > { %v1102_v22 = vmax.f32 %v940_v19, %v1086_v20 }
 0x12b   : > { %v795_v38 = vmax.f32 %v633_v25, %v779_v29 }
 0x12c   : > { %v1118_v24 = vmax.f32 %v794_v18, %v1102_v22 }
 0x12d   : > { %v920_v26 = vpop.f32.mrf.mxu2  ;;  %v1066_v27 = vpop.f32.mrf.mxu3 }
 0x12e   : > { %v1134_v28 = vpack.c.bf16 %v1118_v24, %v1118_v24  ;;  %v921_v30 = vadd.f32 %v1730_v2, %v920_v26  ;;  %v1067_v31 = vadd.f32 %v1730_v2, %v1066_v27  ;;  %v615_v32 = vpop.f32.mrf.mxu0  ;;  %v761_v33 = vpop.f32.mrf.mxu1 }
 0x12f   : > { %v616_v36 = vadd.f32 %v1730_v2, %v615_v32  ;;  %v762_v37 = vadd.f32 %v1730_v2, %v761_v33 }
 0x130   : > { %1151 = vst.msk [vmem:[%s1743_s14 + $0x30] sm:$0xf] %vm1138_vm1, %v1134_v28  ;;  %v941_v34 = vmax.f32 %v921_v30, 0.0  ;;  %v1087_v35 = vmax.f32 %v1067_v31, 0.0 }
 0x131   : > { %v634_v41 = vmax.f32 %v616_v36, 0.0  ;;  %v780_v42 = vmax.f32 %v762_v37, 0.0 }
 0x132   : > { %v1103_v39 = vmax.f32 %v941_v34, %v1087_v35 }
 0x133   : > { %v796_v50 = vmax.f32 %v634_v41, %v780_v42 }
 0x134   : > { %v1119_v40 = vmax.f32 %v795_v38, %v1103_v39 }
 0x135   : > { %v923_v43 = vpop.f32.mrf.mxu2  ;;  %v1069_v44 = vpop.f32.mrf.mxu3 }
 0x136   : > { %v1135_v45 = vpack.c.bf16 %v1119_v40, %v1119_v40  ;;  %v924_v46 = vadd.f32 %v1730_v2, %v923_v43  ;;  %v1070_v47 = vadd.f32 %v1730_v2, %v1069_v44  ;;  %v617_v48 = vpop.f32.mrf.mxu0  ;;  %v763_v49 = vpop.f32.mrf.mxu1 }
 0x137   : > { %v618_v53 = vadd.f32 %v1730_v2, %v617_v48  ;;  %v764_v55 = vadd.f32 %v1730_v2, %v763_v49 }
 0x138   : > { %1152 = vst.msk [vmem:[%s1743_s14 + $0x34] sm:$0xf] %vm1138_vm1, %v1135_v45  ;;  %v942_v51 = vmax.f32 %v924_v46, 0.0  ;;  %v1088_v52 = vmax.f32 %v1070_v47, 0.0 }
 0x139   : > { %v635_v57 = vmax.f32 %v618_v53, 0.0  ;;  %v781_v61 = vmax.f32 %v764_v55, 0.0 }
 0x13a   : > { %v1104_v54 = vmax.f32 %v942_v51, %v1088_v52 }
 0x13b   : > { %v797_v3 = vmax.f32 %v635_v57, %v781_v61 }
 0x13c   : > { %v1120_v56 = vmax.f32 %v796_v50, %v1104_v54 }
 0x13d   : > { %v925_v58 = vpop.f32.mrf.mxu2  ;;  %v1071_v59 = vpop.f32.mrf.mxu3 }
 0x13e   : > { %v1136_v60 = vpack.c.bf16 %v1120_v56, %v1120_v56  ;;  %v926_v62 = vadd.f32 %v1730_v2, %v925_v58  ;;  %v1072_v63 = vadd.f32 %v1730_v2, %v1071_v59 }
 0x140   : > { %1153 = vst.msk [vmem:[%s1743_s14 + $0x38] sm:$0xf] %vm1138_vm1, %v1136_v60  ;;  %v943_v0 = vmax.f32 %v926_v62, 0.0  ;;  %v1089_v1 = vmax.f32 %v1072_v63, 0.0 }
 0x142   : > { %v1105_v4 = vmax.f32 %v943_v0, %v1089_v1 }
 0x144   : > { %v1121_v5 = vmax.f32 %v797_v3, %v1105_v4 }
 0x146   : > { %v1137_v6 = vpack.c.bf16 %v1121_v5, %v1121_v5 }
 0x148   : > { %1154 = vst.msk [vmem:[%s1743_s14 + $0x3c] sm:$0xf] %vm1138_vm1, %v1137_v6 }
 0x149 PF: > { %p10_p9 = scmp.ge.s32.totalorder %s1567_s16, 6   ;;  %s1849_s12 = smov %s1524_s13 }
 0x14a   : > { %s1850_s13 = smov %s1576_s19  ;;  %s1851_s14 = smov %s1567_s16 }
 0x14b   :  { %12 = sbr.rel (!%p10_p9) target bundleno = 2 (0x2), region = 111 }

// kernel: net_forward.5
= control target key start
LH: loop header
LB: loop body
LE: loop exit
PB: predicated region body
PF: predicated region fallthrough
CT: control target
= control target key end

     0   :  { %s2683_s18 = smov 0   ;;  %s2685_s19 = smov 0   ;;  %s3280_s0 = inlined_call_operand.vmem [shape: bf16[8,3200], index: 0, kind: input, shape index: {}]   ;;  %s3281_s1 = inlined_call_operand.vmem [shape: bf16[3200,512], index: 1, kind: input, shape index: {}]   ;;  %s3282_s2 = inlined_call_operand.vmem [shape: f32[1,512], index: 2, kind: input, shape index: {}]   ;;  %s3283_s3 = inlined_call_operand.vmem [shape: f32[512,128], index: 3, kind: input, shape index: {}]   ;;  %s3284_s4 = inlined_call_operand.vmem [shape: f32[1,128], index: 4, kind: input, shape index: {}]   ;;  %s3285_s5 = inlined_call_operand.vmem [shape: f32[8,128], index: 5, kind: output, shape index: {}]  }
   0x1   :  { %s2687_s20 = smov 0  }
   0x2 LB: > { %s24_s21 = sadd.s32 1, %s2646_s19  ;;  %p1792_p0 = scmp.ge.s32.totalorder %s2650_s20, 1  ;;  %s2650_s20 = sphi %s2687_s20, %s15_s20   ;;  %s2646_s19 = sphi %s2685_s19, %s3287_s19   ;;  %s2642_s18 = sphi %s2683_s18, %s3286_s18  }
   0x3   : > { %p25_p1 = scmp.ge.s32.totalorder %s24_s21, 5  ;;  %p218_p2 = scmp.lt.s32.totalorder %s2650_s20, 6 }
   0x5   : > { %s3289_s21 = smov (%p25_p1, %s24_s21), 0  ;;  %p219_p3 = pnand %p1792_p0, %p218_p2 }
   0x6   : > { %s255_s22 = smul.u32 (!%p219_p3), 5, %s2642_s18  ;;  %p1796_p6 = scmp.ne.s32.totalorder (!%p219_p3), %s2642_s18, 0 }
   0x7   : > { %222 = sbr.rel (%p219_p3) target bundleno = 500 (0x1f4), region = 40 }
   0x8   : > { %s265_s23 = smul.u32 (!%p219_p3), 80, %s2642_s18  ;;  %p258_p4 = scmp.lt.s32.totalorder (!%p219_p3), %s255_s22, 24 }
   0xa   : > { %p266_p5 = scmp.lt.s32.totalorder (!%p219_p3), %s265_s23, 399 }
   0xc   : > { %s3291_s22 = smov (!%p258_p4, %s255_s22), 24  ;;  %s3293_s23 = smov (!%p266_p5, %s265_s23), 399 }
   0xd   : > { %s1793_s24 = sshll.u32 %s3291_s22, 2  ;;  %s2441_s28 = sshll.u32 %s3293_s23, 4 }
   0xe   : > { %s2708_s27 = scalar_lea.vmem %s3280_s0, %s1793_s24  ;;  %s2713_s6 = scalar_lea.vmem %s3281_s1, %s2441_s28 }
   0xf   : > { %279 = sbr.rel (%p1796_p6) target bundleno = 25 (0x19), region = 44 }
  0x14   : > { %v2652_v0 = vmov 0.0  }
  0x15   : > { %280 = vst [vmem:[#allocation2 + $0x10] sm:$0xff] %v2652_v0 }
  0x16   : > { %281 = vst [vmem:[#allocation2] sm:$0xff] %v2652_v0 }
  0x17   : > { %282 = vst [vmem:[#allocation2 + $0x18] sm:$0xff] %v2652_v0 }
  0x18   : > { %283 = vst [vmem:[#allocation2 + $0x8] sm:$0xff] %v2652_v0 }
  0x19 PF: > { %v1911_v1 = vld [vmem:[%s2713_s6 + $0xe0] sm:$0xf]  ;;  %v2472_v2 = vld [vmem:[%s2713_s6 + $0xec] sm:$0xf0]  ;;  %p2437_p7 = scmp.ne.s32.totalorder %s2642_s18, 4 }
  0x1a   : > { %v2039_v3 = vld [vmem:[%s2713_s6 + $0x1e0] sm:$0xf]  ;;  %v1912_v4 = vor.u32 %v2472_v2, %v1911_v1  ;;  %v2504_v5 = vld [vmem:[%s2713_s6 + $0x1ec] sm:$0xf0] }
  0x1b   : > { %v2167_v6 = vld [vmem:[%s2713_s6 + $0x2e0] sm:$0xf]  ;;  %v2536_v7 = vld [vmem:[%s2713_s6 + $0x2ec] sm:$0xf0]  ;;  %v2040_v8 = vor.u32 %v2504_v5, %v2039_v3 }
  0x1c   : > { %v2168_v9 = vor.u32 %v2536_v7, %v2167_v6  ;;  %v2295_v10 = vld [vmem:[%s2713_s6 + $0x3e0] sm:$0xf]  ;;  %v2568_v11 = vld [vmem:[%s2713_s6 + $0x3ec] sm:$0xf0]  ;;  %1269 = vmatpush.bf16.msra.mxu0 %v1912_v4 }
  0x1d   : > { %v1895_v12 = vld [vmem:[%s2713_s6 + $0xc0] sm:$0xf]  ;;  %v2296_v13 = vor.u32 %v2568_v11, %v2295_v10  ;;  %v2468_v14 = vld [vmem:[%s2713_s6 + $0xcc] sm:$0xf0]  ;;  %1282 = vmatpush.bf16.msra.mxu1 %v2040_v8 }
  0x1e   : > { %v2023_v15 = vld [vmem:[%s2713_s6 + $0x1c0] sm:$0xf]  ;;  %v2500_v16 = vld [vmem:[%s2713_s6 + $0x1cc] sm:$0xf0]  ;;  %1295 = vmatpush.bf16.msra.mxu2 %v2168_v9  ;;  %v1896_v17 = vor.u32 %v2468_v14, %v1895_v12 }
  0x1f   : > { %v2024_v18 = vor.u32 %v2500_v16, %v2023_v15  ;;  %v2151_v19 = vld [vmem:[%s2713_s6 + $0x2c0] sm:$0xf]  ;;  %v2532_v20 = vld [vmem:[%s2713_s6 + $0x2cc] sm:$0xf0]  ;;  %1308 = vmatpush.bf16.msra.mxu3 %v2296_v13 }
  0x20   : > { %v2279_v21 = vld [vmem:[%s2713_s6 + $0x3c0] sm:$0xf]  ;;  %v2152_v22 = vor.u32 %v2532_v20, %v2151_v19  ;;  %v2564_v23 = vld [vmem:[%s2713_s6 + $0x3cc] sm:$0xf0]  ;;  %1270 = vmatpush.bf16.msra.mxu0 %v1896_v17 }
  0x21   : > { %v1879_v24 = vld [vmem:[%s2713_s6 + $0xa0] sm:$0xf]  ;;  %v2464_v25 = vld [vmem:[%s2713_s6 + $0xac] sm:$0xf0]  ;;  %v2280_v26 = vor.u32 %v2564_v23, %v2279_v21  ;;  %1283 = vmatpush.bf16.msra.mxu1 %v2024_v18 }
  0x22   : > { %v2007_v27 = vld [vmem:[%s2713_s6 + $0x1a0] sm:$0xf]  ;;  %v2496_v28 = vld [vmem:[%s2713_s6 + $0x1ac] sm:$0xf0]  ;;  %v1880_v30 = vor.u32 %v2464_v25, %v1879_v24  ;;  %1296 = vmatpush.bf16.msra.mxu2 %v2152_v22 }
  0x23   : > { %v2135_v29 = vld [vmem:[%s2713_s6 + $0x2a0] sm:$0xf]  ;;  %v2528_v31 = vld [vmem:[%s2713_s6 + $0x2ac] sm:$0xf0]  ;;  %v2008_v34 = vor.u32 %v2496_v28, %v2007_v27  ;;  %1309 = vmatpush.bf16.msra.mxu3 %v2280_v26 }
  0x24   : > { %v2263_v32 = vld [vmem:[%s2713_s6 + $0x3a0] sm:$0xf]  ;;  %v2560_v33 = vld [vmem:[%s2713_s6 + $0x3ac] sm:$0xf0]  ;;  %v2136_v35 = vor.u32 %v2528_v31, %v2135_v29  ;;  %1271 = vmatpush.bf16.msra.mxu0 %v1880_v30  ;;  %v2470_v31 = vld [vmem:[%s2713_s6 + $0xe4] sm:$0xf] }
  0x25   : > { %v1863_v36 = vld [vmem:[%s2713_s6 + $0x80] sm:$0xf]  ;;  %v2460_v37 = vld [vmem:[%s2713_s6 + $0x8c] sm:$0xf0]  ;;  %v2264_v39 = vor.u32 %v2560_v33, %v2263_v32  ;;  %1284 = vmatpush.bf16.msra.mxu1 %v2008_v34  ;;  %v1913_v33 = vld [vmem:[%s2713_s6 + $0xf0] sm:$0xf0] }
  0x26   : > { %v1991_v38 = vld [vmem:[%s2713_s6 + $0x180] sm:$0xf]  ;;  %v2492_v40 = vld [vmem:[%s2713_s6 + $0x18c] sm:$0xf0]  ;;  %v1864_v45 = vor.u32 %v2460_v37, %v1863_v36  ;;  %1297 = vmatpush.bf16.msra.mxu2 %v2136_v35  ;;  %v2502_v34 = vld [vmem:[%s2713_s6 + $0x1e4] sm:$0xf] }
  0x27   : > { %v2119_v41 = vld [vmem:[%s2713_s6 + $0x280] sm:$0xf]  ;;  %v2524_v42 = vld [vmem:[%s2713_s6 + $0x28c] sm:$0xf0]  ;;  %v1992_v46 = vor.u32 %v2492_v40, %v1991_v38  ;;  %1310 = vmatpush.bf16.msra.mxu3 %v2264_v39  ;;  %v2041_v35 = vld [vmem:[%s2713_s6 + $0x1f0] sm:$0xf0] }
  0x28   : > { %v2247_v43 = vld [vmem:[%s2713_s6 + $0x380] sm:$0xf]  ;;  %v2556_v44 = vld [vmem:[%s2713_s6 + $0x38c] sm:$0xf0]  ;;  %v2120_v47 = vor.u32 %v2524_v42, %v2119_v41  ;;  %1272 = vmatpush.bf16.msra.mxu0 %v1864_v45  ;;  %v2534_v38 = vld [vmem:[%s2713_s6 + $0x2e4] sm:$0xf]  ;;  %v1916_v42 = vor.u32 %v2470_v31, %v1913_v33 }
  0x29   : > { %v1847_v48 = vld [vmem:[%s2713_s6 + $0x60] sm:$0xf]  ;;  %v2456_v49 = vld [vmem:[%s2713_s6 + $0x6c] sm:$0xf0]  ;;  %v2248_v51 = vor.u32 %v2556_v44, %v2247_v43  ;;  %1285 = vmatpush.bf16.msra.mxu1 %v1992_v46  ;;  %v2169_v39 = vld [vmem:[%s2713_s6 + $0x2f0] sm:$0xf0]  ;;  %v2044_v43 = vor.u32 %v2502_v34, %v2041_v35 }
  0x2a   : > { %v1975_v50 = vld [vmem:[%s2713_s6 + $0x160] sm:$0xf]  ;;  %v2488_v52 = vld [vmem:[%s2713_s6 + $0x16c] sm:$0xf0]  ;;  %v1848_v57 = vor.u32 %v2456_v49, %v1847_v48  ;;  %1298 = vmatpush.bf16.msra.mxu2 %v2120_v47  ;;  %v2466_v46 = vld [vmem:[%s2713_s6 + $0xc4] sm:$0xf]  ;;  %v2172_v47 = vor.u32 %v2534_v38, %v2169_v39 }
  0x2b   : > { %v2103_v53 = vld [vmem:[%s2713_s6 + $0x260] sm:$0xf]  ;;  %v2520_v54 = vld [vmem:[%s2713_s6 + $0x26c] sm:$0xf0]  ;;  %v1976_v58 = vor.u32 %v2488_v52, %v1975_v50  ;;  %1311 = vmatpush.bf16.msra.mxu3 %v2248_v51  ;;  %v1897_v48 = vld [vmem:[%s2713_s6 + $0xd0] sm:$0xf0] }
  0x2c   : > { %v2231_v55 = vld [vmem:[%s2713_s6 + $0x360] sm:$0xf]  ;;  %v2552_v56 = vld [vmem:[%s2713_s6 + $0x36c] sm:$0xf0]  ;;  %v2104_v59 = vor.u32 %v2520_v54, %v2103_v53  ;;  %1273 = vmatpush.bf16.msra.mxu0 %v1848_v57  ;;  %v2498_v49 = vld [vmem:[%s2713_s6 + $0x1c4] sm:$0xf] }
  0x2d   : > { %v1831_v60 = vld [vmem:[%s2713_s6 + $0x40] sm:$0xf]  ;;  %v2452_v61 = vld [vmem:[%s2713_s6 + $0x4c] sm:$0xf0]  ;;  %v2232_v63 = vor.u32 %v2552_v56, %v2231_v55  ;;  %1286 = vmatpush.bf16.msra.mxu1 %v1976_v58  ;;  %v2025_v50 = vld [vmem:[%s2713_s6 + $0x1d0] sm:$0xf0]  ;;  %v1900_v55 = vor.u32 %v2466_v46, %v1897_v48 }
  0x2e   : > { %v1959_v62 = vld [vmem:[%s2713_s6 + $0x140] sm:$0xf]  ;;  %v2484_v0 = vld [vmem:[%s2713_s6 + $0x14c] sm:$0xf0]  ;;  %v1832_v5 = vor.u32 %v2452_v61, %v1831_v60  ;;  %1299 = vmatpush.bf16.msra.mxu2 %v2104_v59  ;;  %v2530_v51 = vld [vmem:[%s2713_s6 + $0x2c4] sm:$0xf]  ;;  %v2028_v56 = vor.u32 %v2498_v49, %v2025_v50 }
  0x2f   : > { %v2087_v1 = vld [vmem:[%s2713_s6 + $0x240] sm:$0xf]  ;;  %v2516_v2 = vld [vmem:[%s2713_s6 + $0x24c] sm:$0xf0]  ;;  %v1960_v6 = vor.u32 %v2484_v0, %v1959_v62  ;;  %1312 = vmatpush.bf16.msra.mxu3 %v2232_v63  ;;  %v2153_v52 = vld [vmem:[%s2713_s6 + $0x2d0] sm:$0xf0] }
  0x30   : > { %v2215_v3 = vld [vmem:[%s2713_s6 + $0x340] sm:$0xf]  ;;  %v2548_v4 = vld [vmem:[%s2713_s6 + $0x34c] sm:$0xf0]  ;;  %v2088_v7 = vor.u32 %v2516_v2, %v2087_v1  ;;  %1274 = vmatpush.bf16.msra.mxu0 %v1832_v5  ;;  %v2462_v58 = vld [vmem:[%s2713_s6 + $0xa4] sm:$0xf]  ;;  %v2156_v60 = vor.u32 %v2530_v51, %v2153_v52 }
  0x31   : > { %v1815_v8 = vld [vmem:[%s2713_s6 + $0x20] sm:$0xf]  ;;  %v2448_v9 = vld [vmem:[%s2713_s6 + $0x2c] sm:$0xf0]  ;;  %v2216_v11 = vor.u32 %v2548_v4, %v2215_v3  ;;  %1287 = vmatpush.bf16.msra.mxu1 %v1960_v6  ;;  %v1881_v59 = vld [vmem:[%s2713_s6 + $0xb0] sm:$0xf0] }
  0x32   : > { %v1943_v10 = vld [vmem:[%s2713_s6 + $0x120] sm:$0xf]  ;;  %v2480_v12 = vld [vmem:[%s2713_s6 + $0x12c] sm:$0xf0]  ;;  %v1816_v17 = vor.u32 %v2448_v9, %v1815_v8  ;;  %1300 = vmatpush.bf16.msra.mxu2 %v2088_v7  ;;  %v2494_v61 = vld [vmem:[%s2713_s6 + $0x1a4] sm:$0xf]  ;;  %v1884_v2 = vor.u32 %v2462_v58, %v1881_v59 }
  0x33   : > { %v2071_v13 = vld [vmem:[%s2713_s6 + $0x220] sm:$0xf]  ;;  %v2512_v14 = vld [vmem:[%s2713_s6 + $0x22c] sm:$0xf0]  ;;  %v1944_v20 = vor.u32 %v2480_v12, %v1943_v10  ;;  %1313 = vmatpush.bf16.msra.mxu3 %v2216_v11  ;;  %v2009_v62 = vld [vmem:[%s2713_s6 + $0x1b0] sm:$0xf0] }
  0x34   : > { %v2199_v15 = vld [vmem:[%s2713_s6 + $0x320] sm:$0xf]  ;;  %v2544_v16 = vld [vmem:[%s2713_s6 + $0x32c] sm:$0xf0]  ;;  %v2072_v21 = vor.u32 %v2512_v14, %v2071_v13  ;;  %1275 = vmatpush.bf16.msra.mxu0 %v1816_v17  ;;  %v2526_v63 = vld [vmem:[%s2713_s6 + $0x2a4] sm:$0xf]  ;;  %v2012_v5 = vor.u32 %v2494_v61, %v2009_v62 }
  0x35   : > { %v1799_v18 = vld [vmem:[%s2713_s6] sm:$0xf]  ;;  %v2444_v19 = vld [vmem:[%s2713_s6 + $0xc] sm:$0xf0]  ;;  %v2200_v25 = vor.u32 %v2544_v16, %v2199_v15  ;;  %1288 = vmatpush.bf16.msra.mxu1 %v1944_v20  ;;  %v2137_v0 = vld [vmem:[%s2713_s6 + $0x2b0] sm:$0xf0] }
  0x36   : > { %v1927_v22 = vld [vmem:[%s2713_s6 + $0x100] sm:$0xf]  ;;  %v2476_v23 = vld [vmem:[%s2713_s6 + $0x10c] sm:$0xf0]  ;;  %v1800_v32 = vor.u32 %v2444_v19, %v1799_v18  ;;  %1301 = vmatpush.bf16.msra.mxu2 %v2072_v21  ;;  %v289_v4 = vld [vmem:[%s2708_s27 + $0x8] sm:$0xff]  ;;  %v2140_v12 = vor.u32 %v2526_v63, %v2137_v0 }
  0x37   : > { %v2055_v24 = vld [vmem:[%s2713_s6 + $0x200] sm:$0xf]  ;;  %v2508_v26 = vld [vmem:[%s2713_s6 + $0x20c] sm:$0xf0]  ;;  %v1928_v36 = vor.u32 %v2476_v23, %v1927_v22  ;;  %1314 = vmatpush.bf16.msra.mxu3 %v2200_v25  ;;  %v2458_v8 = vld [vmem:[%s2713_s6 + $0x84] sm:$0xf]  ;;  %v456_v10 = vunpack.c.l.b16 %v289_v4  ;;  %v457_v11 = vunpack.c.h.b16 %v289_v4 }
  0x38   : > { %v2183_v27 = vld [vmem:[%s2713_s6 + $0x300] sm:$0xf]  ;;  %v2540_v28 = vld [vmem:[%s2713_s6 + $0x30c] sm:$0xf0]  ;;  %v2056_v37 = vor.u32 %v2508_v26, %v2055_v24  ;;  %1276 = vmatpush.bf16.msra.mxu0 %v1800_v32  ;;  %v1865_v13 = vld [vmem:[%s2713_s6 + $0x90] sm:$0xf0] }
  0x39   : > { %v2423_v29 = vld [vmem:[%s2713_s6 + $0x4e0] sm:$0xf]  ;;  %v2600_v30 = vld [vmem:[%s2713_s6 + $0x4ec] sm:$0xf0]  ;;  %v2184_v40 = vor.u32 %v2540_v28, %v2183_v27  ;;  %1289 = vmatpush.bf16.msra.mxu1 %v1928_v36  ;;  %v2490_v14 = vld [vmem:[%s2713_s6 + $0x184] sm:$0xf]  ;;  %v2816_v20 = vpack.c.b16 %v456_v10, %v456_v10  ;;  %v2818_v21 = vpack.c.b16 %v457_v11, %v457_v11  ;;  %v1868_v24 = vor.u32 %v2458_v8, %v1865_v13 }
  0x3a   : > { %v2424_v41 = vor.u32 %v2600_v30, %v2423_v29  ;;  %v2407_v44 = vld [vmem:[%s2713_s6 + $0x4c0] sm:$0xf]  ;;  %v2596_v45 = vld [vmem:[%s2713_s6 + $0x4cc] sm:$0xf0]  ;;  %1302 = vmatpush.bf16.msra.mxu2 %v2056_v37  ;;  %v1993_v15 = vld [vmem:[%s2713_s6 + $0x190] sm:$0xf0] }
  0x3b   : > { %1315 = vmatpush.bf16.msra.mxu3 %v2184_v40  ;;  %v2408_v53 = vor.u32 %v2596_v45, %v2407_v44  ;;  %v2391_v54 = vld [vmem:[%s2713_s6 + $0x4a0] sm:$0xf]  ;;  %v2592_v57 = vld [vmem:[%s2713_s6 + $0x4ac] sm:$0xf0]  ;;  %v2522_v17 = vld [vmem:[%s2713_s6 + $0x284] sm:$0xf]  ;;  %v1996_v25 = vor.u32 %v2490_v14, %v1993_v15 }
  0x3c   : > { %1321 = vmatpush.bf16.msrb.mxu0 %v2424_v41  ;;  %v2392_v1 = vor.u32 %v2592_v57, %v2391_v54  ;;  %v288_v3 = vld [vmem:[%s2708_s27] sm:$0xff]  ;;  %v2588_v7 = vld [vmem:[%s2713_s6 + $0x48c] sm:$0xf0]  ;;  %v2121_v18 = vld [vmem:[%s2713_s6 + $0x290] sm:$0xf0] }
  0x3d   : > { %1334 = vmatpush.bf16.msrb.mxu1 %v1916_v42  ;;  %v2375_v6 = vld [vmem:[%s2713_s6 + $0x480] sm:$0xf]  ;;  %v454_v9 = vunpack.c.l.b16 %v288_v3  ;;  %v455_v16 = vunpack.c.h.b16 %v288_v3  ;;  %v2584_v27 = vld [vmem:[%s2713_s6 + $0x46c] sm:$0xf0]  ;;  %v2454_v28 = vld [vmem:[%s2713_s6 + $0x64] sm:$0xf]  ;;  %v2124_v29 = vor.u32 %v2522_v17, %v2121_v18  ;;  %1303 = vmatmul.bf16.vlgmr.msra.gmra.mxu2 %v2816_v20 }
  0x3e   : > { %1347 = vmatpush.bf16.msrb.mxu2 %v2044_v43  ;;  %v2376_v22 = vor.u32 %v2588_v7, %v2375_v6  ;;  %v2359_v26 = vld [vmem:[%s2713_s6 + $0x460] sm:$0xf]  ;;  %v1849_v30 = vld [vmem:[%s2713_s6 + $0x70] sm:$0xf0]  ;;  %v2486_v31 = vld [vmem:[%s2713_s6 + $0x164] sm:$0xf]  ;;  %1316 = vmatmul.bf16.vlgmr.msra.gmra.mxu3 %v2818_v21 }
  0x3f   : > { %1360 = vmatpush.bf16.msrb.mxu3 %v2172_v47  ;;  %v2814_v19 = vpack.c.b16 %v454_v9, %v454_v9  ;;  %v2820_v23 = vpack.c.b16 %v455_v16, %v455_v16  ;;  %v1977_v32 = vld [vmem:[%s2713_s6 + $0x170] sm:$0xf0]  ;;  %v2518_v33 = vld [vmem:[%s2713_s6 + $0x264] sm:$0xf]  ;;  %v2360_v35 = vor.u32 %v2584_v27, %v2359_v26  ;;  %v1852_v36 = vor.u32 %v2454_v28, %v1849_v30  ;;  %v2343_v38 = vld [vmem:[%s2713_s6 + $0x440] sm:$0xf] }
  0x40   : > { %1322 = vmatpush.bf16.msrb.mxu0 %v2408_v53  ;;  %v2105_v34 = vld [vmem:[%s2713_s6 + $0x270] sm:$0xf0]  ;;  %v1980_v37 = vor.u32 %v2486_v31, %v1977_v32  ;;  %v2580_v39 = vld [vmem:[%s2713_s6 + $0x44c] sm:$0xf0]  ;;  %v2450_v40 = vld [vmem:[%s2713_s6 + $0x44] sm:$0xf] }
  0x41   : > { %1335 = vmatpush.bf16.msrb.mxu1 %v1900_v55  ;;  %1277 = vmatmul.bf16.vlgmr.msra.gmra.mxu0 %v2814_v19  ;;  %v2108_v41 = vor.u32 %v2518_v33, %v2105_v34  ;;  %v1833_v42 = vld [vmem:[%s2713_s6 + $0x50] sm:$0xf0]  ;;  %v2482_v43 = vld [vmem:[%s2713_s6 + $0x144] sm:$0xf]  ;;  %v2344_v47 = vor.u32 %v2580_v39, %v2343_v38  ;;  %v2327_v50 = vld [vmem:[%s2713_s6 + $0x420] sm:$0xf] }
  0x42   : > { %1348 = vmatpush.bf16.msrb.mxu2 %v2028_v56  ;;  %1290 = vmatmul.bf16.vlgmr.msra.gmra.mxu1 %v2820_v23  ;;  %v1961_v44 = vld [vmem:[%s2713_s6 + $0x150] sm:$0xf0]  ;;  %v2514_v45 = vld [vmem:[%s2713_s6 + $0x244] sm:$0xf]  ;;  %v1836_v48 = vor.u32 %v2450_v40, %v1833_v42  ;;  %v2576_v51 = vld [vmem:[%s2713_s6 + $0x42c] sm:$0xf0] }
  0x43   : > { %1361 = vmatpush.bf16.msrb.mxu3 %v2156_v60  ;;  %v2089_v46 = vld [vmem:[%s2713_s6 + $0x250] sm:$0xf0]  ;;  %v1964_v49 = vor.u32 %v2482_v43, %v1961_v44  ;;  %v2446_v52 = vld [vmem:[%s2713_s6 + $0x24] sm:$0xf]  ;;  %v2328_v59 = vor.u32 %v2576_v51, %v2327_v50  ;;  %v2311_v60 = vld [vmem:[%s2713_s6 + $0x400] sm:$0xf] }
  0x44   : > { %1323 = vmatpush.bf16.msrb.mxu0 %v2392_v1  ;;  %v2092_v53 = vor.u32 %v2514_v45, %v2089_v46  ;;  %v1817_v54 = vld [vmem:[%s2713_s6 + $0x30] sm:$0xf0]  ;;  %v2478_v55 = vld [vmem:[%s2713_s6 + $0x124] sm:$0xf]  ;;  %v2572_v61 = vld [vmem:[%s2713_s6 + $0x40c] sm:$0xf0] }
  0x45   : > { %1336 = vmatpush.bf16.msrb.mxu1 %v1884_v2  ;;  %v1945_v56 = vld [vmem:[%s2713_s6 + $0x130] sm:$0xf0]  ;;  %v2510_v57 = vld [vmem:[%s2713_s6 + $0x224] sm:$0xf]  ;;  %v1820_v63 = vor.u32 %v2446_v52, %v1817_v54  ;;  %v290_v3 = vld [vmem:[%s2708_s27 + $0x10] sm:$0xf]  ;;  %v2312_v11 = vor.u32 %v2572_v61, %v2311_v60 }
  0x46   : > { %1349 = vmatpush.bf16.msrb.mxu2 %v2012_v5  ;;  %v2073_v58 = vld [vmem:[%s2713_s6 + $0x230] sm:$0xf0]  ;;  %v2442_v62 = vld [vmem:[%s2713_s6 + $0x4] sm:$0xf]  ;;  %v1948_v0 = vor.u32 %v2478_v55, %v1945_v56  ;;  %v1919_v13 = vld [vmem:[%s2713_s6 + $0xe8] sm:$0xf]  ;;  %v458_v15 = vunpack.c.l.b16 %v290_v3 }
  0x47   : > { %1362 = vmatpush.bf16.msrb.mxu3 %v2140_v12  ;;  %v1801_v1 = vld [vmem:[%s2713_s6 + $0x10] sm:$0xf0]  ;;  %v2474_v2 = vld [vmem:[%s2713_s6 + $0x104] sm:$0xf]  ;;  %v2076_v4 = vor.u32 %v2510_v57, %v2073_v58  ;;  %v2473_v14 = vld [vmem:[%s2713_s6 + $0xf4] sm:$0xf0] }
  0x48   : > { %1324 = vmatpush.bf16.msrb.mxu0 %v2376_v22  ;;  %v1929_v5 = vld [vmem:[%s2713_s6 + $0x110] sm:$0xf0]  ;;  %v2506_v6 = vld [vmem:[%s2713_s6 + $0x204] sm:$0xf]  ;;  %v1804_v16 = vor.u32 %v2442_v62, %v1801_v1  ;;  %v2047_v18 = vld [vmem:[%s2713_s6 + $0x1e8] sm:$0xf]  ;;  %v1920_v27 = vor.u32 %v2473_v14, %v1919_v13 }
  0x49   : > { %1337 = vmatpush.bf16.msrb.mxu1 %v1868_v24  ;;  %v2057_v7 = vld [vmem:[%s2713_s6 + $0x210] sm:$0xf0]  ;;  %v2566_v8 = vld [vmem:[%s2713_s6 + $0x3e4] sm:$0xf]  ;;  %v1932_v17 = vor.u32 %v2474_v2, %v1929_v5  ;;  %v2505_v22 = vld [vmem:[%s2713_s6 + $0x1f4] sm:$0xf0] }
  0x4a   : > { %1350 = vmatpush.bf16.msrb.mxu2 %v1996_v25  ;;  %v2297_v9 = vld [vmem:[%s2713_s6 + $0x3f0] sm:$0xf0]  ;;  %v2598_v10 = vld [vmem:[%s2713_s6 + $0x4e4] sm:$0xf]  ;;  %v2060_v24 = vor.u32 %v2506_v6, %v2057_v7  ;;  %v2048_v31 = vor.u32 %v2505_v22, %v2047_v18  ;;  %v1903_v33 = vld [vmem:[%s2713_s6 + $0xc8] sm:$0xf] }
  0x4b   : > { %1363 = vmatpush.bf16.msrb.mxu3 %v2124_v29  ;;  %v2425_v12 = vld [vmem:[%s2713_s6 + $0x4f0] sm:$0xf0]  ;;  %v2300_v25 = vor.u32 %v2566_v8, %v2297_v9  ;;  %v2562_v28 = vld [vmem:[%s2713_s6 + $0x3c4] sm:$0xf]  ;;  %v2469_v34 = vld [vmem:[%s2713_s6 + $0xd4] sm:$0xf0] }
  0x4c   : > { %1325 = vmatpush.bf16.msrb.mxu0 %v2360_v35  ;;  %v2428_v26 = vor.u32 %v2598_v10, %v2425_v12  ;;  %v2281_v29 = vld [vmem:[%s2713_s6 + $0x3d0] sm:$0xf0]  ;;  %v2594_v30 = vld [vmem:[%s2713_s6 + $0x4c4] sm:$0xf]  ;;  %v2873_v35 = vpack.c.b16 %v458_v15, %v458_v15  ;;  %v1904_v40 = vor.u32 %v2469_v34, %v1903_v33  ;;  %v1887_v46 = vld [vmem:[%s2713_s6 + $0xa8] sm:$0xf] }
  0x4d   : > { %1338 = vmatpush.bf16.msrb.mxu1 %v1852_v36  ;;  %v2409_v32 = vld [vmem:[%s2713_s6 + $0x4d0] sm:$0xf0]  ;;  %v2031_v36 = vld [vmem:[%s2713_s6 + $0x1c8] sm:$0xf]  ;;  %v2284_v38 = vor.u32 %v2562_v28, %v2281_v29  ;;  %v2590_v43 = vld [vmem:[%s2713_s6 + $0x4a4] sm:$0xf] }
  0x4e   : > { %1351 = vmatpush.bf16.msrb.mxu2 %v1980_v37  ;;  %v2501_v37 = vld [vmem:[%s2713_s6 + $0x1d4] sm:$0xf0]  ;;  %v2412_v39 = vor.u32 %v2594_v30, %v2409_v32  ;;  %v2265_v42 = vld [vmem:[%s2713_s6 + $0x3b0] sm:$0xf0]  ;;  %v2586_v55 = vld [vmem:[%s2713_s6 + $0x484] sm:$0xf] }
  0x4f   : > { %1364 = vmatpush.bf16.msrb.mxu3 %v2108_v41  ;;  %v2558_v41 = vld [vmem:[%s2713_s6 + $0x3a4] sm:$0xf]  ;;  %v2032_v44 = vor.u32 %v2501_v37, %v2031_v36  ;;  %v2393_v45 = vld [vmem:[%s2713_s6 + $0x4b0] sm:$0xf0]  ;;  %v1871_v58 = vld [vmem:[%s2713_s6 + $0x88] sm:$0xf] }
  0x50   : > { %1326 = vmatpush.bf16.msrb.mxu0 %v2344_v47  ;;  %v2465_v47 = vld [vmem:[%s2713_s6 + $0xb4] sm:$0xf0]  ;;  %v2268_v50 = vor.u32 %v2558_v41, %v2265_v42  ;;  %v2396_v51 = vor.u32 %v2590_v43, %v2393_v45  ;;  %v2249_v54 = vld [vmem:[%s2713_s6 + $0x390] sm:$0xf0]  ;;  %v1999_v60 = vld [vmem:[%s2713_s6 + $0x188] sm:$0xf] }
  0x51   : > { %1339 = vmatpush.bf16.msrb.mxu1 %v1836_v48  ;;  %v2015_v48 = vld [vmem:[%s2713_s6 + $0x1a8] sm:$0xf]  ;;  %v1888_v52 = vor.u32 %v2465_v47, %v1887_v46  ;;  %v2377_v57 = vld [vmem:[%s2713_s6 + $0x490] sm:$0xf0]  ;;  %v2493_v61 = vld [vmem:[%s2713_s6 + $0x194] sm:$0xf0] }
  0x52   : > { %1352 = vmatpush.bf16.msrb.mxu2 %v1964_v49  ;;  %v2497_v49 = vld [vmem:[%s2713_s6 + $0x1b4] sm:$0xf0]  ;;  %v2550_v1 = vld [vmem:[%s2713_s6 + $0x364] sm:$0xf]  ;;  %v2233_v2 = vld [vmem:[%s2713_s6 + $0x370] sm:$0xf0] }
  0x53   : > { %1365 = vmatpush.bf16.msrb.mxu3 %v2092_v53  ;;  %v2554_v53 = vld [vmem:[%s2713_s6 + $0x384] sm:$0xf]  ;;  %v2016_v56 = vor.u32 %v2497_v49, %v2015_v48  ;;  %v2361_v5 = vld [vmem:[%s2713_s6 + $0x470] sm:$0xf0]  ;;  %v1855_v6 = vld [vmem:[%s2713_s6 + $0x68] sm:$0xf]  ;;  %v2236_v10 = vor.u32 %v2550_v1, %v2233_v2 }
  0x54   : > { %1327 = vmatpush.bf16.msrb.mxu0 %v2328_v59  ;;  %v2461_v59 = vld [vmem:[%s2713_s6 + $0x94] sm:$0xf0]  ;;  %v2252_v62 = vor.u32 %v2554_v53, %v2249_v54  ;;  %v2582_v3 = vld [vmem:[%s2713_s6 + $0x464] sm:$0xf]  ;;  %v1983_v8 = vld [vmem:[%s2713_s6 + $0x168] sm:$0xf] }
  0x55   : > { %1340 = vmatpush.bf16.msrb.mxu1 %v1820_v63  ;;  %v2380_v63 = vor.u32 %v2586_v55, %v2377_v57  ;;  %v2457_v7 = vld [vmem:[%s2713_s6 + $0x74] sm:$0xf0]  ;;  %v2546_v13 = vld [vmem:[%s2713_s6 + $0x344] sm:$0xf]  ;;  %v2217_v14 = vld [vmem:[%s2713_s6 + $0x350] sm:$0xf0] }
  0x56   : > { %1353 = vmatpush.bf16.msrb.mxu2 %v1948_v0  ;;  %v1872_v0 = vor.u32 %v2461_v59, %v1871_v58  ;;  %v2489_v9 = vld [vmem:[%s2713_s6 + $0x174] sm:$0xf0]  ;;  %v1856_v12 = vor.u32 %v2457_v7, %v1855_v6  ;;  %v2578_v15 = vld [vmem:[%s2713_s6 + $0x444] sm:$0xf]  ;;  %v1839_v18 = vld [vmem:[%s2713_s6 + $0x48] sm:$0xf] }
  0x57   : > { %1366 = vmatpush.bf16.msrb.mxu3 %v2076_v4  ;;  %v2000_v4 = vor.u32 %v2493_v61, %v1999_v60  ;;  %v2453_v22 = vld [vmem:[%s2713_s6 + $0x54] sm:$0xf0]  ;;  %v2542_v29 = vld [vmem:[%s2713_s6 + $0x324] sm:$0xf]  ;;  %v2201_v30 = vld [vmem:[%s2713_s6 + $0x330] sm:$0xf0] }
  0x58   : > { %1328 = vmatpush.bf16.msrb.mxu0 %v2312_v11  ;;  %v2364_v11 = vor.u32 %v2582_v3, %v2361_v5  ;;  %v1840_v28 = vor.u32 %v2453_v22, %v1839_v18  ;;  %v2329_v33 = vld [vmem:[%s2713_s6 + $0x430] sm:$0xf0]  ;;  %v1823_v34 = vld [vmem:[%s2713_s6 + $0x28] sm:$0xf]  ;;  %v2449_v36 = vld [vmem:[%s2713_s6 + $0x34] sm:$0xf0] }
  0x59   : > { %1341 = vmatpush.bf16.msrb.mxu1 %v1804_v16  ;;  %v1984_v16 = vor.u32 %v2489_v9, %v1983_v8  ;;  %v1951_v37 = vld [vmem:[%s2713_s6 + $0x128] sm:$0xf]  ;;  %v2185_v41 = vld [vmem:[%s2713_s6 + $0x310] sm:$0xf0]  ;;  %v1824_v43 = vor.u32 %v2449_v36, %v1823_v34  ;;  %v2445_v48 = vld [vmem:[%s2713_s6 + $0x14] sm:$0xf0] }
  0x5a   : > { %1354 = vmatpush.bf16.msrb.mxu2 %v1932_v17  ;;  %v2345_v17 = vld [vmem:[%s2713_s6 + $0x450] sm:$0xf0]  ;;  %v1807_v46 = vld [vmem:[%s2713_s6 + $0x8] sm:$0xf]  ;;  %v2569_v55 = vld [vmem:[%s2713_s6 + $0x3f4] sm:$0xf0] }
  0x5b   : > { %1367 = vmatpush.bf16.msrb.mxu3 %v2060_v24  ;;  %1329 = vmatmul.bf16.vlgmr.msrb.gmra.mxu0 %v2873_v35  ;;  %v1967_v24 = vld [vmem:[%s2713_s6 + $0x148] sm:$0xf]  ;;  %v2313_v45 = vld [vmem:[%s2713_s6 + $0x410] sm:$0xf0]  ;;  %v2601_v57 = vld [vmem:[%s2713_s6 + $0x4f4] sm:$0xf0]  ;;  %v1808_v59 = vor.u32 %v2445_v48, %v1807_v46 }
  0x5c   : > { %1373 = vmatpush.bf16.msra.mxu0 %v2300_v25  ;;  %1342 = vmatmul.bf16.vlgmr.msrb.gmra.mxu1 %v2814_v19  ;;  %v2485_v25 = vld [vmem:[%s2713_s6 + $0x154] sm:$0xf0]  ;;  %v1935_v49 = vld [vmem:[%s2713_s6 + $0x108] sm:$0xf]  ;;  %v2471_v60 = vld [vmem:[%s2713_s6 + $0xec] sm:$0xf] }
  0x5d   : > { %1386 = vmatpush.bf16.msra.mxu1 %v2428_v26  ;;  %1355 = vmatmul.bf16.vlgmr.msrb.gmra.mxu2 %v2820_v23  ;;  %v2220_v26 = vor.u32 %v2546_v13, %v2217_v14  ;;  %v1968_v32 = vor.u32 %v2485_v25, %v1967_v24  ;;  %v2303_v53 = vld [vmem:[%s2713_s6 + $0x3e8] sm:$0xf]  ;;  %v1921_v61 = vld [vmem:[%s2713_s6 + $0xf8] sm:$0xf0]  ;;  %v2533_v3 = vld [vmem:[%s2713_s6 + $0x2d4] sm:$0xf0] }
  0x5e   : > { %1399 = vmatpush.bf16.msra.mxu2 %v1920_v27  ;;  %1368 = vmatmul.bf16.vlgmr.msrb.gmra.mxu3 %v2816_v20  ;;  %v2348_v27 = vor.u32 %v2578_v15, %v2345_v17  ;;  %v2159_v2 = vld [vmem:[%s2713_s6 + $0x2c8] sm:$0xf]  ;;  %v1924_v5 = vor.u32 %v2471_v60, %v1921_v61  ;;  %v2565_v6 = vld [vmem:[%s2713_s6 + $0x3d4] sm:$0xf0]  ;;  %v2467_v9 = vld [vmem:[%s2713_s6 + $0xcc] sm:$0xf] }
  0x5f   : > { %1412 = vmatpush.bf16.msra.mxu3 %v2048_v31  ;;  %v2574_v31 = vld [vmem:[%s2713_s6 + $0x424] sm:$0xf]  ;;  %v2415_v7 = vld [vmem:[%s2713_s6 + $0x4c8] sm:$0xf]  ;;  %v2597_v8 = vld [vmem:[%s2713_s6 + $0x4d4] sm:$0xf0] }
  0x60   : > { %1374 = vmatpush.bf16.msra.mxu0 %v2284_v38  ;;  %v2481_v38 = vld [vmem:[%s2713_s6 + $0x134] sm:$0xf0]  ;;  %v2332_v42 = vor.u32 %v2574_v31, %v2329_v33  ;;  %v2416_v13 = vor.u32 %v2597_v8, %v2415_v7  ;;  %v2143_v14 = vld [vmem:[%s2713_s6 + $0x2a8] sm:$0xf]  ;;  %v2463_v25 = vld [vmem:[%s2713_s6 + $0xac] sm:$0xf] }
  0x61   : > { %1387 = vmatpush.bf16.msra.mxu1 %v2412_v39  ;;  %v2204_v39 = vor.u32 %v2542_v29, %v2201_v30  ;;  %v1952_v47 = vor.u32 %v2481_v38, %v1951_v37  ;;  %v2529_v15 = vld [vmem:[%s2713_s6 + $0x2b4] sm:$0xf0]  ;;  %v2399_v22 = vld [vmem:[%s2713_s6 + $0x4a8] sm:$0xf]  ;;  %v2459_v38 = vld [vmem:[%s2713_s6 + $0x8c] sm:$0xf] }
  0x62   : > { %1400 = vmatpush.bf16.msra.mxu2 %v1904_v40  ;;  %v2538_v40 = vld [vmem:[%s2713_s6 + $0x304] sm:$0xf]  ;;  %v2561_v18 = vld [vmem:[%s2713_s6 + $0x3b4] sm:$0xf0]  ;;  %v2127_v30 = vld [vmem:[%s2713_s6 + $0x288] sm:$0xf] }
  0x63   : > { %1413 = vmatpush.bf16.msra.mxu3 %v2032_v44  ;;  %v2570_v44 = vld [vmem:[%s2713_s6 + $0x404] sm:$0xf]  ;;  %v2188_v54 = vor.u32 %v2538_v40, %v2185_v41  ;;  %v2593_v24 = vld [vmem:[%s2713_s6 + $0x4b4] sm:$0xf0]  ;;  %v2383_v36 = vld [vmem:[%s2713_s6 + $0x488] sm:$0xf] }
  0x64   : > { %1375 = vmatpush.bf16.msra.mxu0 %v2268_v50  ;;  %v2477_v50 = vld [vmem:[%s2713_s6 + $0x114] sm:$0xf0]  ;;  %v2316_v58 = vor.u32 %v2570_v44, %v2313_v45  ;;  %v2400_v29 = vor.u32 %v2593_v24, %v2399_v22  ;;  %v2239_v45 = vld [vmem:[%s2713_s6 + $0x368] sm:$0xf] }
  0x65   : > { %1388 = vmatpush.bf16.msra.mxu1 %v2396_v51  ;;  %v2175_v51 = vld [vmem:[%s2713_s6 + $0x2e8] sm:$0xf]  ;;  %v2525_v31 = vld [vmem:[%s2713_s6 + $0x294] sm:$0xf0] }
  0x66   : > { %1401 = vmatpush.bf16.msra.mxu2 %v1888_v52  ;;  %v2537_v52 = vld [vmem:[%s2713_s6 + $0x2f4] sm:$0xf0]  ;;  %v2128_v40 = vor.u32 %v2525_v31, %v2127_v30  ;;  %v2367_v48 = vld [vmem:[%s2713_s6 + $0x468] sm:$0xf]  ;;  %v2535_v30 = vld [vmem:[%s2713_s6 + $0x2ec] sm:$0xf] }
  0x67   : > { %1414 = vmatpush.bf16.msra.mxu3 %v2016_v56  ;;  %v2431_v56 = vld [vmem:[%s2713_s6 + $0x4e8] sm:$0xf]  ;;  %v2557_v34 = vld [vmem:[%s2713_s6 + $0x394] sm:$0xf0] }
  0x68   : > { %1376 = vmatpush.bf16.msra.mxu0 %v2252_v62  ;;  %v1936_v62 = vor.u32 %v2477_v50, %v1935_v49  ;;  %v2432_v1 = vor.u32 %v2601_v57, %v2431_v56  ;;  %v2589_v37 = vld [vmem:[%s2713_s6 + $0x494] sm:$0xf0]  ;;  %v2455_v50 = vld [vmem:[%s2713_s6 + $0x6c] sm:$0xf]  ;;  %v2223_v57 = vld [vmem:[%s2713_s6 + $0x348] sm:$0xf] }
  0x69   : > { %1389 = vmatpush.bf16.msra.mxu1 %v2380_v63  ;;  %v2176_v63 = vor.u32 %v2537_v52, %v2175_v51  ;;  %v2521_v44 = vld [vmem:[%s2713_s6 + $0x274] sm:$0xf0]  ;;  %v1857_v51 = vld [vmem:[%s2713_s6 + $0x78] sm:$0xf0]  ;;  %v2351_v60 = vld [vmem:[%s2713_s6 + $0x448] sm:$0xf] }
  0x6a   : > { %1402 = vmatpush.bf16.msra.mxu2 %v1872_v0  ;;  %v2304_v0 = vor.u32 %v2569_v55, %v2303_v53  ;;  %v2585_v49 = vld [vmem:[%s2713_s6 + $0x474] sm:$0xf0]  ;;  %v2095_v55 = vld [vmem:[%s2713_s6 + $0x248] sm:$0xf] }
  0x6b   : > { %1415 = vmatpush.bf16.msra.mxu3 %v2000_v4  ;;  %v2287_v4 = vld [vmem:[%s2713_s6 + $0x3c8] sm:$0xf]  ;;  %v2517_v56 = vld [vmem:[%s2713_s6 + $0x254] sm:$0xf0] }
  0x6c   : > { %1377 = vmatpush.bf16.msra.mxu0 %v2236_v10  ;;  %v1905_v10 = vld [vmem:[%s2713_s6 + $0xd8] sm:$0xf0]  ;;  %v2581_v61 = vld [vmem:[%s2713_s6 + $0x454] sm:$0xf0]  ;;  %v2335_v8 = vld [vmem:[%s2713_s6 + $0x428] sm:$0xf] }
  0x6d   : > { %1390 = vmatpush.bf16.msra.mxu1 %v2364_v11  ;;  %v2160_v11 = vor.u32 %v2533_v3, %v2159_v2  ;;  %v1908_v17 = vor.u32 %v2467_v9, %v1905_v10  ;;  %v2352_v2 = vor.u32 %v2581_v61, %v2351_v60  ;;  %v2079_v3 = vld [vmem:[%s2713_s6 + $0x228] sm:$0xf]  ;;  %v2545_v7 = vld [vmem:[%s2713_s6 + $0x334] sm:$0xf0]  ;;  %v2447_v10 = vld [vmem:[%s2713_s6 + $0x2c] sm:$0xf] }
  0x6e   : > { %1403 = vmatpush.bf16.msra.mxu2 %v1856_v12  ;;  %v2288_v12 = vor.u32 %v2565_v6, %v2287_v4  ;;  %v2513_v4 = vld [vmem:[%s2713_s6 + $0x234] sm:$0xf0]  ;;  %v2319_v22 = vld [vmem:[%s2713_s6 + $0x408] sm:$0xf]  ;;  %v2145_v60 = vld [vmem:[%s2713_s6 + $0x2b8] sm:$0xf0] }
  0x6f   : > { %1416 = vmatpush.bf16.msra.mxu3 %v1984_v16  ;;  %v2271_v16 = vld [vmem:[%s2713_s6 + $0x3a8] sm:$0xf]  ;;  %v2577_v9 = vld [vmem:[%s2713_s6 + $0x434] sm:$0xf0]  ;;  %v2559_v61 = vld [vmem:[%s2713_s6 + $0x3ac] sm:$0xf] }
  0x70   : > { %1378 = vmatpush.bf16.msra.mxu0 %v2220_v26  ;;  %v1889_v26 = vld [vmem:[%s2713_s6 + $0xb8] sm:$0xf0] }
  0x71   : > { %1391 = vmatpush.bf16.msra.mxu1 %v2348_v27  ;;  %v2144_v27 = vor.u32 %v2529_v15, %v2143_v14  ;;  %v1892_v33 = vor.u32 %v2463_v25, %v1889_v26  ;;  %v2509_v14 = vld [vmem:[%s2713_s6 + $0x214] sm:$0xf0]  ;;  %v2443_v26 = vld [vmem:[%s2713_s6 + $0xc] sm:$0xf] }
  0x72   : > { %1404 = vmatpush.bf16.msra.mxu2 %v1840_v28  ;;  %v2272_v28 = vor.u32 %v2561_v18, %v2271_v16  ;;  %v2336_v16 = vor.u32 %v2577_v9, %v2335_v8  ;;  %v2541_v18 = vld [vmem:[%s2713_s6 + $0x314] sm:$0xf0]  ;;  %v2555_v8 = vld [vmem:[%s2713_s6 + $0x38c] sm:$0xf]  ;;  %v2257_v9 = vld [vmem:[%s2713_s6 + $0x398] sm:$0xf0] }
  0x73   : > { %1417 = vmatpush.bf16.msra.mxu3 %v1968_v32  ;;  %v2255_v32 = vld [vmem:[%s2713_s6 + $0x388] sm:$0xf]  ;;  %v2573_v25 = vld [vmem:[%s2713_s6 + $0x414] sm:$0xf0] }
  0x74   : > { %1379 = vmatpush.bf16.msra.mxu0 %v2204_v39  ;;  %v1873_v39 = vld [vmem:[%s2713_s6 + $0x98] sm:$0xf0]  ;;  %v2256_v41 = vor.u32 %v2557_v34, %v2255_v32 }
  0x75   : > { %1392 = vmatpush.bf16.msra.mxu1 %v2332_v42  ;;  %v2384_v42 = vor.u32 %v2589_v37, %v2383_v36  ;;  %v1876_v46 = vor.u32 %v2459_v38, %v1873_v39  ;;  %v2177_v32 = vld [vmem:[%s2713_s6 + $0x2f8] sm:$0xf0]  ;;  %v2320_v37 = vor.u32 %v2573_v25, %v2319_v22  ;;  %v2599_v38 = vld [vmem:[%s2713_s6 + $0x4ec] sm:$0xf] }
  0x76   : > { %1405 = vmatpush.bf16.msra.mxu2 %v1824_v43  ;;  %v2111_v43 = vld [vmem:[%s2713_s6 + $0x268] sm:$0xf]  ;;  %v2305_v34 = vld [vmem:[%s2713_s6 + $0x3f8] sm:$0xf0] }
  0x77   : > { %1418 = vmatpush.bf16.msra.mxu3 %v1952_v47  ;;  %v2553_v47 = vld [vmem:[%s2713_s6 + $0x374] sm:$0xf0]  ;;  %v2112_v52 = vor.u32 %v2521_v44, %v2111_v43  ;;  %v2433_v39 = vld [vmem:[%s2713_s6 + $0x4f8] sm:$0xf0]  ;;  %v2499_v44 = vld [vmem:[%s2713_s6 + $0x1cc] sm:$0xf] }
  0x78   : > { %1380 = vmatpush.bf16.msra.mxu0 %v2188_v54  ;;  %v2240_v53 = vor.u32 %v2553_v47, %v2239_v45  ;;  %v2368_v54 = vor.u32 %v2585_v49, %v2367_v48  ;;  %v2033_v45 = vld [vmem:[%s2713_s6 + $0x1d8] sm:$0xf0]  ;;  %v2436_v47 = vor.u32 %v2599_v38, %v2433_v39  ;;  %v2563_v49 = vld [vmem:[%s2713_s6 + $0x3cc] sm:$0xf] }
  0x79   : > { %1393 = vmatpush.bf16.msra.mxu1 %v2316_v58  ;;  %v1860_v58 = vor.u32 %v2455_v50, %v1857_v51  ;;  %v2161_v48 = vld [vmem:[%s2713_s6 + $0x2d8] sm:$0xf0]  ;;  %v2595_v51 = vld [vmem:[%s2713_s6 + $0x4cc] sm:$0xf] }
  0x7a   : > { %1406 = vmatpush.bf16.msra.mxu2 %v1808_v59  ;;  %v2549_v59 = vld [vmem:[%s2713_s6 + $0x354] sm:$0xf0]  ;;  %v2289_v50 = vld [vmem:[%s2713_s6 + $0x3d8] sm:$0xf0]  ;;  %v2579_v39 = vld [vmem:[%s2713_s6 + $0x44c] sm:$0xf] }
  0x7b   : > { %1419 = vmatpush.bf16.msra.mxu3 %v1936_v62  ;;  %1381 = vmatmul.bf16.vlgmr.msra.gmra.mxu0 %v2818_v21  ;;  %v2451_v62 = vld [vmem:[%s2713_s6 + $0x4c] sm:$0xf]  ;;  %v2113_v22 = vld [vmem:[%s2713_s6 + $0x278] sm:$0xf0] }
  0x7c   : > { %1425 = vmatpush.bf16.msrb.mxu0 %v2176_v63  ;;  %1394 = vmatmul.bf16.vlgmr.msra.gmra.mxu1 %v2873_v35  ;;  %v1841_v63 = vld [vmem:[%s2713_s6 + $0x58] sm:$0xf0] }
  0x7d   : > { %1438 = vmatpush.bf16.msrb.mxu1 %v2304_v0  ;;  %1407 = vmatmul.bf16.vlgmr.msra.gmra.mxu2 %v2814_v19  ;;  %v2096_v0 = vor.u32 %v2517_v56, %v2095_v55  ;;  %v1844_v6 = vor.u32 %v2451_v62, %v1841_v63  ;;  %v2292_v55 = vor.u32 %v2563_v49, %v2289_v50  ;;  %v2495_v56 = vld [vmem:[%s2713_s6 + $0x1ac] sm:$0xf]  ;;  %v2273_v62 = vld [vmem:[%s2713_s6 + $0x3b8] sm:$0xf0] }
  0x7e   : > { %1451 = vmatpush.bf16.msrb.mxu2 %v2432_v1  ;;  %1420 = vmatmul.bf16.vlgmr.msra.gmra.mxu3 %v2820_v23  ;;  %v2224_v1 = vor.u32 %v2549_v59, %v2223_v57  ;;  %v2017_v57 = vld [vmem:[%s2713_s6 + $0x1b8] sm:$0xf0]  ;;  %v2591_v63 = vld [vmem:[%s2713_s6 + $0x4ac] sm:$0xf] }
  0x7f   : > { %1464 = vmatpush.bf16.msrb.mxu3 %v1924_v5  ;;  %v2207_v5 = vld [vmem:[%s2713_s6 + $0x328] sm:$0xf]  ;;  %v2241_v25 = vld [vmem:[%s2713_s6 + $0x378] sm:$0xf0]  ;;  %v2543_v49 = vld [vmem:[%s2713_s6 + $0x32c] sm:$0xf] }
  0x80   : > { %1426 = vmatpush.bf16.msrb.mxu0 %v2160_v11  ;;  %v1825_v11 = vld [vmem:[%s2713_s6 + $0x38] sm:$0xf0]  ;;  %v2208_v15 = vor.u32 %v2545_v7, %v2207_v5 }
  0x81   : > { %1439 = vmatpush.bf16.msrb.mxu1 %v2288_v12  ;;  %v2080_v12 = vor.u32 %v2513_v4, %v2079_v3  ;;  %v1828_v24 = vor.u32 %v2447_v10, %v1825_v11  ;;  %v2276_v3 = vor.u32 %v2559_v61, %v2273_v62  ;;  %v2491_v4 = vld [vmem:[%s2713_s6 + $0x18c] sm:$0xf]  ;;  %v2001_v5 = vld [vmem:[%s2713_s6 + $0x198] sm:$0xf0] }
  0x82   : > { %1452 = vmatpush.bf16.msrb.mxu2 %v2416_v13  ;;  %v2063_v13 = vld [vmem:[%s2713_s6 + $0x208] sm:$0xf]  ;;  %v2129_v7 = vld [vmem:[%s2713_s6 + $0x298] sm:$0xf0]  ;;  %v2587_v10 = vld [vmem:[%s2713_s6 + $0x48c] sm:$0xf] }
  0x83   : > { %1465 = vmatpush.bf16.msrb.mxu3 %v1908_v17  ;;  %v2191_v17 = vld [vmem:[%s2713_s6 + $0x308] sm:$0xf]  ;;  %v2064_v31 = vor.u32 %v2509_v14, %v2063_v13  ;;  %v2385_v11 = vld [vmem:[%s2713_s6 + $0x498] sm:$0xf0]  ;;  %v2260_v14 = vor.u32 %v2555_v8, %v2257_v9  ;;  %v2539_v61 = vld [vmem:[%s2713_s6 + $0x30c] sm:$0xf] }
  0x84   : > { %1427 = vmatpush.bf16.msrb.mxu0 %v2144_v27  ;;  %v1809_v27 = vld [vmem:[%s2713_s6 + $0x18] sm:$0xf0]  ;;  %v2192_v36 = vor.u32 %v2541_v18, %v2191_v17  ;;  %v2519_v17 = vld [vmem:[%s2713_s6 + $0x26c] sm:$0xf]  ;;  %v2388_v18 = vor.u32 %v2587_v10, %v2385_v11 }
  0x85   : > { %1440 = vmatpush.bf16.msrb.mxu1 %v2272_v28  ;;  %v2503_v28 = vld [vmem:[%s2713_s6 + $0x1ec] sm:$0xf]  ;;  %v2225_v38 = vld [vmem:[%s2713_s6 + $0x358] sm:$0xf0] }
  0x86   : > { %1453 = vmatpush.bf16.msrb.mxu2 %v2400_v29  ;;  %v2049_v29 = vld [vmem:[%s2713_s6 + $0x1f8] sm:$0xf0] }
  0x87   : > { %1466 = vmatpush.bf16.msrb.mxu3 %v1892_v33  ;;  %v2567_v33 = vld [vmem:[%s2713_s6 + $0x3ec] sm:$0xf]  ;;  %v2209_v50 = vld [vmem:[%s2713_s6 + $0x338] sm:$0xf0] }
  0x88   : > { %1428 = vmatpush.bf16.msrb.mxu0 %v2128_v40  ;;  %v1812_v40 = vor.u32 %v2443_v26, %v1809_v27  ;;  %v2308_v43 = vor.u32 %v2567_v33, %v2305_v34  ;;  %v2583_v26 = vld [vmem:[%s2713_s6 + $0x46c] sm:$0xf]  ;;  %v2369_v27 = vld [vmem:[%s2713_s6 + $0x478] sm:$0xf0] }
  0x89   : > { %1441 = vmatpush.bf16.msrb.mxu1 %v2256_v41  ;;  %v2052_v41 = vor.u32 %v2503_v28, %v2049_v29  ;;  %v2116_v29 = vor.u32 %v2519_v17, %v2113_v22  ;;  %v2515_v33 = vld [vmem:[%s2713_s6 + $0x24c] sm:$0xf]  ;;  %v2372_v34 = vor.u32 %v2583_v26, %v2369_v27  ;;  %v2193_v62 = vld [vmem:[%s2713_s6 + $0x318] sm:$0xf0] }
  0x8a   : > { %1454 = vmatpush.bf16.msrb.mxu2 %v2384_v42  ;;  %v2180_v42 = vor.u32 %v2535_v30, %v2177_v32  ;;  %v1969_v32 = vld [vmem:[%s2713_s6 + $0x158] sm:$0xf0] }
  0x8b   : > { %1467 = vmatpush.bf16.msrb.mxu3 %v1876_v46  ;;  %v2531_v46 = vld [vmem:[%s2713_s6 + $0x2cc] sm:$0xf] }
  0x8c   : > { %1429 = vmatpush.bf16.msrb.mxu0 %v2112_v52  ;;  %v2417_v52 = vld [vmem:[%s2713_s6 + $0x4d8] sm:$0xf0] }
  0x8d   : > { %1442 = vmatpush.bf16.msrb.mxu1 %v2240_v53  ;;  %v2036_v53 = vor.u32 %v2499_v44, %v2033_v45  ;;  %v2420_v59 = vor.u32 %v2595_v51, %v2417_v52  ;;  %v2479_v44 = vld [vmem:[%s2713_s6 + $0x12c] sm:$0xf]  ;;  %v1953_v45 = vld [vmem:[%s2713_s6 + $0x138] sm:$0xf0] }
  0x8e   : > { %1455 = vmatpush.bf16.msrb.mxu2 %v2368_v54  ;;  %v2164_v54 = vor.u32 %v2531_v46, %v2161_v48  ;;  %v2511_v46 = vld [vmem:[%s2713_s6 + $0x22c] sm:$0xf]  ;;  %v2081_v48 = vld [vmem:[%s2713_s6 + $0x238] sm:$0xf0] }
  0x8f   : > { %1468 = vmatpush.bf16.msrb.mxu3 %v1860_v58  ;;  %v2527_v58 = vld [vmem:[%s2713_s6 + $0x2ac] sm:$0xf]  ;;  %v2337_v52 = vld [vmem:[%s2713_s6 + $0x438] sm:$0xf0] }
  0x90   : > { %1430 = vmatpush.bf16.msrb.mxu0 %v2096_v0  ;;  %v2401_v0 = vld [vmem:[%s2713_s6 + $0x4b8] sm:$0xf0]  ;;  %v2575_v51 = vld [vmem:[%s2713_s6 + $0x42c] sm:$0xf] }
  0x91   : > { %1443 = vmatpush.bf16.msrb.mxu1 %v2224_v1  ;;  %v2020_v1 = vor.u32 %v2495_v56, %v2017_v57  ;;  %v2475_v56 = vld [vmem:[%s2713_s6 + $0x10c] sm:$0xf]  ;;  %v1937_v57 = vld [vmem:[%s2713_s6 + $0x118] sm:$0xf0] }
  0x92   : > { %1456 = vmatpush.bf16.msrb.mxu2 %v2352_v2  ;;  %v2148_v2 = vor.u32 %v2527_v58, %v2145_v60  ;;  %v2507_v58 = vld [vmem:[%s2713_s6 + $0x20c] sm:$0xf]  ;;  %v2065_v60 = vld [vmem:[%s2713_s6 + $0x218] sm:$0xf0] }
  0x93   : > { %1469 = vmatpush.bf16.msrb.mxu3 %v1844_v6  ;;  %v2523_v6 = vld [vmem:[%s2713_s6 + $0x28c] sm:$0xf] }
  0x94   : > { %1431 = vmatpush.bf16.msrb.mxu0 %v2080_v12  ;;  %v2004_v12 = vor.u32 %v2491_v4, %v2001_v5  ;;  %v2132_v13 = vor.u32 %v2523_v6, %v2129_v7 }
  0x95   : > { %1444 = vmatpush.bf16.msrb.mxu1 %v2208_v15  ;;  %v2487_v15 = vld [vmem:[%s2713_s6 + $0x16c] sm:$0xf] }
  0x96   : > { %1457 = vmatpush.bf16.msrb.mxu2 %v2336_v16  ;;  %v1985_v16 = vld [vmem:[%s2713_s6 + $0x178] sm:$0xf0] }
  0x97   : > { %1470 = vmatpush.bf16.msrb.mxu3 %v1828_v24  ;;  %v2551_v24 = vld [vmem:[%s2713_s6 + $0x36c] sm:$0xf]  ;;  %v1988_v28 = vor.u32 %v2487_v15, %v1985_v16  ;;  %v284_v15 = vld [vmem:[#allocation2 + $0x10] sm:$0xff] }
  0x98   : > { %1432 = vmatpush.bf16.msrb.mxu0 %v2064_v31  ;;  %v2244_v30 = vor.u32 %v2551_v24, %v2241_v25  ;;  %v2483_v31 = vld [vmem:[%s2713_s6 + $0x14c] sm:$0xf] }
  0x99   : > { %1445 = vmatpush.bf16.msrb.mxu1 %v2192_v36  ;;  %v2097_v36 = vld [vmem:[%s2713_s6 + $0x258] sm:$0xf0] }
  0x9a   : > { %1458 = vmatpush.bf16.msrb.mxu2 %v2320_v37  ;;  %v2547_v37 = vld [vmem:[%s2713_s6 + $0x34c] sm:$0xf] }
  0x9b   : > { %1471 = vmatpush.bf16.msrb.mxu3 %v1812_v40  ;;  %1433 = vmatmul.bf16.vlgmr.msrb.gmra.mxu0 %v2816_v20  ;;  %v2353_v40 = vld [vmem:[%s2713_s6 + $0x458] sm:$0xf0] }
  0x9c   : > { %1477 = vmatpush.bf16.msra.mxu0 %v2052_v41  ;;  %1446 = vmatmul.bf16.vlgmr.msrb.gmra.mxu1 %v2818_v21  ;;  %v1972_v41 = vor.u32 %v2483_v31, %v1969_v32  ;;  %v285_v31 = vld [vmem:[#allocation2] sm:$0xff] }
  0x9d   : > { %1490 = vmatpush.bf16.msra.mxu1 %v2180_v42  ;;  %1459 = vmatmul.bf16.vlgmr.msrb.gmra.mxu2 %v2873_v35  ;;  %v2100_v42 = vor.u32 %v2515_v33, %v2097_v36 }
  0x9e   : > { %1503 = vmatpush.bf16.msra.mxu2 %v2308_v43  ;;  %1472 = vmatmul.bf16.vlgmr.msrb.gmra.mxu3 %v2814_v19  ;;  %v2404_v19 = vor.u32 %v2591_v63, %v2401_v0  ;;  %v2228_v43 = vor.u32 %v2547_v37, %v2225_v38  ;;  %v2571_v63 = vld [vmem:[%s2713_s6 + $0x40c] sm:$0xf]  ;;  %v2321_v0 = vld [vmem:[%s2713_s6 + $0x418] sm:$0xf0] }
  0x9f   : > { %1516 = vmatpush.bf16.msra.mxu3 %v2436_v47  ;;  %v2356_v47 = vor.u32 %v2579_v39, %v2353_v40  ;;  %v2324_v4 = vor.u32 %v2571_v63, %v2321_v0  ;;  %v287_v63 = vld [vmem:[#allocation2 + $0x8] sm:$0xff] }
  0xa0   : > { %1478 = vmatpush.bf16.msra.mxu0 %v2036_v53  ;;  %v1956_v53 = vor.u32 %v2479_v44, %v1953_v45 }
  0xa1   : > { %1491 = vmatpush.bf16.msra.mxu1 %v2164_v54  ;;  %v2084_v54 = vor.u32 %v2511_v46, %v2081_v48  ;;  %v286_v46 = vld [vmem:[#allocation2 + $0x18] sm:$0xff] }
  0xa2   : > { %1504 = vmatpush.bf16.msra.mxu2 %v2292_v55  ;;  %v2212_v55 = vor.u32 %v2543_v49, %v2209_v50 }
  0xa3   : > { %1517 = vmatpush.bf16.msra.mxu3 %v2420_v59  ;;  %v2340_v59 = vor.u32 %v2575_v51, %v2337_v52 }
  0xa4   : > { %1479 = vmatpush.bf16.msra.mxu0 %v2020_v1  ;;  %v1940_v1 = vor.u32 %v2475_v56, %v1937_v57 }
  0xa5   : > { %1492 = vmatpush.bf16.msra.mxu1 %v2148_v2  ;;  %v2068_v2 = vor.u32 %v2507_v58, %v2065_v60 }
  0xa6   : > { %1505 = vmatpush.bf16.msra.mxu2 %v2276_v3  ;;  %v2196_v3 = vor.u32 %v2539_v61, %v2193_v62 }
  0xa7   : > { %1518 = vmatpush.bf16.msra.mxu3 %v2404_v19 }
  0xa8   : > { %1480 = vmatpush.bf16.msra.mxu0 %v2004_v12 }
  0xa9   : > { %1493 = vmatpush.bf16.msra.mxu1 %v2132_v13 }
  0xaa   : > { %1506 = vmatpush.bf16.msra.mxu2 %v2260_v14 }
  0xab   : > { %1519 = vmatpush.bf16.msra.mxu3 %v2388_v18 }
  0xac   : > { %1481 = vmatpush.bf16.msra.mxu0 %v1988_v28 }
  0xad   : > { %1494 = vmatpush.bf16.msra.mxu1 %v2116_v29 }
  0xae   : > { %1507 = vmatpush.bf16.msra.mxu2 %v2244_v30 }
  0xaf   : > { %1520 = vmatpush.bf16.msra.mxu3 %v2372_v34 }
  0xb0   : > { %1482 = vmatpush.bf16.msra.mxu0 %v1972_v41 }
  0xb1   : > { %1495 = vmatpush.bf16.msra.mxu1 %v2100_v42 }
  0xb2   : > { %1508 = vmatpush.bf16.msra.mxu2 %v2228_v43 }
  0xb3   : > { %1521 = vmatpush.bf16.msra.mxu3 %v2356_v47 }
  0xb4   : > { %1483 = vmatpush.bf16.msra.mxu0 %v1956_v53 }
  0xb5   : > { %1496 = vmatpush.bf16.msra.mxu1 %v2084_v54 }
  0xb6   : > { %1509 = vmatpush.bf16.msra.mxu2 %v2212_v55 }
  0xb7   : > { %1522 = vmatpush.bf16.msra.mxu3 %v2340_v59 }
  0xb8   : > { %1484 = vmatpush.bf16.msra.mxu0 %v1940_v1 }
  0xb9   : > { %1497 = vmatpush.bf16.msra.mxu1 %v2068_v2 }
  0xba   : > { %1510 = vmatpush.bf16.msra.mxu2 %v2196_v3 }
  0xbb   : > { %1523 = vmatpush.bf16.msra.mxu3 %v2324_v4  ;;  %1485 = vmatmul.bf16.vlgmr.msra.gmra.mxu0 %v2820_v23 }
  0xbc   : > { %1498 = vmatmul.bf16.vlgmr.msra.gmra.mxu1 %v2816_v20 }
  0xbd   : > { %1511 = vmatmul.bf16.vlgmr.msra.gmra.mxu2 %v2818_v21 }
  0xbe   : > { %1524 = vmatmul.bf16.vlgmr.msra.gmra.mxu3 %v2873_v35  ;;  %v1278_v5 = vpop.f32.mrf.mxu0 }
  0xbf   : > { %v1291_v6 = vpop.f32.mrf.mxu1 }
  0xc0   : > { %v1304_v19 = vpop.f32.mrf.mxu2  ;;  %v1292_v10 = vadd.f32 %v1291_v6, %v1278_v5 }
  0xc1   : > { %v1317_v7 = vpop.f32.mrf.mxu3 }
  0xc2   : > { %v1305_v11 = vadd.f32 %v1304_v19, %v1292_v10 }
  0xc4   : > { %v1318_v14 = vadd.f32 %v1317_v7, %v1305_v11 }
  0xc6   : > { %v1280_v8 = vpop.f32.mrf.mxu0 }
  0xc7   : > { %v1293_v9 = vpop.f32.mrf.mxu1 }
  0xc8   : > { %v1306_v12 = vpop.f32.mrf.mxu2 }
  0xc9   : > { %v1319_v13 = vpop.f32.mrf.mxu3 }
  0xd8   : > { %v1330_v16 = vpop.f32.mrf.mxu0 }
  0xd9   : > { %v1331_v23 = vadd.f32 %v1330_v16, %v1318_v14  ;;  %v1343_v17 = vpop.f32.mrf.mxu1 }
  0xdb   : > { %v1529_v20 = vadd.f32 %v1331_v23, %v284_v15 }
  0xdd   : > { %1533 = vst [vmem:[#allocation2 + $0x10] sm:$0xff] %v1529_v20 }
  0xe0   : > { %v1356_v21 = vpop.f32.mrf.mxu2  ;;  %v1332_v35 = vpop.f32.mrf.mxu0 }
  0xe1   : > { %v1369_v18 = vpop.f32.mrf.mxu3  ;;  %v1345_v22 = vpop.f32.mrf.mxu1  ;;  %v1357_v26 = vadd.f32 %v1356_v21, %v1343_v17 }
  0xe3   : > { %v1370_v27 = vadd.f32 %v1369_v18, %v1357_v26 }
  0xe8   : > { %v1358_v24 = vpop.f32.mrf.mxu2 }
  0xe9   : > { %v1371_v25 = vpop.f32.mrf.mxu3 }
  0xf8   : > { %v1382_v28 = vpop.f32.mrf.mxu0 }
  0xf9   : > { %v1383_v29 = vadd.f32 %v1382_v28, %v1370_v27  ;;  %v1395_v30 = vpop.f32.mrf.mxu1 }
  0xfb   : > { %v1396_v32 = vadd.f32 %v1395_v30, %v1383_v29 }
  0xfd   : > { %v1530_v33 = vadd.f32 %v1396_v32, %v285_v31 }
  0xff   : > { %1534 = vst [vmem:[#allocation2] sm:$0xff] %v1530_v33 }
 0x100   : > { %v1408_v34 = vpop.f32.mrf.mxu2  ;;  %v1384_v37 = vpop.f32.mrf.mxu0 }
 0x101   : > { %v1421_v36 = vpop.f32.mrf.mxu3  ;;  %v1397_v38 = vpop.f32.mrf.mxu1 }
 0x102   : > { %v1422_v41 = vadd.f32 %v1421_v36, %v1408_v34 }
 0x108   : > { %v1410_v39 = vpop.f32.mrf.mxu2 }
 0x109   : > { %v1423_v40 = vpop.f32.mrf.mxu3 }
 0x118   : > { %v1434_v42 = vpop.f32.mrf.mxu0 }
 0x119   : > { %v1435_v43 = vadd.f32 %v1434_v42, %v1422_v41  ;;  %v1447_v44 = vpop.f32.mrf.mxu1 }
 0x11b   : > { %v1448_v45 = vadd.f32 %v1447_v44, %v1435_v43 }
 0x120   : > { %v1460_v47 = vpop.f32.mrf.mxu2  ;;  %v1436_v51 = vpop.f32.mrf.mxu0 }
 0x121   : > { %v1461_v48 = vadd.f32 %v1460_v47, %v1448_v45  ;;  %v1473_v49 = vpop.f32.mrf.mxu3  ;;  %v1449_v52 = vpop.f32.mrf.mxu1 }
 0x123   : > { %v1531_v50 = vadd.f32 %v1461_v48, %v286_v46 }
 0x125   : > { %1535 = vst [vmem:[#allocation2 + $0x18] sm:$0xff] %v1531_v50 }
 0x128   : > { %v1462_v53 = vpop.f32.mrf.mxu2 }
 0x129   : > { %v1475_v54 = vpop.f32.mrf.mxu3 }
 0x138   : > { %v1486_v55 = vpop.f32.mrf.mxu0 }
 0x139   : > { %v1499_v56 = vpop.f32.mrf.mxu1  ;;  %v1487_v57 = vadd.f32 %v1486_v55, %v1473_v49 }
 0x13b   : > { %v1500_v58 = vadd.f32 %v1499_v56, %v1487_v57 }
 0x140   : > { %v1512_v59 = vpop.f32.mrf.mxu2  ;;  %v1488_v62 = vpop.f32.mrf.mxu0 }
 0x141   : > { %v1513_v60 = vadd.f32 %v1512_v59, %v1500_v58  ;;  %v1525_v61 = vpop.f32.mrf.mxu3  ;;  %v1501_v0 = vpop.f32.mrf.mxu1 }
 0x143   : > { %v1526_v1 = vadd.f32 %v1525_v61, %v1513_v60 }
 0x145   : > { %v1532_v2 = vadd.f32 %v1526_v1, %v287_v63  ;;  %1540 = sbr.rel (%p2437_p7) target bundleno = 500 (0x1f4), region = 48 }
 0x147   : > { %1536 = vst [vmem:[#allocation2 + $0x8] sm:$0xff] %v1532_v2 }
 0x148   : > { %v1514_v3 = vpop.f32.mrf.mxu2 }
 0x149   : > { %v1527_v4 = vpop.f32.mrf.mxu3 }
 0x14a   : > { %v1610_v5 = vld [vmem:[%s3283_s3 + $0x178] sm:$0xff]  ;;  %v1609_v19 = vld [vmem:[%s3283_s3 + $0x170] sm:$0xff]  ;;  %v1608_v10 = vld [vmem:[%s3283_s3 + $0x168] sm:$0xff] }
 0x14b   : > { %v1578_v6 = vld [vmem:[%s3283_s3 + $0x78] sm:$0xff]  ;;  %1671 = vmatpush.msra.mxu2 %v1610_v5  ;;  %v1577_v8 = vld [vmem:[%s3283_s3 + $0x70] sm:$0xff]  ;;  %v1576_v12 = vld [vmem:[%s3283_s3 + $0x68] sm:$0xff] }
 0x14c   : > { %1631 = vmatpush.msra.mxu0 %v1578_v6  ;;  %v1626_v7 = vld [vmem:[%s3283_s3 + $0x1f8] sm:$0xff]  ;;  %v1625_v11 = vld [vmem:[%s3283_s3 + $0x1f0] sm:$0xff]  ;;  %v1624_v14 = vld [vmem:[%s3283_s3 + $0x1e8] sm:$0xff] }
 0x14d   : > { %v1594_v9 = vld [vmem:[%s3283_s3 + $0xf8] sm:$0xff]  ;;  %1691 = vmatpush.msra.mxu3 %v1626_v7  ;;  %1672 = vmatpush.msra.mxu2 %v1609_v19  ;;  %v1593_v13 = vld [vmem:[%s3283_s3 + $0xf0] sm:$0xff]  ;;  %v1607_v15 = vld [vmem:[%s3283_s3 + $0x160] sm:$0xff] }
 0x14e   : > { %1651 = vmatpush.msra.mxu1 %v1594_v9  ;;  %1632 = vmatpush.msra.mxu0 %v1577_v8  ;;  %v1575_v16 = vld [vmem:[%s3283_s3 + $0x60] sm:$0xff]  ;;  %v1592_v23 = vld [vmem:[%s3283_s3 + $0xe8] sm:$0xff]  ;;  %v1606_v21 = vld [vmem:[%s3283_s3 + $0x158] sm:$0xff] }
 0x14f   : > { %1692 = vmatpush.msra.mxu3 %v1625_v11  ;;  %1673 = vmatpush.msra.mxu2 %v1608_v10  ;;  %v1623_v17 = vld [vmem:[%s3283_s3 + $0x1e0] sm:$0xff]  ;;  %v1574_v18 = vld [vmem:[%s3283_s3 + $0x58] sm:$0xff]  ;;  %v1605_v24 = vld [vmem:[%s3283_s3 + $0x150] sm:$0xff] }
 0x150   : > { %1652 = vmatpush.msra.mxu1 %v1593_v13  ;;  %1633 = vmatpush.msra.mxu0 %v1576_v12  ;;  %v1591_v20 = vld [vmem:[%s3283_s3 + $0xe0] sm:$0xff]  ;;  %v1622_v35 = vld [vmem:[%s3283_s3 + $0x1d8] sm:$0xff]  ;;  %v1573_v25 = vld [vmem:[%s3283_s3 + $0x50] sm:$0xff] }
 0x151   : > { %1693 = vmatpush.msra.mxu3 %v1624_v14  ;;  %1674 = vmatpush.msra.mxu2 %v1607_v15  ;;  %v1590_v22 = vld [vmem:[%s3283_s3 + $0xd8] sm:$0xff]  ;;  %v1621_v26 = vld [vmem:[%s3283_s3 + $0x1d0] sm:$0xff]  ;;  %v1604_v28 = vld [vmem:[%s3283_s3 + $0x148] sm:$0xff] }
 0x152   : > { %1653 = vmatpush.msra.mxu1 %v1592_v23  ;;  %1634 = vmatpush.msra.mxu0 %v1575_v16  ;;  %v1589_v27 = vld [vmem:[%s3283_s3 + $0xd0] sm:$0xff]  ;;  %v1572_v29 = vld [vmem:[%s3283_s3 + $0x48] sm:$0xff]  ;;  %v1603_v32 = vld [vmem:[%s3283_s3 + $0x140] sm:$0xff] }
 0x153   : > { %1694 = vmatpush.msra.mxu3 %v1623_v17  ;;  %1675 = vmatpush.msra.mxu2 %v1606_v21  ;;  %v1620_v30 = vld [vmem:[%s3283_s3 + $0x1c8] sm:$0xff]  ;;  %v1571_v33 = vld [vmem:[%s3283_s3 + $0x40] sm:$0xff]  ;;  %v1602_v37 = vld [vmem:[%s3283_s3 + $0x138] sm:$0xff] }
 0x154   : > { %1654 = vmatpush.msra.mxu1 %v1591_v20  ;;  %1635 = vmatpush.msra.mxu0 %v1574_v18  ;;  %v1588_v31 = vld [vmem:[%s3283_s3 + $0xc8] sm:$0xff]  ;;  %v1619_v34 = vld [vmem:[%s3283_s3 + $0x1c0] sm:$0xff]  ;;  %v1570_v38 = vld [vmem:[%s3283_s3 + $0x38] sm:$0xff] }
 0x155   : > { %1695 = vmatpush.msra.mxu3 %v1622_v35  ;;  %1676 = vmatpush.msra.mxu2 %v1605_v24  ;;  %v1587_v36 = vld [vmem:[%s3283_s3 + $0xc0] sm:$0xff]  ;;  %v1618_v39 = vld [vmem:[%s3283_s3 + $0x1b8] sm:$0xff]  ;;  %v1601_v41 = vld [vmem:[%s3283_s3 + $0x130] sm:$0xff] }
 0x156   : > { %1655 = vmatpush.msra.mxu1 %v1590_v22  ;;  %1636 = vmatpush.msra.mxu0 %v1573_v25  ;;  %v1586_v40 = vld [vmem:[%s3283_s3 + $0xb8] sm:$0xff]  ;;  %v1569_v42 = vld [vmem:[%s3283_s3 + $0x30] sm:$0xff]  ;;  %v1600_v45 = vld [vmem:[%s3283_s3 + $0x128] sm:$0xff] }
 0x157   : > { %1696 = vmatpush.msra.mxu3 %v1621_v26  ;;  %1677 = vmatpush.msra.mxu2 %v1604_v28  ;;  %v1617_v43 = vld [vmem:[%s3283_s3 + $0x1b0] sm:$0xff]  ;;  %v1568_v46 = vld [vmem:[%s3283_s3 + $0x28] sm:$0xff]  ;;  %v1599_v47 = vld [vmem:[%s3283_s3 + $0x120] sm:$0xff] }
 0x158   : > { %1656 = vmatpush.msra.mxu1 %v1589_v27  ;;  %1637 = vmatpush.msra.mxu0 %v1572_v29  ;;  %v1585_v44 = vld [vmem:[%s3283_s3 + $0xb0] sm:$0xff]  ;;  %v1616_v48 = vld [vmem:[%s3283_s3 + $0x1a8] sm:$0xff]  ;;  %v1567_v50 = vld [vmem:[%s3283_s3 + $0x20] sm:$0xff] }
 0x159   : > { %1697 = vmatpush.msra.mxu3 %v1620_v30  ;;  %1678 = vmatpush.msra.mxu2 %v1603_v32  ;;  %v1584_v49 = vld [vmem:[%s3283_s3 + $0xa8] sm:$0xff]  ;;  %v1598_v51 = vld [vmem:[%s3283_s3 + $0x118] sm:$0xff]  ;;  %v1545_v52 = vld [vmem:[%s3282_s2] sm:$0xf] }
 0x15a   : > { %1657 = vmatpush.msra.mxu1 %v1588_v31  ;;  %1638 = vmatpush.msra.mxu0 %v1571_v33  ;;  %v1615_v53 = vld [vmem:[%s3283_s3 + $0x1a0] sm:$0xff]  ;;  %v1543_v55 = vld [vmem:[#allocation2 + $0x18] sm:$0xff]  ;;  %v1549_v56 = vperm.slane %v1545_v52, 2  ;;  %v1547_v57 = vperm.slane %v1545_v52, 0  ;;  %v1550_v58 = vperm.slane %v1545_v52, 3  ;;  %v1541_v60 = vld [vmem:[#allocation2 + $0x10] sm:$0xff] }
 0x15b   : > { %1698 = vmatpush.msra.mxu3 %v1619_v34  ;;  %1679 = vmatpush.msra.mxu2 %v1602_v37  ;;  %v1583_v54 = vld [vmem:[%s3283_s3 + $0xa0] sm:$0xff]  ;;  %v1566_v59 = vld [vmem:[%s3283_s3 + $0x18] sm:$0xff]  ;;  %v1544_v61 = vld [vmem:[#allocation2 + $0x8] sm:$0xff]  ;;  %v1548_v0 = vperm.slane %v1545_v52, 1 }
 0x15c   : > { %1658 = vmatpush.msra.mxu1 %v1587_v36  ;;  %1639 = vmatpush.msra.mxu0 %v1570_v38  ;;  %v1614_v62 = vld [vmem:[%s3283_s3 + $0x198] sm:$0xff]  ;;  %v1597_v1 = vld [vmem:[%s3283_s3 + $0x110] sm:$0xff]  ;;  %v1557_v3 = vadd.f32 %v1549_v56, %v1543_v55  ;;  %v1542_v4 = vld [vmem:[#allocation2] sm:$0xff]  ;;  %v1555_v19 = vadd.f32 %v1547_v57, %v1541_v60  ;;  %v1558_v7 = vadd.f32 %v1550_v58, %v1544_v61 }
 0x15d   : > { %1699 = vmatpush.msra.mxu3 %v1618_v39  ;;  %1680 = vmatpush.msra.mxu2 %v1601_v41  ;;  %v1582_v63 = vld [vmem:[%s3283_s3 + $0x98] sm:$0xff]  ;;  %v1565_v2 = vld [vmem:[%s3283_s3 + $0x10] sm:$0xff]  ;;  %v1596_v8 = vld [vmem:[%s3283_s3 + $0x108] sm:$0xff]  ;;  %v1556_v12 = vadd.f32 %v1548_v0, %v1542_v4 }
 0x15e   : > { %1659 = vmatpush.msra.mxu1 %v1586_v40  ;;  %1640 = vmatpush.msra.mxu0 %v1569_v42  ;;  %v1613_v5 = vld [vmem:[%s3283_s3 + $0x190] sm:$0xff]  ;;  %v1564_v9 = vld [vmem:[%s3283_s3 + $0x8] sm:$0xff]  ;;  %v1595_v13 = vld [vmem:[%s3283_s3 + $0x100] sm:$0xff]  ;;  %v1561_v14 = vmax.f32 %v1557_v3, 0.0  ;;  %v1559_v23 = vmax.f32 %v1555_v19, 0.0  ;;  %v1562_v17 = vmax.f32 %v1558_v7, 0.0 }
 0x15f   : > { %1700 = vmatpush.msra.mxu3 %v1617_v43  ;;  %1681 = vmatpush.msra.mxu2 %v1600_v45  ;;  %v1581_v6 = vld [vmem:[%s3283_s3 + $0x90] sm:$0xff]  ;;  %v1612_v10 = vld [vmem:[%s3283_s3 + $0x188] sm:$0xff]  ;;  %v1563_v15 = vld [vmem:[%s3283_s3] sm:$0xff]  ;;  %v1560_v21 = vmax.f32 %v1556_v12, 0.0 }
 0x160   : > { %1660 = vmatpush.msra.mxu1 %v1585_v44  ;;  %1641 = vmatpush.msra.mxu0 %v1568_v46  ;;  %v1580_v11 = vld [vmem:[%s3283_s3 + $0x88] sm:$0xff]  ;;  %v1611_v16 = vld [vmem:[%s3283_s3 + $0x180] sm:$0xff] }
 0x161   : > { %1701 = vmatpush.msra.mxu3 %v1616_v48  ;;  %1682 = vmatpush.msra.mxu2 %v1599_v47  ;;  %v1579_v20 = vld [vmem:[%s3283_s3 + $0x80] sm:$0xff] }
 0x162   : > { %1661 = vmatpush.msra.mxu1 %v1584_v49  ;;  %1642 = vmatpush.msra.mxu0 %v1567_v50  ;;  %v2627_v18 = vld [vmem:[%s3284_s4] ss:$0 sm:$0xff] }
 0x163   : > { %1702 = vmatpush.msra.mxu3 %v1615_v53  ;;  %1683 = vmatpush.msra.mxu2 %v1598_v51 }
 0x164   : > { %1662 = vmatpush.msra.mxu1 %v1583_v54  ;;  %1643 = vmatpush.msra.mxu0 %v1566_v59 }
 0x165   : > { %1703 = vmatpush.msra.mxu3 %v1614_v62  ;;  %1684 = vmatpush.msra.mxu2 %v1597_v1 }
 0x166   : > { %1663 = vmatpush.msra.mxu1 %v1582_v63  ;;  %1644 = vmatpush.msra.mxu0 %v1565_v2 }
 0x167   : > { %1704 = vmatpush.msra.mxu3 %v1613_v5  ;;  %1685 = vmatpush.msra.mxu2 %v1596_v8 }
 0x168   : > { %1664 = vmatpush.msra.mxu1 %v1581_v6  ;;  %1645 = vmatpush.msra.mxu0 %v1564_v9 }
 0x169   : > { %1705 = vmatpush.msra.mxu3 %v1612_v10  ;;  %1686 = vmatpush.msra.mxu2 %v1595_v13 }
 0x16a   : > { %1665 = vmatpush.msra.mxu1 %v1580_v11  ;;  %1646 = vmatpush.msra.mxu0 %v1563_v15 }
 0x16b   : > { %1687 = vmatmul.f32.vlgmr.msra.gmra.mxu2 %v1561_v14  ;;  %1706 = vmatpush.msra.mxu3 %v1611_v16 }
 0x16c   : > { %1647 = vmatmul.f32.vlgmr.msra.gmra.mxu0 %v1559_v23  ;;  %1707 = vmatmul.f32.vlgmr.msra.gmra.mxu3 %v1562_v17 }
 0x16d   : > { %1666 = vmatpush.msra.mxu1 %v1579_v20 }
 0x16e   : > { %1667 = vmatmul.f32.vlgmr.msra.gmra.mxu1 %v1560_v21 }
 0x1e9   : > { %v1648_v35 = vpop.f32.mrf.mxu0 }
 0x1ea   : > { %v1649_v22 = vadd.f32 %v2627_v18, %v1648_v35 }
 0x1eb   : > { %v1668_v24 = vpop.f32.mrf.mxu1 }
 0x1ec   : > { %v1669_v25 = vadd.f32 %v1668_v24, %v1649_v22 }
 0x1ee   : > { %v1688_v26 = vpop.f32.mrf.mxu2 }
 0x1ef   : > { %v1689_v27 = vadd.f32 %v1688_v26, %v1669_v25  ;;  %v1708_v28 = vpop.f32.mrf.mxu3 }
 0x1f1   : > { %v1709_v29 = vadd.f32 %v1708_v28, %v1689_v27 }
 0x1f3   : > { %1711 = vst [vmem:[%s3285_s5] sm:$0xff] %v1709_v29 }
 0x1f4 PF: > { %s15_s20 = sadd.s32 1, %s2650_s20   ;;  %s3286_s18 = smov %s2646_s19 }
 0x1f5   : > { %p12_p8 = scmp.ge.s32.totalorder %s15_s20, 7   ;;  %s3287_s19 = smov %s3289_s21 }
 0x1f7   :  { %14 = sbr.rel (!%p12_p8) target bundleno = 2 (0x2), region = 81 }

// kernel: net_forward.4
= control target key start
LH: loop header
LB: loop body
LE: loop exit
PB: predicated region body
PF: predicated region fallthrough
CT: control target
= control target key end

     0   :  { %vm705_vm0 = vcmask 261120   ;;  %vm2959_vm1 = vcmask 519168   ;;  %s6482_s1 = inlined_call_operand.vmem [shape: bf16[800,64], index: 1, kind: input, shape index: {}]   ;;  %s6483_s2 = inlined_call_operand.vmem [shape: f32[1,64], index: 2, kind: input, shape index: {}]   ;;  %s6484_s0 = inlined_call_operand.vmem [shape: bf16[4,104,800], index: 0, kind: input, shape index: {}]   ;;  %s6485_s3 = inlined_call_operand.vmem [shape: bf16[104,64], index: 3, kind: output, shape index: {}]  }
   0x1   :  { %v4327_v0 = vld [vmem:[%s6482_s1 + $0x38] sm:$0xff]  ;;  %v4349_v4 = vld [vmem:[%s6482_s1 + $0x30] sm:$0xff]  ;;  %v4373_v8 = vld [vmem:[%s6482_s1 + $0x28] sm:$0xff] }
   0x2   :  { %v4332_v1 = vld [vmem:[%s6482_s1 + $0x78] sm:$0xff]  ;;  %727 = vmatpush.bf16.msra.mxu0 %v4327_v0  ;;  %v4354_v5 = vld [vmem:[%s6482_s1 + $0x70] sm:$0xff]  ;;  %v4378_v9 = vld [vmem:[%s6482_s1 + $0x68] sm:$0xff] }
   0x3   :  { %v4337_v2 = vld [vmem:[%s6482_s1 + $0xb8] sm:$0xff]  ;;  %770 = vmatpush.bf16.msra.mxu1 %v4332_v1  ;;  %v4361_v6 = vld [vmem:[%s6482_s1 + $0xb0] sm:$0xff]  ;;  %v4385_v10 = vld [vmem:[%s6482_s1 + $0xa8] sm:$0xff] }
   0x4   :  { %v4342_v3 = vld [vmem:[%s6482_s1 + $0xf8] sm:$0xff]  ;;  %813 = vmatpush.bf16.msra.mxu2 %v4337_v2  ;;  %v4366_v7 = vld [vmem:[%s6482_s1 + $0xf0] sm:$0xff]  ;;  %v4390_v11 = vld [vmem:[%s6482_s1 + $0xe8] sm:$0xff] }
   0x5   :  { %856 = vmatpush.bf16.msra.mxu3 %v4342_v3  ;;  %v4397_v12 = vld [vmem:[%s6482_s1 + $0x20] sm:$0xff]  ;;  %v4421_v16 = vld [vmem:[%s6482_s1 + $0x18] sm:$0xff]  ;;  %v4445_v20 = vld [vmem:[%s6482_s1 + $0x10] sm:$0xff] }
   0x6   :  { %728 = vmatpush.bf16.msra.mxu0 %v4349_v4  ;;  %v4402_v13 = vld [vmem:[%s6482_s1 + $0x60] sm:$0xff]  ;;  %v4426_v17 = vld [vmem:[%s6482_s1 + $0x58] sm:$0xff]  ;;  %v4450_v21 = vld [vmem:[%s6482_s1 + $0x50] sm:$0xff] }
   0x7   :  { %771 = vmatpush.bf16.msra.mxu1 %v4354_v5  ;;  %v4409_v14 = vld [vmem:[%s6482_s1 + $0xa0] sm:$0xff]  ;;  %v4433_v18 = vld [vmem:[%s6482_s1 + $0x98] sm:$0xff]  ;;  %v4457_v22 = vld [vmem:[%s6482_s1 + $0x90] sm:$0xff] }
   0x8   :  { %814 = vmatpush.bf16.msra.mxu2 %v4361_v6  ;;  %v4414_v15 = vld [vmem:[%s6482_s1 + $0xe0] sm:$0xff]  ;;  %v4438_v19 = vld [vmem:[%s6482_s1 + $0xd8] sm:$0xff]  ;;  %v4462_v23 = vld [vmem:[%s6482_s1 + $0xd0] sm:$0xff] }
   0x9   :  { %857 = vmatpush.bf16.msra.mxu3 %v4366_v7  ;;  %v4469_v24 = vld [vmem:[%s6482_s1 + $0x8] sm:$0xff]  ;;  %v4491_v28 = vld [vmem:[%s6482_s1] sm:$0xff]  ;;  %v4086_v33 = vld [vmem:[%s6484_s0 + $0x18] sm:$0xf0] }
   0xa   :  { %729 = vmatpush.bf16.msra.mxu0 %v4373_v8  ;;  %v4474_v25 = vld [vmem:[%s6482_s1 + $0x48] sm:$0xff]  ;;  %v4496_v29 = vld [vmem:[%s6482_s1 + $0x40] sm:$0xff]  ;;  %v4544_v41 = vld [vmem:[%s6482_s1 + $0x138] sm:$0xff] }
   0xb   :  { %772 = vmatpush.bf16.msra.mxu1 %v4378_v9  ;;  %v4481_v26 = vld [vmem:[%s6482_s1 + $0x88] sm:$0xff]  ;;  %v4501_v30 = vld [vmem:[%s6482_s1 + $0x80] sm:$0xff]  ;;  %v4553_v46 = vld [vmem:[%s6482_s1 + $0x178] sm:$0xff] }
   0xc   :  { %815 = vmatpush.bf16.msra.mxu2 %v4385_v10  ;;  %v4486_v27 = vld [vmem:[%s6482_s1 + $0xc8] sm:$0xff]  ;;  %v4506_v31 = vld [vmem:[%s6482_s1 + $0xc0] sm:$0xff]  ;;  %v4560_v47 = vld [vmem:[%s6482_s1 + $0x130] sm:$0xff] }
   0xd   :  { %858 = vmatpush.bf16.msra.mxu3 %v4390_v11  ;;  %v2979_v32 = vld [vmem:[%s6484_s0] sm:$0xf]  ;;  %v4083_v34 = vld [vmem:[%s6484_s0 + $0x4] sm:$0xf]  ;;  %v2987_v36 = vld [vmem:[%s6484_s0 + $0x8] sm:$0xf] }
   0xe   :  { %730 = vmatpush.bf16.msra.mxu0 %v4397_v12  ;;  %v2981_v35 = vld [vmem:[%s6484_s0 + $0x1c] sm:$0xf0]  ;;  %v4087_v37 = vld [vmem:[%s6484_s0 + $0x20] sm:$0xf0]  ;;  %v4084_v38 = vld [vmem:[%s6484_s0 + $0xc] sm:$0xf]  ;;  %v2980_v42 = vor.u32 %v4086_v33, %v2979_v32 }
   0xf   :  { %773 = vmatpush.bf16.msra.mxu1 %v4402_v13  ;;  %v2989_v39 = vld [vmem:[%s6484_s0 + $0x24] sm:$0xf0]  ;;  %v2984_v43 = vor.u32 %v4083_v34, %v2981_v35  ;;  %v2988_v44 = vor.u32 %v4087_v37, %v2987_v36  ;;  %v4567_v48 = vld [vmem:[%s6482_s1 + $0x170] sm:$0xff]  ;;  %v4586_v51 = vld [vmem:[%s6482_s1 + $0x120] sm:$0xff] }
  0x10   :  { %816 = vmatpush.bf16.msra.mxu2 %v4409_v14  ;;  %v4539_v40 = vld [vmem:[%s6482_s1 + $0x188] sm:$0xff]  ;;  %v2992_v45 = vor.u32 %v4084_v38, %v2989_v39  ;;  %v3007_v52 = vld [vmem:[%s6484_s0 + $0x38] sm:$0xf]  ;;  %v4093_v53 = vld [vmem:[%s6484_s0 + $0x50] sm:$0xf0] }
  0x11   :  { %859 = vmatpush.bf16.msra.mxu3 %v4414_v15  ;;  %v4573_v49 = vld [vmem:[%s6482_s1 + $0x128] sm:$0xff]  ;;  %v4090_v54 = vld [vmem:[%s6484_s0 + $0x3c] sm:$0xf]  ;;  %v3009_v55 = vld [vmem:[%s6484_s0 + $0x54] sm:$0xf0]  ;;  %v3008_v61 = vor.u32 %v4093_v53, %v3007_v52 }
  0x12   :  { %731 = vmatpush.bf16.msra.mxu0 %v4421_v16  ;;  %v4580_v50 = vld [vmem:[%s6482_s1 + $0x168] sm:$0xff]  ;;  %v3015_v56 = vld [vmem:[%s6484_s0 + $0x40] sm:$0xf]  ;;  %v4094_v57 = vld [vmem:[%s6484_s0 + $0x58] sm:$0xf0]  ;;  %v3012_v62 = vor.u32 %v4090_v54, %v3009_v55 }
  0x13   :  { %774 = vmatpush.bf16.msra.mxu1 %v4426_v17  ;;  %v4091_v58 = vld [vmem:[%s6484_s0 + $0x44] sm:$0xf]  ;;  %v3017_v59 = vld [vmem:[%s6484_s0 + $0x5c] sm:$0xf0]  ;;  %v3016_v63 = vor.u32 %v4094_v57, %v3015_v56  ;;  %v4630_v34 = vld [vmem:[%s6482_s1 + $0x118] sm:$0xff] }
  0x14   :  { %817 = vmatpush.bf16.msra.mxu2 %v4433_v18  ;;  %v4617_v60 = vld [vmem:[%s6482_s1 + $0x160] sm:$0xff]  ;;  %v3020_v32 = vor.u32 %v4091_v58, %v3017_v59  ;;  %v4635_v35 = vld [vmem:[%s6482_s1 + $0x158] sm:$0xff]  ;;  %v3035_v36 = vld [vmem:[%s6484_s0 + $0x70] sm:$0xf] }
  0x15   :  { %860 = vmatpush.bf16.msra.mxu3 %v4438_v19  ;;  %v4625_v33 = vld [vmem:[%s6482_s1 + $0x180] sm:$0xff]  ;;  %v4100_v37 = vld [vmem:[%s6484_s0 + $0x88] sm:$0xf0]  ;;  %v4097_v38 = vld [vmem:[%s6484_s0 + $0x74] sm:$0xf] }
  0x16   :  { %732 = vmatpush.bf16.msra.mxu0 %v4445_v20  ;;  %v3037_v39 = vld [vmem:[%s6484_s0 + $0x8c] sm:$0xf0]  ;;  %v3036_v52 = vor.u32 %v4100_v37, %v3035_v36  ;;  %v4107_v58 = vld [vmem:[%s6484_s0 + $0xc0] sm:$0xf0]  ;;  %v3065_v59 = vld [vmem:[%s6484_s0 + $0xc4] sm:$0xf0] }
  0x17   :  { %775 = vmatpush.bf16.msra.mxu1 %v4450_v21  ;;  %v3040_v53 = vor.u32 %v4097_v38, %v3037_v39  ;;  %v4675_v56 = vld [vmem:[%s6482_s1 + $0x110] sm:$0xff]  ;;  %v4718_v39 = vld [vmem:[%s6482_s1 + $0x108] sm:$0xff] }
  0x18   :  { %818 = vmatpush.bf16.msra.mxu2 %v4457_v22  ;;  %v4680_v57 = vld [vmem:[%s6482_s1 + $0x150] sm:$0xff] }
  0x19   :  { %861 = vmatpush.bf16.msra.mxu3 %v4462_v23 }
  0x1a   :  { %733 = vmatpush.bf16.msra.mxu0 %v4469_v24 }
  0x1b   :  { %776 = vmatpush.bf16.msra.mxu1 %v4474_v25 }
  0x1c   :  { %819 = vmatpush.bf16.msra.mxu2 %v4481_v26 }
  0x1d   :  { %862 = vmatpush.bf16.msra.mxu3 %v4486_v27 }
  0x1e   :  { %734 = vmatpush.bf16.msra.mxu0 %v4491_v28 }
  0x1f   :  { %777 = vmatpush.bf16.msra.mxu1 %v4496_v29 }
  0x20   :  { %820 = vmatpush.bf16.msra.mxu2 %v4501_v30 }
  0x21   :  { %863 = vmatpush.bf16.msra.mxu3 %v4506_v31  ;;  %735 = vmatmul.bf16.vlgmr.msra.gmra.mxu0 %v2980_v42  ;;  %v3043_v42 = vld [vmem:[%s6484_s0 + $0x78] sm:$0xf] }
  0x22   :  { %899 = vmatpush.bf16.msrb.mxu0 %v4544_v41  ;;  %778 = vmatmul.bf16.vlgmr.msra.gmra.mxu1 %v2984_v43  ;;  %v4101_v43 = vld [vmem:[%s6484_s0 + $0x90] sm:$0xf0] }
  0x23   :  { %821 = vmatmul.bf16.vlgmr.msra.gmra.mxu2 %v2988_v44  ;;  %942 = vmatpush.bf16.msrb.mxu1 %v4553_v46  ;;  %v4098_v44 = vld [vmem:[%s6484_s0 + $0x7c] sm:$0xf]  ;;  %v3044_v54 = vor.u32 %v4101_v43, %v3043_v42  ;;  %v4111_v43 = vld [vmem:[%s6484_s0 + $0xe4] sm:$0xf] }
  0x24   :  { %991 = vmatpush.bf16.msrb.mxu2 %v4539_v40  ;;  %864 = vmatmul.bf16.vlgmr.msra.gmra.mxu3 %v2992_v45  ;;  %v3045_v45 = vld [vmem:[%s6484_s0 + $0x94] sm:$0xf0]  ;;  %v4114_v42 = vld [vmem:[%s6484_s0 + $0xf8] sm:$0xf0] }
  0x25   :  { %1349 = vmatpush.bf16.msrb.mxu3 %v4327_v0  ;;  %v3048_v55 = vor.u32 %v4098_v44, %v3045_v45  ;;  %v3099_v44 = vld [vmem:[%s6484_s0 + $0xe8] sm:$0xf]  ;;  %v4115_v45 = vld [vmem:[%s6484_s0 + $0x100] sm:$0xf0] }
  0x26   :  { %900 = vmatpush.bf16.msrb.mxu0 %v4560_v47 }
  0x27   :  { %943 = vmatpush.bf16.msrb.mxu1 %v4567_v48 }
  0x28   :  { %992 = vmatpush.bf16.msrb.mxu2 %v4625_v33 }
  0x29   :  { %1350 = vmatpush.bf16.msrb.mxu3 %v4349_v4 }
  0x2a   :  { %901 = vmatpush.bf16.msrb.mxu0 %v4573_v49 }
  0x2b   :  { %944 = vmatpush.bf16.msrb.mxu1 %v4580_v50 }
  0x2c   :  { %1478 = vmatpush.bf16.msra.mxu2 %v4342_v3 }
  0x2d   :  { %1351 = vmatpush.bf16.msrb.mxu3 %v4373_v8 }
  0x2e   :  { %902 = vmatpush.bf16.msrb.mxu0 %v4586_v51 }
  0x2f   :  { %945 = vmatpush.bf16.msrb.mxu1 %v4617_v60 }
  0x30   :  { %1479 = vmatpush.bf16.msra.mxu2 %v4366_v7 }
  0x31   :  { %1352 = vmatpush.bf16.msrb.mxu3 %v4397_v12  ;;  %740 = vmatmul.bf16.gmra.mxu0 %v3008_v61  ;;  %v4108_v61 = vld [vmem:[%s6484_s0 + $0xc8] sm:$0xf0] }
  0x32   :  { %783 = vmatmul.bf16.gmra.mxu1 %v3012_v62  ;;  %903 = vmatpush.bf16.msrb.mxu0 %v4630_v34  ;;  %v4105_v62 = vld [vmem:[%s6484_s0 + $0xb4] sm:$0xf] }
  0x33   :  { %826 = vmatmul.bf16.gmra.mxu2 %v3016_v63  ;;  %946 = vmatpush.bf16.msrb.mxu1 %v4635_v35  ;;  %v3073_v63 = vld [vmem:[%s6484_s0 + $0xcc] sm:$0xf0] }
  0x34   :  { %869 = vmatmul.bf16.gmra.mxu3 %v3020_v32  ;;  %1480 = vmatpush.bf16.msra.mxu2 %v4390_v11  ;;  %v3063_v11 = vld [vmem:[%s6484_s0 + $0xa8] sm:$0xf]  ;;  %v3076_v38 = vor.u32 %v4105_v62, %v3073_v63  ;;  %v4118_v62 = vld [vmem:[%s6484_s0 + $0x11c] sm:$0xf]  ;;  %v3121_v63 = vld [vmem:[%s6484_s0 + $0x134] sm:$0xf0] }
  0x35   :  { %1353 = vmatpush.bf16.msrb.mxu3 %v4421_v16  ;;  %v3064_v32 = vor.u32 %v4107_v58, %v3063_v11  ;;  %v3100_v11 = vor.u32 %v4115_v45, %v3099_v44  ;;  %v164_v44 = vld [vmem:[%s6484_s0 + $0x150] sm:$0xff]  ;;  %v165_v45 = vld [vmem:[%s6484_s0 + $0x158] sm:$0xff] }
  0x36   :  { %904 = vmatpush.bf16.msrb.mxu0 %v4675_v56 }
  0x37   :  { %947 = vmatpush.bf16.msrb.mxu1 %v4680_v57 }
  0x38   :  { %1481 = vmatpush.bf16.msra.mxu2 %v4414_v15  ;;  %v4104_v15 = vld [vmem:[%s6484_s0 + $0xac] sm:$0xf] }
  0x39   :  { %1354 = vmatpush.bf16.msrb.mxu3 %v4445_v20  ;;  %v3068_v36 = vor.u32 %v4104_v15, %v3065_v59  ;;  %v4758_v15 = vld [vmem:[%s6482_s1 + $0x100] sm:$0xff] }
  0x3a   :  { %905 = vmatpush.bf16.msrb.mxu0 %v4718_v39  ;;  %v4763_v59 = vld [vmem:[%s6482_s1 + $0x140] sm:$0xff] }
  0x3c   :  { %1482 = vmatpush.bf16.msra.mxu2 %v4438_v19  ;;  %v3071_v19 = vld [vmem:[%s6484_s0 + $0xb0] sm:$0xf] }
  0x3d   :  { %1355 = vmatpush.bf16.msrb.mxu3 %v4469_v24  ;;  %v3072_v37 = vor.u32 %v4108_v61, %v3071_v19  ;;  %v3119_v19 = vld [vmem:[%s6484_s0 + $0x118] sm:$0xf]  ;;  %v4121_v61 = vld [vmem:[%s6484_s0 + $0x130] sm:$0xf0] }
  0x3e   :  { %906 = vmatpush.bf16.msrb.mxu0 %v4758_v15 }
  0x40   :  { %1483 = vmatpush.bf16.msra.mxu2 %v4462_v23  ;;  %v4723_v23 = vld [vmem:[%s6482_s1 + $0x148] sm:$0xff] }
  0x41   :  { %1356 = vmatpush.bf16.msrb.mxu3 %v4491_v28  ;;  %745 = vmatmul.bf16.gmra.mxu0 %v3036_v52  ;;  %v4112_v52 = vld [vmem:[%s6484_s0 + $0xec] sm:$0xf] }
  0x42   :  { %788 = vmatmul.bf16.gmra.mxu1 %v3040_v53  ;;  %v3101_v53 = vld [vmem:[%s6484_s0 + $0x104] sm:$0xf0]  ;;  %1392 = vmatpush.bf16.msra.mxu0 %v4332_v1 }
  0x43   :  { %831 = vmatmul.bf16.gmra.mxu2 %v3044_v54  ;;  %948 = vmatpush.bf16.msrb.mxu1 %v4723_v23  ;;  %v3104_v58 = vor.u32 %v4112_v52, %v3101_v53  ;;  %v308_v52 = vunpack.c.h.b16 %v164_v44  ;;  %v309_v53 = vunpack.c.l.b16 %v165_v45 }
  0x44   :  { %874 = vmatmul.bf16.gmra.mxu3 %v3048_v55  ;;  %1484 = vmatpush.bf16.msra.mxu2 %v4486_v27  ;;  %v3091_v27 = vld [vmem:[%s6484_s0 + $0xe0] sm:$0xf] }
  0x45   :  { %1521 = vmatpush.bf16.msra.mxu3 %v4544_v41  ;;  %v3092_v54 = vor.u32 %v4114_v42, %v3091_v27  ;;  %v3120_v27 = vor.u32 %v4121_v61, %v3119_v19  ;;  %v3124_v42 = vor.u32 %v4118_v62, %v3121_v63  ;;  %v2997_v19 = vld [vmem:[%s6484_s0 + $0x2c] sm:$0xf0]  ;;  %v4089_v61 = vld [vmem:[%s6484_s0 + $0x30] sm:$0xf0]  ;;  %v3406_v62 = vld [vmem:[%s6484_s0 + $0x16c] sm:$0xf] }
  0x46   :  { %1393 = vmatpush.bf16.msra.mxu0 %v4354_v5  ;;  %v4128_v63 = vld [vmem:[%s6484_s0 + $0x184] sm:$0xf0] }
  0x47   :  { %949 = vmatpush.bf16.msrb.mxu1 %v4763_v59 }
  0x48   :  { %1485 = vmatpush.bf16.msra.mxu2 %v4506_v31  ;;  %v3093_v31 = vld [vmem:[%s6484_s0 + $0xfc] sm:$0xf0] }
  0x49   :  { %1522 = vmatpush.bf16.msra.mxu3 %v4560_v47  ;;  %v3096_v55 = vor.u32 %v4111_v43, %v3093_v31 }
  0x4a   :  { %1394 = vmatpush.bf16.msra.mxu0 %v4378_v9 }
  0x4b   :  { %1435 = vmatpush.bf16.msra.mxu1 %v4337_v2 }
  0x4d   :  { %1523 = vmatpush.bf16.msra.mxu3 %v4573_v49 }
  0x4e   :  { %1395 = vmatpush.bf16.msra.mxu0 %v4402_v13 }
  0x4f   :  { %1436 = vmatpush.bf16.msra.mxu1 %v4361_v6 }
  0x51   :  { %1524 = vmatpush.bf16.msra.mxu3 %v4586_v51  ;;  %750 = vmatmul.bf16.gmra.mxu0 %v3064_v32  ;;  %v3127_v32 = vld [vmem:[%s6484_s0 + $0x120] sm:$0xf] }
  0x52   :  { %793 = vmatmul.bf16.gmra.mxu1 %v3068_v36  ;;  %v4122_v36 = vld [vmem:[%s6484_s0 + $0x138] sm:$0xf0]  ;;  %1396 = vmatpush.bf16.msra.mxu0 %v4426_v17 }
  0x53   :  { %836 = vmatmul.bf16.gmra.mxu2 %v3072_v37  ;;  %v4119_v37 = vld [vmem:[%s6484_s0 + $0x124] sm:$0xf]  ;;  %1437 = vmatpush.bf16.msra.mxu1 %v4385_v10  ;;  %v3128_v43 = vor.u32 %v4122_v36, %v3127_v32  ;;  %v307_v10 = vunpack.c.l.b16 %v164_v44 }
  0x54   :  { %879 = vmatmul.bf16.gmra.mxu3 %v3076_v38  ;;  %v3129_v38 = vld [vmem:[%s6484_s0 + $0x13c] sm:$0xf0] }
  0x55   :  { %1525 = vmatpush.bf16.msra.mxu3 %v4630_v34  ;;  %v3132_v31 = vor.u32 %v4119_v37, %v3129_v38  ;;  %v3407_v38 = vor.u32 %v4128_v63, %v3406_v62 }
  0x56   :  { %1397 = vmatpush.bf16.msra.mxu0 %v4450_v21 }
  0x57   :  { %1438 = vmatpush.bf16.msra.mxu1 %v4409_v14  ;;  %v356_v14 = vpack.c.b16 %v307_v10, %v307_v10 }
  0x59   :  { %1526 = vmatpush.bf16.msra.mxu3 %v4675_v56 }
  0x5a   :  { %1398 = vmatpush.bf16.msra.mxu0 %v4474_v25 }
  0x5b   :  { %1439 = vmatpush.bf16.msra.mxu1 %v4433_v18  ;;  %v2995_v18 = vld [vmem:[%s6484_s0 + $0x10] sm:$0xf] }
  0x5d   :  { %1527 = vmatpush.bf16.msra.mxu3 %v4718_v39 }
  0x5e   :  { %1399 = vmatpush.bf16.msra.mxu0 %v4496_v29 }
  0x5f   :  { %1440 = vmatpush.bf16.msra.mxu1 %v4457_v22  ;;  %v4088_v22 = vld [vmem:[%s6484_s0 + $0x28] sm:$0xf0] }
  0x60   :  { %v2996_v32 = vor.u32 %v4088_v22, %v2995_v18  ;;  %v4102_v18 = vld [vmem:[%s6484_s0 + $0x98] sm:$0xf0]  ;;  %v4099_v22 = vld [vmem:[%s6484_s0 + $0x84] sm:$0xf] }
  0x61   :  { %755 = vmatmul.bf16.gmra.mxu0 %v3092_v54  ;;  %1528 = vmatpush.bf16.msra.mxu3 %v4758_v15  ;;  %v310_v54 = vunpack.c.h.b16 %v165_v45 }
  0x62   :  { %798 = vmatmul.bf16.gmra.mxu1 %v3096_v55  ;;  %v357_v55 = vpack.c.b16 %v308_v52, %v308_v52 }
  0x63   :  { %841 = vmatmul.bf16.gmra.mxu2 %v3100_v11  ;;  %v358_v11 = vpack.c.b16 %v309_v53, %v309_v53  ;;  %1441 = vmatpush.bf16.msra.mxu1 %v4481_v26  ;;  %v4085_v26 = vld [vmem:[%s6484_s0 + $0x14] sm:$0xf] }
  0x64   :  { %884 = vmatmul.bf16.gmra.mxu3 %v3104_v58  ;;  %v359_v58 = vpack.c.b16 %v310_v54, %v310_v54  ;;  %v3000_v36 = vor.u32 %v4085_v26, %v2997_v19  ;;  %v4103_v26 = vld [vmem:[%s6484_s0 + $0xa0] sm:$0xf0]  ;;  %v3462_v19 = vld [vmem:[%s6484_s0 + $0x1dc] sm:$0xf] }
  0x67   :  { %1442 = vmatpush.bf16.msra.mxu1 %v4501_v30  ;;  %v3003_v30 = vld [vmem:[%s6484_s0 + $0x18] sm:$0xf] }
  0x68   :  { %v3004_v37 = vor.u32 %v4089_v61, %v3003_v30  ;;  %v4142_v30 = vld [vmem:[%s6484_s0 + $0x1f4] sm:$0xf0] }
  0x71   :  { %760 = vmatmul.bf16.gmra.mxu0 %v3120_v27  ;;  %v4850_v27 = vld [vmem:[%s6483_s2] ss:$0 sm:$0xff] }
  0x72   :  { %803 = vmatmul.bf16.gmra.mxu1 %v3124_v42  ;;  %v3434_v42 = vld [vmem:[%s6484_s0 + $0x1a4] sm:$0xf] }
  0x73   :  { %846 = vmatmul.bf16.gmra.mxu2 %v3128_v43  ;;  %v4135_v43 = vld [vmem:[%s6484_s0 + $0x1bc] sm:$0xf0] }
  0x74   :  { %889 = vmatmul.bf16.gmra.mxu3 %v3132_v31  ;;  %v3435_v53 = vor.u32 %v4135_v43, %v3434_v42 }
  0x81   :  { %765 = vmatmul.bf16.gmra.mxu0 %v356_v14 }
  0x82   :  { %808 = vmatmul.bf16.gmra.mxu1 %v357_v55 }
  0x83   :  { %851 = vmatmul.bf16.gmra.mxu2 %v358_v11 }
  0x84   :  { %894 = vmatmul.bf16.gmra.mxu3 %v359_v58 }
  0x91   :  { %907 = vmatmul.bf16.vlgmr.msrb.gmra.mxu0 %v2996_v32 }
  0x92   :  { %950 = vmatmul.bf16.vlgmr.msrb.gmra.mxu1 %v3000_v36  ;;  %1564 = vmatpush.bf16.msrb.mxu0 %v4553_v46 }
  0x93   :  { %3345 = vmatmul.msk.bf16.vlgmr.msrb.gmra.mxu2 %vm705_vm0, %v3004_v37  ;;  %1613 = vmatpush.bf16.msrb.mxu1 %v4539_v40  ;;  %v3031_v40 = vld [vmem:[%s6484_s0 + $0x50] sm:$0xf] }
  0x94   :  { %1357 = vmatmul.bf16.vlgmr.msrb.gmra.mxu3 %v3407_v38  ;;  %1984 = vmatpush.bf16.msrb.mxu2 %v4327_v0  ;;  %v3023_v0 = vld [vmem:[%s6484_s0 + $0x48] sm:$0xf] }
  0x95   :  { %2027 = vmatpush.bf16.msrb.mxu3 %v4332_v1  ;;  %v4095_v1 = vld [vmem:[%s6484_s0 + $0x60] sm:$0xf0] }
  0x96   :  { %1565 = vmatpush.bf16.msrb.mxu0 %v4567_v48  ;;  %v3024_v31 = vor.u32 %v4095_v1, %v3023_v0  ;;  %v3463_v1 = vor.u32 %v4142_v30, %v3462_v19 }
  0x97   :  { %1614 = vmatpush.bf16.msrb.mxu1 %v4625_v33  ;;  %v4096_v33 = vld [vmem:[%s6484_s0 + $0x68] sm:$0xf0] }
  0x98   :  { %1985 = vmatpush.bf16.msrb.mxu2 %v4349_v4  ;;  %v4092_v4 = vld [vmem:[%s6484_s0 + $0x4c] sm:$0xf]  ;;  %v3032_v52 = vor.u32 %v4096_v33, %v3031_v40 }
  0x99   :  { %2028 = vmatpush.bf16.msrb.mxu3 %v4354_v5  ;;  %v3025_v5 = vld [vmem:[%s6484_s0 + $0x64] sm:$0xf0] }
  0x9a   :  { %1566 = vmatpush.bf16.msrb.mxu0 %v4580_v50  ;;  %v3028_v44 = vor.u32 %v4092_v4, %v3025_v5 }
  0x9c   :  { %1986 = vmatpush.bf16.msrb.mxu2 %v4373_v8 }
  0x9d   :  { %2029 = vmatpush.bf16.msrb.mxu3 %v4378_v9 }
  0x9e   :  { %v736_v45 = vpop.f32.mrf.mxu0  ;;  %1567 = vmatpush.bf16.msrb.mxu0 %v4617_v60 }
  0x9f   :  { %v779_v10 = vpop.f32.mrf.mxu1  ;;  %v737_v54 = vadd.f32 %v4850_v27, %v736_v45  ;;  %v4109_v45 = vld [vmem:[%s6484_s0 + $0xd0] sm:$0xf0] }
  0xa0   :  { %1987 = vmatpush.bf16.msrb.mxu2 %v4397_v12 }
  0xa1   :  { %2030 = vmatpush.bf16.msrb.mxu3 %v4402_v13  ;;  %v780_v14 = vadd.f32 %v779_v10, %v737_v54  ;;  %912 = vmatmul.bf16.gmra.mxu0 %v3024_v31  ;;  %v4106_v10 = vld [vmem:[%s6484_s0 + $0xbc] sm:$0xf] }
  0xa2   :  { %955 = vmatmul.bf16.gmra.mxu1 %v3028_v44  ;;  %1568 = vmatpush.bf16.msrb.mxu0 %v4635_v35  ;;  %v4110_v54 = vld [vmem:[%s6484_s0 + $0xd8] sm:$0xf0] }
  0xa3   :  { %3346 = vmatmul.msk.bf16.gmra.mxu2 %vm705_vm0, %v3032_v52  ;;  %v3081_v52 = vld [vmem:[%s6484_s0 + $0xd4] sm:$0xf0] }
  0xa4   :  { %1362 = vmatmul.bf16.gmra.mxu3 %v3435_v53  ;;  %1988 = vmatpush.bf16.msrb.mxu2 %v4421_v16  ;;  %v3087_v53 = vld [vmem:[%s6484_s0 + $0xc0] sm:$0xf] }
  0xa5   :  { %2031 = vmatpush.bf16.msrb.mxu3 %v4426_v17  ;;  %v3051_v17 = vld [vmem:[%s6484_s0 + $0x80] sm:$0xf] }
  0xa6   :  { %v822_v8 = vpop.f32.mrf.mxu2  ;;  %v738_v12 = vpop.f32.mrf.mxu0  ;;  %1569 = vmatpush.bf16.msrb.mxu0 %v4680_v57  ;;  %v3052_v63 = vor.u32 %v4102_v18, %v3051_v17  ;;  %v3088_v18 = vor.u32 %v4110_v54, %v3087_v53 }
  0xa7   :  { %v865_v9 = vpop.f32.mrf.mxu3  ;;  %v823_v55 = vadd.f32 %v822_v8, %v780_v14  ;;  %v781_v11 = vpop.f32.mrf.mxu1  ;;  %v739_v58 = vadd.f32 %v4850_v27, %v738_v12  ;;  %v3490_v14 = vld [vmem:[%s6484_s0 + $0x214] sm:$0xf]  ;;  %v4149_v8 = vld [vmem:[%s6484_s0 + $0x22c] sm:$0xf0] }
  0xa8   :  { %1989 = vmatpush.bf16.msrb.mxu2 %v4445_v20  ;;  %v3053_v20 = vld [vmem:[%s6484_s0 + $0x9c] sm:$0xf0] }
  0xa9   :  { %v4890_v13 = vadd.f32 %v865_v9, %v823_v55  ;;  %2032 = vmatpush.bf16.msrb.mxu3 %v4450_v21  ;;  %v782_v16 = vadd.f32 %v781_v11, %v739_v58  ;;  %v3059_v21 = vld [vmem:[%s6484_s0 + $0x88] sm:$0xf]  ;;  %v3056_v32 = vor.u32 %v4099_v22, %v3053_v20  ;;  %v3084_v11 = vor.u32 %v4106_v10, %v3081_v52 }
  0xaa   :  { %1570 = vmatpush.bf16.msrb.mxu0 %v4723_v23  ;;  %v3060_v0 = vor.u32 %v4103_v26, %v3059_v21  ;;  %v3491_v22 = vor.u32 %v4149_v8, %v3490_v14 }
  0xac   :  { %1990 = vmatpush.bf16.msrb.mxu2 %v4469_v24 }
  0xad   :  { %2033 = vmatpush.bf16.msrb.mxu3 %v4474_v25 }
  0xae   :  { %v824_v61 = vpop.f32.mrf.mxu2  ;;  %v741_v37 = vpop.f32.mrf.mxu0  ;;  %1571 = vmatpush.bf16.msrb.mxu0 %v4763_v59 }
  0xaf   :  { %v867_v62 = vpop.f32.mrf.mxu3  ;;  %v825_v36 = vadd.f32 %v824_v61, %v782_v16  ;;  %v784_v38 = vpop.f32.mrf.mxu1  ;;  %v742_v4 = vadd.f32 %v4850_v27, %v741_v37 }
  0xb0   :  { %1991 = vmatpush.bf16.msrb.mxu2 %v4491_v28 }
  0xb1   :  { %v4923_v24 = vadd.f32 %v867_v62, %v825_v36  ;;  %2034 = vmatpush.bf16.msrb.mxu3 %v4496_v29  ;;  %v785_v25 = vadd.f32 %v784_v38, %v742_v4  ;;  %917 = vmatmul.bf16.gmra.mxu0 %v3052_v63  ;;  %v3079_v29 = vld [vmem:[%s6484_s0 + $0xb8] sm:$0xf]  ;;  %v3107_v38 = vld [vmem:[%s6484_s0 + $0xf0] sm:$0xf] }
  0xb2   :  { %960 = vmatmul.bf16.gmra.mxu1 %v3056_v32  ;;  %v3080_v12 = vor.u32 %v4109_v45, %v3079_v29  ;;  %v3109_v4 = vld [vmem:[%s6484_s0 + $0x10c] sm:$0xf0] }
  0xb3   :  { %3347 = vmatmul.msk.bf16.gmra.mxu2 %vm705_vm0, %v3060_v0  ;;  %v4116_v0 = vld [vmem:[%s6484_s0 + $0x108] sm:$0xf0] }
  0xb4   :  { %1367 = vmatmul.bf16.gmra.mxu3 %v3463_v1  ;;  %v4113_v1 = vld [vmem:[%s6484_s0 + $0xf4] sm:$0xf] }
  0xb6   :  { %v827_v5 = vpop.f32.mrf.mxu2  ;;  %v743_v42 = vpop.f32.mrf.mxu0 }
  0xb7   :  { %v870_v40 = vpop.f32.mrf.mxu3  ;;  %v828_v33 = vadd.f32 %v827_v5, %v785_v25  ;;  %v786_v43 = vpop.f32.mrf.mxu1  ;;  %v744_v31 = vadd.f32 %v4850_v27, %v743_v42  ;;  %v3115_v25 = vld [vmem:[%s6484_s0 + $0xf8] sm:$0xf]  ;;  %v4117_v5 = vld [vmem:[%s6484_s0 + $0x110] sm:$0xf0] }
  0xb8   :  { %v3116_v52 = vor.u32 %v4117_v5, %v3115_v25 }
  0xb9   :  { %v4928_v28 = vadd.f32 %v870_v40, %v828_v33  ;;  %v787_v44 = vadd.f32 %v786_v43, %v744_v31  ;;  %v3518_v40 = vld [vmem:[%s6484_s0 + $0x24c] sm:$0xf]  ;;  %v4156_v33 = vld [vmem:[%s6484_s0 + $0x264] sm:$0xf0]  ;;  %v3108_v31 = vor.u32 %v4116_v0, %v3107_v38 }
  0xba   :  { %v3519_v53 = vor.u32 %v4156_v33, %v3518_v40 }
  0xbe   :  { %v829_v9 = vpop.f32.mrf.mxu2  ;;  %v746_v16 = vpop.f32.mrf.mxu0 }
  0xbf   :  { %v872_v55 = vpop.f32.mrf.mxu3  ;;  %v830_v58 = vadd.f32 %v829_v9, %v787_v44  ;;  %v789_v17 = vpop.f32.mrf.mxu1  ;;  %v747_v20 = vadd.f32 %v4850_v27, %v746_v16  ;;  %v3112_v44 = vor.u32 %v4113_v1, %v3109_v4 }
  0xc1   :  { %v4955_v21 = vadd.f32 %v872_v55, %v830_v58  ;;  %v790_v26 = vadd.f32 %v789_v17, %v747_v20  ;;  %922 = vmatmul.bf16.gmra.mxu0 %v3080_v12  ;;  %v4123_v20 = vld [vmem:[%s6484_s0 + $0x140] sm:$0xf0] }
  0xc2   :  { %965 = vmatmul.bf16.gmra.mxu1 %v3084_v11 }
  0xc3   :  { %3348 = vmatmul.msk.bf16.gmra.mxu2 %vm705_vm0, %v3088_v18 }
  0xc4   :  { %1372 = vmatmul.bf16.gmra.mxu3 %v3491_v22  ;;  %v3135_v22 = vld [vmem:[%s6484_s0 + $0x128] sm:$0xf] }
  0xc5   :  { %v3136_v38 = vor.u32 %v4123_v20, %v3135_v22 }
  0xc6   :  { %v832_v19 = vpop.f32.mrf.mxu2  ;;  %v748_v62 = vpop.f32.mrf.mxu0 }
  0xc7   :  { %v875_v30 = vpop.f32.mrf.mxu3  ;;  %v833_v61 = vadd.f32 %v832_v19, %v790_v26  ;;  %v791_v63 = vpop.f32.mrf.mxu1  ;;  %v749_v32 = vadd.f32 %v4850_v27, %v748_v62  ;;  %v4120_v26 = vld [vmem:[%s6484_s0 + $0x12c] sm:$0xf]  ;;  %v3137_v19 = vld [vmem:[%s6484_s0 + $0x144] sm:$0xf0]  ;;  %v3546_v62 = vld [vmem:[%s6484_s0 + $0x284] sm:$0xf] }
  0xc8   :  { %v3140_v0 = vor.u32 %v4120_v26, %v3137_v19 }
  0xc9   :  { %v4959_v36 = vadd.f32 %v875_v30, %v833_v61  ;;  %v792_v37 = vadd.f32 %v791_v63, %v749_v32  ;;  %v3143_v30 = vld [vmem:[%s6484_s0 + $0x130] sm:$0xf]  ;;  %v4124_v61 = vld [vmem:[%s6484_s0 + $0x148] sm:$0xf0]  ;;  %v4163_v63 = vld [vmem:[%s6484_s0 + $0x29c] sm:$0xf0] }
  0xca   :  { %v3144_v5 = vor.u32 %v4124_v61, %v3143_v30  ;;  %v3547_v40 = vor.u32 %v4163_v63, %v3546_v62 }
  0xce   :  { %v834_v42 = vpop.f32.mrf.mxu2  ;;  %v751_v45 = vpop.f32.mrf.mxu0 }
  0xcf   :  { %v877_v43 = vpop.f32.mrf.mxu3  ;;  %v835_v29 = vadd.f32 %v834_v42, %v792_v37  ;;  %v794_v10 = vpop.f32.mrf.mxu1  ;;  %v752_v54 = vadd.f32 %v4850_v27, %v751_v45 }
  0xd1   :  { %v4986_v14 = vadd.f32 %v877_v43, %v835_v29  ;;  %v795_v8 = vadd.f32 %v794_v10, %v752_v54  ;;  %927 = vmatmul.bf16.gmra.mxu0 %v3108_v31  ;;  %v167_v54 = vld [vmem:[%s6484_s0 + $0x168] sm:$0xf] }
  0xd2   :  { %970 = vmatmul.bf16.gmra.mxu1 %v3112_v44 }
  0xd3   :  { %3349 = vmatmul.msk.bf16.gmra.mxu2 %vm705_vm0, %v3116_v52  ;;  %v166_v52 = vld [vmem:[%s6484_s0 + $0x160] sm:$0xff] }
  0xd4   :  { %1377 = vmatmul.bf16.gmra.mxu3 %v3519_v53 }
  0xd6   :  { %v837_v9 = vpop.f32.mrf.mxu2  ;;  %v753_v11 = vpop.f32.mrf.mxu0 }
  0xd7   :  { %v880_v55 = vpop.f32.mrf.mxu3  ;;  %v838_v12 = vadd.f32 %v837_v9, %v795_v8  ;;  %v796_v58 = vpop.f32.mrf.mxu1  ;;  %v754_v16 = vadd.f32 %v4850_v27, %v753_v11  ;;  %v5030_v8 = vld [vmem:[%s6484_s0 + $0x2bc] sm:$0xff]  ;;  %v312_v11 = vunpack.c.h.b16 %v166_v52 }
  0xd9   :  { %v4990_v17 = vadd.f32 %v880_v55, %v838_v12  ;;  %v797_v18 = vadd.f32 %v796_v58, %v754_v16  ;;  %v311_v12 = vunpack.c.l.b16 %v166_v52  ;;  %v313_v58 = vunpack.c.l.b16 %v167_v54  ;;  %v3416_v52 = vld [vmem:[%s6484_s0 + $0x190] sm:$0xf0]  ;;  %v4130_v54 = vld [vmem:[%s6484_s0 + $0x194] sm:$0xf0] }
  0xda   :  { %v1230_v16 = vunpack.c.l.b16 %v5030_v8  ;;  %v361_v26 = vpack.c.b16 %v312_v11, %v312_v11 }
  0xdb   :  { %v360_v20 = vpack.c.b16 %v311_v12, %v311_v12  ;;  %v362_v62 = vpack.c.b16 %v313_v58, %v313_v58 }
  0xdc   :  { %v1279_v63 = vpack.c.b16 %v1230_v16, %v1230_v16 }
  0xde   :  { %v839_v32 = vpop.f32.mrf.mxu2  ;;  %v756_v4 = vpop.f32.mrf.mxu0 }
  0xdf   :  { %v882_v37 = vpop.f32.mrf.mxu3  ;;  %v840_v1 = vadd.f32 %v839_v32, %v797_v18  ;;  %v799_v25 = vpop.f32.mrf.mxu1  ;;  %v757_v33 = vadd.f32 %v4850_v27, %v756_v4 }
  0xe1   :  { %v5017_v42 = vadd.f32 %v882_v37, %v840_v1  ;;  %v800_v43 = vadd.f32 %v799_v25, %v757_v33  ;;  %932 = vmatmul.bf16.gmra.mxu0 %v3136_v38 }
  0xe2   :  { %975 = vmatmul.bf16.gmra.mxu1 %v3140_v0 }
  0xe3   :  { %3350 = vmatmul.msk.bf16.gmra.mxu2 %vm705_vm0, %v3144_v5 }
  0xe4   :  { %1382 = vmatmul.bf16.gmra.mxu3 %v3547_v40 }
  0xe6   :  { %v842_v31 = vpop.f32.mrf.mxu2  ;;  %v758_v45 = vpop.f32.mrf.mxu0 }
  0xe7   :  { %v885_v44 = vpop.f32.mrf.mxu3  ;;  %v843_v29 = vadd.f32 %v842_v31, %v800_v43  ;;  %v801_v10 = vpop.f32.mrf.mxu1  ;;  %v759_v53 = vadd.f32 %v4850_v27, %v758_v45  ;;  %v4125_v31 = vld [vmem:[%s6484_s0 + $0x170] sm:$0xf] }
  0xe8   :  { %v4129_v45 = vld [vmem:[%s6484_s0 + $0x18c] sm:$0xf0] }
  0xe9   :  { %v5032_v9 = vadd.f32 %v885_v44, %v843_v29  ;;  %v802_v55 = vadd.f32 %v801_v10, %v759_v53  ;;  %v3408_v44 = vld [vmem:[%s6484_s0 + $0x188] sm:$0xf0]  ;;  %v3414_v29 = vld [vmem:[%s6484_s0 + $0x174] sm:$0xf]  ;;  %v4126_v10 = vld [vmem:[%s6484_s0 + $0x178] sm:$0xf] }
  0xea   :  { %v3422_v53 = vld [vmem:[%s6484_s0 + $0x17c] sm:$0xf]  ;;  %v3411_v11 = vor.u32 %v4125_v31, %v3408_v44  ;;  %v3415_v58 = vor.u32 %v4129_v45, %v3414_v29 }
  0xee   :  { %v844_v18 = vpop.f32.mrf.mxu2  ;;  %v761_v30 = vpop.f32.mrf.mxu0 }
  0xef   :  { %v887_v22 = vpop.f32.mrf.mxu3  ;;  %v845_v19 = vadd.f32 %v844_v18, %v802_v55  ;;  %v804_v61 = vpop.f32.mrf.mxu1  ;;  %v762_v32 = vadd.f32 %v4850_v27, %v761_v30 }
  0xf1   :  { %v5036_v37 = vadd.f32 %v887_v22, %v845_v19  ;;  %v805_v38 = vadd.f32 %v804_v61, %v762_v32  ;;  %937 = vmatmul.bf16.gmra.mxu0 %v360_v20  ;;  %v3419_v20 = vor.u32 %v4126_v10, %v3416_v52  ;;  %v5129_v52 = vld [vmem:[%s6482_s1 + $0xe0] sm:$0xff] }
  0xf2   :  { %980 = vmatmul.bf16.gmra.mxu1 %v361_v26  ;;  %v3423_v26 = vor.u32 %v4130_v54, %v3422_v53 }
  0xf3   :  { %3351 = vmatmul.msk.bf16.gmra.mxu2 %vm705_vm0, %v362_v62 }
  0xf4   :  { %1387 = vmatmul.bf16.gmra.mxu3 %v1279_v63 }
  0xf6   :  { %v847_v0 = vpop.f32.mrf.mxu2  ;;  %v763_v25 = vpop.f32.mrf.mxu0 }
  0xf7   :  { %v890_v1 = vpop.f32.mrf.mxu3  ;;  %v848_v4 = vadd.f32 %v847_v0, %v805_v38  ;;  %v806_v5 = vpop.f32.mrf.mxu1  ;;  %v764_v40 = vadd.f32 %v4850_v27, %v763_v25  ;;  %v5114_v25 = vld [vmem:[%s6482_s1 + $0xe8] sm:$0xff] }
  0xf9   :  { %v5040_v33 = vadd.f32 %v890_v1, %v848_v4  ;;  %v807_v43 = vadd.f32 %v806_v5, %v764_v40  ;;  %v5107_v4 = vld [vmem:[%s6482_s1 + $0xa8] sm:$0xff] }
  0xfe   :  { %v849_v55 = vpop.f32.mrf.mxu2  ;;  %v766_v18 = vpop.f32.mrf.mxu0 }
  0xff   :  { %v892_v12 = vpop.f32.mrf.mxu3  ;;  %v850_v16 = vadd.f32 %v849_v55, %v807_v43  ;;  %v809_v22 = vpop.f32.mrf.mxu1  ;;  %v767_v19 = vadd.f32 %v4850_v27, %v766_v18  ;;  %v4143_v18 = vld [vmem:[%s6484_s0 + $0x1fc] sm:$0xf0] }
 0x101   :  { %v5067_v30 = vadd.f32 %v892_v12, %v850_v16  ;;  %v810_v61 = vadd.f32 %v809_v22, %v767_v19  ;;  %1400 = vmatmul.bf16.vlgmr.msra.gmra.mxu0 %v3411_v11  ;;  %v4140_v22 = vld [vmem:[%s6484_s0 + $0x1e8] sm:$0xf] }
 0x102   :  { %1443 = vmatmul.bf16.vlgmr.msra.gmra.mxu1 %v3415_v58  ;;  %2070 = vmatpush.bf16.msra.mxu0 %v4337_v2  ;;  %v4132_v2 = vld [vmem:[%s6484_s0 + $0x1a8] sm:$0xf]  ;;  %v5162_v58 = vld [vmem:[%s6482_s1 + $0xd0] sm:$0xff] }
 0x103   :  { %1486 = vmatmul.bf16.vlgmr.msra.gmra.mxu2 %v3419_v20  ;;  %2113 = vmatpush.bf16.msra.mxu1 %v4342_v3  ;;  %v3436_v3 = vld [vmem:[%s6484_s0 + $0x1c0] sm:$0xf0]  ;;  %v4144_v19 = vld [vmem:[%s6484_s0 + $0x204] sm:$0xf0] }
 0x104   :  { %1529 = vmatmul.bf16.vlgmr.msra.gmra.mxu3 %v3423_v26  ;;  %2156 = vmatpush.bf16.msra.mxu2 %v4544_v41  ;;  %v3442_v41 = vld [vmem:[%s6484_s0 + $0x1ac] sm:$0xf]  ;;  %v3439_v43 = vor.u32 %v4132_v2, %v3436_v3  ;;  %v3472_v20 = vld [vmem:[%s6484_s0 + $0x200] sm:$0xf0] }
 0x105   :  { %2199 = vmatpush.bf16.msra.mxu3 %v4553_v46  ;;  %v3444_v46 = vld [vmem:[%s6484_s0 + $0x1c8] sm:$0xf0] }
 0x106   :  { %v852_v62 = vpop.f32.mrf.mxu2  ;;  %v768_v38 = vpop.f32.mrf.mxu0  ;;  %2071 = vmatpush.bf16.msra.mxu0 %v4361_v6  ;;  %v4136_v6 = vld [vmem:[%s6484_s0 + $0x1c4] sm:$0xf0]  ;;  %v3478_v26 = vld [vmem:[%s6484_s0 + $0x1ec] sm:$0xf] }
 0x107   :  { %v895_v63 = vpop.f32.mrf.mxu3  ;;  %v853_v32 = vadd.f32 %v852_v62, %v810_v61  ;;  %v811_v0 = vpop.f32.mrf.mxu1  ;;  %2114 = vmatpush.bf16.msra.mxu1 %v4366_v7  ;;  %v4133_v7 = vld [vmem:[%s6484_s0 + $0x1b0] sm:$0xf]  ;;  %v5193_v61 = vld [vmem:[%s6482_s1 + $0x88] sm:$0xff] }
 0x108   :  { %2157 = vmatpush.bf16.msra.mxu2 %v4560_v47  ;;  %v3450_v47 = vld [vmem:[%s6484_s0 + $0x1b4] sm:$0xf]  ;;  %v3447_v29 = vor.u32 %v4133_v7, %v3444_v46  ;;  %v5200_v62 = vld [vmem:[%s6482_s1 + $0xc8] sm:$0xff]  ;;  %v5212_v7 = vld [vmem:[%s6482_s1 + $0x80] sm:$0xff] }
 0x109   :  { %v5075_v1 = vadd.f32 %v895_v63, %v853_v32  ;;  %2200 = vmatpush.bf16.msra.mxu3 %v4567_v48  ;;  %v4137_v48 = vld [vmem:[%s6484_s0 + $0x1cc] sm:$0xf0]  ;;  %v5219_v46 = vld [vmem:[%s6482_s1 + $0xc0] sm:$0xff] }
 0x10a   :  { %2072 = vmatpush.bf16.msra.mxu0 %v5107_v4  ;;  %v3451_v45 = vor.u32 %v4137_v48, %v3450_v47 }
 0x10b   :  { %2115 = vmatpush.bf16.msra.mxu1 %v5114_v25 }
 0x10c   :  { %2158 = vmatpush.bf16.msra.mxu2 %v4573_v49  ;;  %v3443_v49 = vor.u32 %v4136_v6, %v3442_v41  ;;  %v3475_v41 = vor.u32 %v4140_v22, %v3472_v20  ;;  %v3479_v6 = vor.u32 %v4144_v19, %v3478_v26 }
 0x10d   :  { %2201 = vmatpush.bf16.msra.mxu3 %v4580_v50  ;;  %v5122_v50 = vld [vmem:[%s6482_s1 + $0xa0] sm:$0xff] }
 0x10e   :  { %v854_v5 = vpop.f32.mrf.mxu2  ;;  %v908_v31 = vpop.f32.mrf.mxu0  ;;  %2073 = vmatpush.bf16.msra.mxu0 %v5122_v50 }
 0x10f   :  { %v897_v40 = vpop.f32.mrf.mxu3  ;;  %v951_v44 = vpop.f32.mrf.mxu1  ;;  %v909_v10 = vadd.f32 %v908_v31, %v4890_v13  ;;  %2116 = vmatpush.bf16.msra.mxu1 %v5129_v52  ;;  %v3492_v31 = vld [vmem:[%s6484_s0 + $0x230] sm:$0xf0] }
 0x110   :  { %2159 = vmatpush.bf16.msra.mxu2 %v4586_v51  ;;  %v5136_v51 = vld [vmem:[%s6482_s1 + $0x98] sm:$0xff] }
 0x111   :  { %2202 = vmatpush.bf16.msra.mxu3 %v4617_v60  ;;  %v952_v53 = vadd.f32 %v951_v44, %v909_v10  ;;  %1405 = vmatmul.bf16.gmra.mxu0 %v3439_v43  ;;  %v5143_v60 = vld [vmem:[%s6482_s1 + $0xd8] sm:$0xff]  ;;  %v3506_v10 = vld [vmem:[%s6484_s0 + $0x224] sm:$0xf] }
 0x112   :  { %1448 = vmatmul.bf16.gmra.mxu1 %v3443_v49  ;;  %2074 = vmatpush.bf16.msra.mxu0 %v5136_v51  ;;  %v4146_v49 = vld [vmem:[%s6484_s0 + $0x218] sm:$0xf]  ;;  %v3498_v44 = vld [vmem:[%s6484_s0 + $0x21c] sm:$0xf] }
 0x113   :  { %1491 = vmatmul.bf16.gmra.mxu2 %v3447_v29  ;;  %2117 = vmatpush.bf16.msra.mxu1 %v5143_v60  ;;  %v4150_v29 = vld [vmem:[%s6484_s0 + $0x234] sm:$0xf0] }
 0x114   :  { %1534 = vmatmul.bf16.gmra.mxu3 %v3451_v45  ;;  %2160 = vmatpush.bf16.msra.mxu2 %v4630_v34  ;;  %v3500_v45 = vld [vmem:[%s6484_s0 + $0x238] sm:$0xf0] }
 0x115   :  { %2203 = vmatpush.bf16.msra.mxu3 %v4635_v35  ;;  %v5155_v35 = vld [vmem:[%s6482_s1 + $0x90] sm:$0xff] }
 0x116   :  { %v994_v13 = vpop.f32.mrf.mxu2  ;;  %v910_v55 = vpop.f32.mrf.mxu0  ;;  %2075 = vmatpush.bf16.msra.mxu0 %v5155_v35 }
 0x117   :  { %v5146_v54 = vpop.f32.mrf.mxu3  ;;  %v5148_v34 = vadd.f32 %v994_v13, %v952_v53  ;;  %v953_v12 = vpop.f32.mrf.mxu1  ;;  %v911_v11 = vadd.f32 %v910_v55, %v4923_v24  ;;  %2118 = vmatpush.bf16.msra.mxu1 %v5162_v58  ;;  %v3464_v24 = vld [vmem:[%s6484_s0 + $0x1f8] sm:$0xf0]  ;;  %v4151_v53 = vld [vmem:[%s6484_s0 + $0x23c] sm:$0xf0] }
 0x118   :  { %2161 = vmatpush.bf16.msra.mxu2 %v4675_v56  ;;  %v4139_v56 = vld [vmem:[%s6484_s0 + $0x1e0] sm:$0xf] }
 0x119   :  { %2204 = vmatpush.bf16.msra.mxu3 %v4680_v57  ;;  %v954_v16 = vadd.f32 %v953_v12, %v911_v11  ;;  %v3470_v57 = vld [vmem:[%s6484_s0 + $0x1e4] sm:$0xf]  ;;  %v3495_v12 = vor.u32 %v4146_v49, %v3492_v31  ;;  %v3499_v11 = vor.u32 %v4150_v29, %v3498_v44 }
 0x11a   :  { %2076 = vmatpush.bf16.msra.mxu0 %v5193_v61  ;;  %v3471_v38 = vor.u32 %v4143_v18, %v3470_v57  ;;  %v3507_v18 = vor.u32 %v4151_v53, %v3506_v10 }
 0x11b   :  { %2119 = vmatpush.bf16.msra.mxu1 %v5200_v62 }
 0x11c   :  { %2162 = vmatpush.bf16.msra.mxu2 %v4718_v39  ;;  %v3467_v39 = vor.u32 %v4139_v56, %v3464_v24 }
 0x11d   :  { %2205 = vmatpush.bf16.msra.mxu3 %v4723_v23 }
 0x11e   :  { %v996_v63 = vpop.f32.mrf.mxu2  ;;  %v913_v2 = vpop.f32.mrf.mxu0  ;;  %2077 = vmatpush.bf16.msra.mxu0 %v5212_v7 }
 0x11f   :  { %v5203_v32 = vpop.f32.mrf.mxu3  ;;  %v5205_v0 = vadd.f32 %v996_v63, %v954_v16  ;;  %v956_v3 = vpop.f32.mrf.mxu1  ;;  %v914_v23 = vadd.f32 %v913_v2, %v4928_v28  ;;  %2120 = vmatpush.bf16.msra.mxu1 %v5219_v46 }
 0x120   :  { %2163 = vmatpush.bf16.msra.mxu2 %v4758_v15 }
 0x121   :  { %2206 = vmatpush.bf16.msra.mxu3 %v4763_v59  ;;  %v957_v47 = vadd.f32 %v956_v3, %v914_v23  ;;  %1410 = vmatmul.bf16.gmra.mxu0 %v3467_v39  ;;  %v4157_v23 = vld [vmem:[%s6484_s0 + $0x26c] sm:$0xf0] }
 0x122   :  { %1453 = vmatmul.bf16.gmra.mxu1 %v3471_v38 }
 0x123   :  { %1496 = vmatmul.bf16.gmra.mxu2 %v3475_v41  ;;  %v4153_v41 = vld [vmem:[%s6484_s0 + $0x250] sm:$0xf] }
 0x124   :  { %1539 = vmatmul.bf16.gmra.mxu3 %v3479_v6  ;;  %v3526_v6 = vld [vmem:[%s6484_s0 + $0x254] sm:$0xf] }
 0x125   :  { %v3527_v49 = vor.u32 %v4157_v23, %v3526_v6 }
 0x126   :  { %v999_v15 = vpop.f32.mrf.mxu2  ;;  %v915_v5 = vpop.f32.mrf.mxu0 }
 0x127   :  { %v5222_v28 = vpop.f32.mrf.mxu3  ;;  %v5224_v48 = vadd.f32 %v999_v15, %v957_v47  ;;  %v958_v40 = vpop.f32.mrf.mxu1  ;;  %v916_v59 = vadd.f32 %v915_v5, %v4955_v21  ;;  %v4147_v21 = vld [vmem:[%s6484_s0 + $0x220] sm:$0xf]  ;;  %v3528_v47 = vld [vmem:[%s6484_s0 + $0x270] sm:$0xf0]  ;;  %v3534_v15 = vld [vmem:[%s6484_s0 + $0x25c] sm:$0xf] }
 0x128   :  { %v3503_v57 = vor.u32 %v4147_v21, %v3500_v45  ;;  %v4158_v5 = vld [vmem:[%s6484_s0 + $0x274] sm:$0xf0] }
 0x129   :  { %v959_v43 = vadd.f32 %v958_v40, %v916_v59  ;;  %v3535_v45 = vor.u32 %v4158_v5, %v3534_v15 }
 0x12e   :  { %v1001_v13 = vpop.f32.mrf.mxu2  ;;  %v918_v56 = vpop.f32.mrf.mxu0 }
 0x12f   :  { %v5251_v55 = vpop.f32.mrf.mxu3  ;;  %v5253_v16 = vadd.f32 %v1001_v13, %v959_v43  ;;  %v961_v24 = vpop.f32.mrf.mxu1  ;;  %v919_v22 = vadd.f32 %v918_v56, %v4959_v36  ;;  %v3520_v36 = vld [vmem:[%s6484_s0 + $0x268] sm:$0xf0] }
 0x130   :  { %v3523_v43 = vor.u32 %v4153_v41, %v3520_v36 }
 0x131   :  { %v962_v20 = vadd.f32 %v961_v24, %v919_v22  ;;  %1415 = vmatmul.bf16.gmra.mxu0 %v3495_v12  ;;  %v4160_v22 = vld [vmem:[%s6484_s0 + $0x288] sm:$0xf] }
 0x132   :  { %1458 = vmatmul.bf16.gmra.mxu1 %v3499_v11 }
 0x133   :  { %1501 = vmatmul.bf16.gmra.mxu2 %v3503_v57 }
 0x134   :  { %1544 = vmatmul.bf16.gmra.mxu3 %v3507_v18 }
 0x136   :  { %v1004_v26 = vpop.f32.mrf.mxu2  ;;  %v920_v39 = vpop.f32.mrf.mxu0 }
 0x137   :  { %v5256_v19 = vpop.f32.mrf.mxu3  ;;  %v5258_v63 = vadd.f32 %v1004_v26, %v962_v20  ;;  %v963_v38 = vpop.f32.mrf.mxu1  ;;  %v921_v2 = vadd.f32 %v920_v39, %v4986_v14  ;;  %v4154_v14 = vld [vmem:[%s6484_s0 + $0x258] sm:$0xf]  ;;  %v3554_v20 = vld [vmem:[%s6484_s0 + $0x28c] sm:$0xf]  ;;  %v4164_v26 = vld [vmem:[%s6484_s0 + $0x2a4] sm:$0xf0] }
 0x138   :  { %v3531_v21 = vor.u32 %v4154_v14, %v3528_v47  ;;  %v3556_v39 = vld [vmem:[%s6484_s0 + $0x2a8] sm:$0xf0]  ;;  %v3555_v6 = vor.u32 %v4164_v26, %v3554_v20 }
 0x139   :  { %v964_v3 = vadd.f32 %v963_v38, %v921_v2  ;;  %v3562_v38 = vld [vmem:[%s6484_s0 + $0x294] sm:$0xf]  ;;  %v4165_v2 = vld [vmem:[%s6484_s0 + $0x2ac] sm:$0xf0] }
 0x13a   :  { %v3563_v5 = vor.u32 %v4165_v2, %v3562_v38 }
 0x13e   :  { %v1006_v40 = vpop.f32.mrf.mxu2  ;;  %v923_v44 = vpop.f32.mrf.mxu0 }
 0x13f   :  { %v5285_v59 = vpop.f32.mrf.mxu3  ;;  %v5287_v31 = vadd.f32 %v1006_v40, %v964_v3  ;;  %v966_v29 = vpop.f32.mrf.mxu1  ;;  %v924_v10 = vadd.f32 %v923_v44, %v4990_v17  ;;  %v3548_v17 = vld [vmem:[%s6484_s0 + $0x2a0] sm:$0xf0] }
 0x140   :  { %v3551_v36 = vor.u32 %v4160_v22, %v3548_v17 }
 0x141   :  { %v967_v53 = vadd.f32 %v966_v29, %v924_v10  ;;  %1420 = vmatmul.bf16.gmra.mxu0 %v3523_v43  ;;  %v3401_v10 = vld [vmem:[%s6484_s0 + $0x2c4] sm:$0xff] }
 0x142   :  { %1463 = vmatmul.bf16.gmra.mxu1 %v3527_v49 }
 0x143   :  { %1506 = vmatmul.bf16.gmra.mxu2 %v3531_v21 }
 0x144   :  { %1549 = vmatmul.bf16.gmra.mxu3 %v3535_v45 }
 0x146   :  { %v1009_v13 = vpop.f32.mrf.mxu2  ;;  %v925_v56 = vpop.f32.mrf.mxu0 }
 0x147   :  { %v5290_v12 = vpop.f32.mrf.mxu3  ;;  %v5292_v11 = vadd.f32 %v1009_v13, %v967_v53  ;;  %v968_v24 = vpop.f32.mrf.mxu1  ;;  %v926_v57 = vadd.f32 %v925_v56, %v5017_v42  ;;  %v4161_v42 = vld [vmem:[%s6484_s0 + $0x290] sm:$0xf]  ;;  %v1231_v56 = vunpack.c.h.b16 %v5030_v8 }
 0x148   :  { %v3559_v15 = vor.u32 %v4161_v42, %v3556_v39 }
 0x149   :  { %v969_v18 = vadd.f32 %v968_v24, %v926_v57  ;;  %v1232_v24 = vunpack.c.l.b16 %v3401_v10  ;;  %v1233_v57 = vunpack.c.h.b16 %v3401_v10  ;;  %v1280_v20 = vpack.c.b16 %v1231_v56, %v1231_v56  ;;  %v4167_v10 = vld [vmem:[%s6484_s0 + $0x2dc] sm:$0xf] }
 0x14b   :  { %v1281_v26 = vpack.c.b16 %v1232_v24, %v1232_v24  ;;  %v1282_v38 = vpack.c.b16 %v1233_v57, %v1233_v57 }
 0x14e   :  { %v1011_v3 = vpop.f32.mrf.mxu2  ;;  %v928_v14 = vpop.f32.mrf.mxu0 }
 0x14f   :  { %v5319_v41 = vpop.f32.mrf.mxu3  ;;  %v5321_v23 = vadd.f32 %v1011_v3, %v969_v18  ;;  %v971_v47 = vpop.f32.mrf.mxu1  ;;  %v929_v40 = vadd.f32 %v928_v14, %v5032_v9  ;;  %v5335_v9 = vld [vmem:[%s6484_s0 + $0x2cc] sm:$0xff] }
 0x150   :  { %v1234_v18 = vunpack.c.l.b16 %v5335_v9 }
 0x151   :  { %v972_v43 = vadd.f32 %v971_v47, %v929_v40  ;;  %1425 = vmatmul.bf16.gmra.mxu0 %v3551_v36 }
 0x152   :  { %1468 = vmatmul.bf16.gmra.mxu1 %v3555_v6  ;;  %v1283_v2 = vpack.c.b16 %v1234_v18, %v1234_v18 }
 0x153   :  { %1511 = vmatmul.bf16.gmra.mxu2 %v3559_v15 }
 0x154   :  { %1554 = vmatmul.bf16.gmra.mxu3 %v3563_v5 }
 0x156   :  { %v1014_v49 = vpop.f32.mrf.mxu2  ;;  %v930_v21 = vpop.f32.mrf.mxu0 }
 0x157   :  { %v5324_v44 = vpop.f32.mrf.mxu3  ;;  %v5326_v29 = vadd.f32 %v1014_v49, %v972_v43  ;;  %v973_v45 = vpop.f32.mrf.mxu1  ;;  %v931_v53 = vadd.f32 %v930_v21, %v5036_v37  ;;  %v4127_v43 = vld [vmem:[%s6484_s0 + $0x180] sm:$0xf]  ;;  %v3430_v49 = vld [vmem:[%s6484_s0 + $0x184] sm:$0xf] }
 0x158   :  { %v4131_v21 = vld [vmem:[%s6484_s0 + $0x19c] sm:$0xf0] }
 0x159   :  { %v974_v13 = vadd.f32 %v973_v45, %v931_v53  ;;  %v4170_v45 = vld [vmem:[%s6484_s0 + $0x2f0] sm:$0xf0]  ;;  %v3635_v53 = vld [vmem:[%s6484_s0 + $0x2f4] sm:$0xf0]  ;;  %v3431_v57 = vor.u32 %v4131_v21, %v3430_v49 }
 0x15a   :  { %v4270_v49 = vld [vmem:[%s6482_s1 + $0xb0] sm:$0xff] }
 0x15b   :  { %v4271_v21 = vld [vmem:[%s6482_s1 + $0x30] sm:$0xff] }
 0x15e   :  { %v1016_v22 = vpop.f32.mrf.mxu2  ;;  %v933_v37 = vpop.f32.mrf.mxu0 }
 0x15f   :  { %v5339_v17 = vpop.f32.mrf.mxu3  ;;  %v5341_v42 = vadd.f32 %v1016_v22, %v974_v13  ;;  %v976_v39 = vpop.f32.mrf.mxu1  ;;  %v934_v3 = vadd.f32 %v933_v37, %v5040_v33  ;;  %v3424_v33 = vld [vmem:[%s6484_s0 + $0x198] sm:$0xf0]  ;;  %v3638_v37 = vor.u32 %v4167_v10, %v3635_v53  ;;  %v4138_v53 = vld [vmem:[%s6484_s0 + $0x1d4] sm:$0xf0] }
 0x160   :  { %v3427_v24 = vor.u32 %v4127_v43, %v3424_v33  ;;  %v4268_v43 = vld [vmem:[%s6482_s1 + $0x70] sm:$0xff]  ;;  %v5404_v33 = vld [vmem:[%s6482_s1 + $0x180] sm:$0xff]  ;;  %v3458_v10 = vld [vmem:[%s6484_s0 + $0x1bc] sm:$0xf] }
 0x161   :  { %v977_v36 = vadd.f32 %v976_v39, %v934_v3  ;;  %1430 = vmatmul.bf16.gmra.mxu0 %v1280_v20  ;;  %v5385_v3 = vld [vmem:[%s6482_s1 + $0x188] sm:$0xff] }
 0x162   :  { %1473 = vmatmul.bf16.gmra.mxu1 %v1281_v26 }
 0x163   :  { %1516 = vmatmul.bf16.gmra.mxu2 %v1282_v38 }
 0x164   :  { %1559 = vmatmul.bf16.gmra.mxu3 %v1283_v2  ;;  %v4264_v2 = vld [vmem:[%s6482_s1 + $0x78] sm:$0xff] }
 0x166   :  { %v1019_v8 = vpop.f32.mrf.mxu2  ;;  %v935_v47 = vpop.f32.mrf.mxu0 }
 0x167   :  { %v5344_v6 = vpop.f32.mrf.mxu3  ;;  %v5346_v14 = vadd.f32 %v1019_v8, %v977_v36  ;;  %v978_v15 = vpop.f32.mrf.mxu1  ;;  %v936_v5 = vadd.f32 %v935_v47, %v5067_v30  ;;  %v3633_v30 = vld [vmem:[%s6484_s0 + $0x2d8] sm:$0xf] }
 0x168   :  { %v3634_v26 = vor.u32 %v4170_v45, %v3633_v30  ;;  %v4267_v36 = vld [vmem:[%s6482_s1 + $0x38] sm:$0xff]  ;;  %v3452_v45 = vld [vmem:[%s6484_s0 + $0x1d0] sm:$0xf0] }
 0x169   :  { %v979_v40 = vadd.f32 %v978_v15, %v936_v5  ;;  %v4134_v30 = vld [vmem:[%s6484_s0 + $0x1b8] sm:$0xf] }
 0x16e   :  { %v1021_v13 = vpop.f32.mrf.mxu2  ;;  %v938_v22 = vpop.f32.mrf.mxu0 }
 0x16f   :  { %v5373_v56 = vpop.f32.mrf.mxu3  ;;  %v5375_v18 = vadd.f32 %v1021_v13, %v979_v40  ;;  %v981_v20 = vpop.f32.mrf.mxu1  ;;  %v939_v39 = vadd.f32 %v938_v22, %v5075_v1  ;;  %v4266_v1 = vld [vmem:[%s6482_s1 + $0xb8] sm:$0xff]  ;;  %v3661_v13 = vld [vmem:[%s6484_s0 + $0x310] sm:$0xf] }
 0x170   :  { %v3663_v22 = vld [vmem:[%s6484_s0 + $0x32c] sm:$0xf0] }
 0x171   :  { %v982_v38 = vadd.f32 %v981_v20, %v939_v39  ;;  %1572 = vmatmul.bf16.vlgmr.msrb.gmra.mxu0 %v3427_v24  ;;  %v4177_v24 = vld [vmem:[%s6484_s0 + $0x328] sm:$0xf0] }
 0x172   :  { %3572 = vmatmul.msk.bf16.vlgmr.msrb.gmra.mxu1 %vm705_vm0, %v3431_v57  ;;  %2248 = vmatpush.bf16.msrb.mxu0 %v5385_v3  ;;  %v4174_v57 = vld [vmem:[%s6484_s0 + $0x314] sm:$0xf]  ;;  %v4272_v20 = vld [vmem:[%s6482_s1 + $0x68] sm:$0xff] }
 0x173   :  { %1992 = vmatmul.bf16.vlgmr.msrb.gmra.mxu2 %v3634_v26  ;;  %2606 = vmatpush.bf16.msrb.mxu1 %v4267_v36  ;;  %v4273_v26 = vld [vmem:[%s6482_s1 + $0x28] sm:$0xff] }
 0x174   :  { %2035 = vmatmul.bf16.vlgmr.msrb.gmra.mxu3 %v3638_v37  ;;  %2649 = vmatpush.bf16.msrb.mxu2 %v4264_v2  ;;  %v1359_v37 = vadd.f32 %v4850_v27, %v5146_v54  ;;  %v3455_v2 = vor.u32 %v4134_v30, %v3452_v45  ;;  %v4275_v27 = vld [vmem:[%s6482_s1 + $0x20] sm:$0xff] }
 0x175   :  { %2692 = vmatpush.bf16.msrb.mxu3 %v4266_v1  ;;  %v3459_v1 = vor.u32 %v4138_v53, %v3458_v10 }
 0x176   :  { %v1024_v8 = vpop.f32.mrf.mxu2  ;;  %v940_v5 = vpop.f32.mrf.mxu0  ;;  %2249 = vmatpush.bf16.msrb.mxu0 %v5404_v33 }
 0x177   :  { %v5394_v47 = vpop.f32.mrf.mxu3  ;;  %v5396_v15 = vadd.f32 %v1024_v8, %v982_v38  ;;  %v983_v40 = vpop.f32.mrf.mxu1  ;;  %2607 = vmatpush.bf16.msrb.mxu1 %v4271_v21  ;;  %v3662_v5 = vor.u32 %v4177_v24, %v3661_v13  ;;  %v5464_v21 = vld [vmem:[%s6483_s2] ss:$0 sm:$0xff] }
 0x178   :  { %2650 = vmatpush.bf16.msrb.mxu2 %v4268_v43  ;;  %v3666_v40 = vor.u32 %v4174_v57, %v3663_v22  ;;  %v1361_v30 = vadd.f32 %v5464_v21, %v5203_v32 }
 0x179   :  { %2693 = vmatpush.bf16.msrb.mxu3 %v4270_v49  ;;  %v4276_v49 = vld [vmem:[%s6482_s1 + $0x58] sm:$0xff] }
 0x17b   :  { %2608 = vmatpush.bf16.msrb.mxu1 %v4273_v26  ;;  %v4141_v26 = vld [vmem:[%s6484_s0 + $0x1f0] sm:$0xf] }
 0x17c   :  { %2651 = vmatpush.bf16.msrb.mxu2 %v4272_v20  ;;  %v4280_v20 = vld [vmem:[%s6482_s1 + $0x10] sm:$0xff] }
 0x17d   :  { %2694 = vmatpush.bf16.msrb.mxu3 %v5107_v4  ;;  %v4274_v4 = vld [vmem:[%s6482_s1 + $0x60] sm:$0xff] }
 0x17e   :  { %v1026_v39 = vpop.f32.mrf.mxu2  ;;  %v1401_v36 = vpop.f32.mrf.mxu0 }
 0x17f   :  { %v1390_v38 = vpop.f32.mrf.mxu3  ;;  %v1444_v8 = vpop.f32.mrf.mxu1  ;;  %v1402_v43 = vadd.f32 %v1401_v36, %v1359_v37  ;;  %2609 = vmatpush.bf16.msrb.mxu1 %v4275_v27  ;;  %v3480_v37 = vld [vmem:[%s6484_s0 + $0x208] sm:$0xf0]  ;;  %v3486_v39 = vld [vmem:[%s6484_s0 + $0x1f4] sm:$0xf]  ;;  %v3691_v36 = vld [vmem:[%s6484_s0 + $0x364] sm:$0xf0] }
 0x180   :  { %2652 = vmatpush.bf16.msrb.mxu2 %v4274_v4  ;;  %v3689_v38 = vld [vmem:[%s6484_s0 + $0x348] sm:$0xf]  ;;  %v3483_v27 = vor.u32 %v4141_v26, %v3480_v37 }
 0x181   :  { %2695 = vmatpush.bf16.msrb.mxu3 %v5122_v50  ;;  %v1445_v54 = vadd.f32 %v1444_v8, %v1402_v43  ;;  %1577 = vmatmul.bf16.gmra.mxu0 %v3455_v2  ;;  %v4277_v50 = vld [vmem:[%s6482_s1 + $0x18] sm:$0xff]  ;;  %v4184_v2 = vld [vmem:[%s6484_s0 + $0x360] sm:$0xf0]  ;;  %v4281_v8 = vld [vmem:[%s6482_s1 + $0x48] sm:$0xff] }
 0x182   :  { %3573 = vmatmul.msk.bf16.gmra.mxu1 %vm705_vm0, %v3459_v1  ;;  %v4181_v1 = vld [vmem:[%s6484_s0 + $0x34c] sm:$0xf] }
 0x183   :  { %1997 = vmatmul.bf16.gmra.mxu2 %v3662_v5  ;;  %2610 = vmatpush.bf16.msrb.mxu1 %v4277_v50  ;;  %v4282_v5 = vld [vmem:[%s6482_s1 + $0x8] sm:$0xff] }
 0x184   :  { %2040 = vmatmul.bf16.gmra.mxu3 %v3666_v40  ;;  %2653 = vmatpush.bf16.msrb.mxu2 %v4276_v49  ;;  %v1364_v40 = vadd.f32 %v5464_v21, %v5222_v28  ;;  %v4284_v28 = vld [vmem:[%s6482_s1] sm:$0xff] }
 0x185   :  { %2696 = vmatpush.bf16.msrb.mxu3 %v5136_v51  ;;  %v4279_v51 = vld [vmem:[%s6482_s1 + $0x50] sm:$0xff] }
 0x186   :  { %v1487_v45 = vpop.f32.mrf.mxu2  ;;  %v1403_v13 = vpop.f32.mrf.mxu0 }
 0x187   :  { %v1530_v10 = vpop.f32.mrf.mxu3  ;;  %v1488_v53 = vadd.f32 %v1487_v45, %v1445_v54  ;;  %v1446_v24 = vpop.f32.mrf.mxu1  ;;  %v1404_v57 = vadd.f32 %v1403_v13, %v1361_v30  ;;  %2611 = vmatpush.bf16.msrb.mxu1 %v4280_v20  ;;  %v3690_v45 = vor.u32 %v4184_v2, %v3689_v38  ;;  %v4148_v38 = vld [vmem:[%s6484_s0 + $0x228] sm:$0xf]  ;;  %v3508_v2 = vld [vmem:[%s6484_s0 + $0x240] sm:$0xf0] }
 0x188   :  { %2654 = vmatpush.bf16.msrb.mxu2 %v4279_v51 }
 0x189   :  { %v5471_v22 = vadd.f32 %v1530_v10, %v1488_v53  ;;  %2697 = vmatpush.bf16.msrb.mxu3 %v5155_v35  ;;  %v1447_v32 = vadd.f32 %v1446_v24, %v1404_v57  ;;  %v4145_v35 = vld [vmem:[%s6484_s0 + $0x20c] sm:$0xf0]  ;;  %v3694_v10 = vor.u32 %v4181_v1, %v3691_v36  ;;  %v1366_v57 = vadd.f32 %v5464_v21, %v5251_v55  ;;  %v3514_v55 = vld [vmem:[%s6484_s0 + $0x22c] sm:$0xf]  ;;  %v4152_v1 = vld [vmem:[%s6484_s0 + $0x244] sm:$0xf0] }
 0x18a   :  { %v3487_v54 = vor.u32 %v4145_v35, %v3486_v39  ;;  %v3717_v36 = vld [vmem:[%s6484_s0 + $0x380] sm:$0xf] }
 0x18b   :  { %2612 = vmatpush.bf16.msrb.mxu1 %v4282_v5  ;;  %v4188_v5 = vld [vmem:[%s6484_s0 + $0x384] sm:$0xf] }
 0x18c   :  { %2655 = vmatpush.bf16.msrb.mxu2 %v4281_v8  ;;  %v4191_v8 = vld [vmem:[%s6484_s0 + $0x398] sm:$0xf0] }
 0x18d   :  { %2698 = vmatpush.bf16.msrb.mxu3 %v5193_v61  ;;  %v4283_v61 = vld [vmem:[%s6482_s1 + $0x40] sm:$0xff] }
 0x18e   :  { %v1489_v43 = vpop.f32.mrf.mxu2  ;;  %v1406_v50 = vpop.f32.mrf.mxu0 }
 0x18f   :  { %v1532_v4 = vpop.f32.mrf.mxu3  ;;  %v1490_v49 = vadd.f32 %v1489_v43, %v1447_v32  ;;  %v1449_v30 = vpop.f32.mrf.mxu1  ;;  %v1407_v53 = vadd.f32 %v1406_v50, %v1364_v40  ;;  %2613 = vmatpush.bf16.msrb.mxu1 %v4284_v28  ;;  %v3719_v40 = vld [vmem:[%s6484_s0 + $0x39c] sm:$0xf0]  ;;  %v1369_v43 = vadd.f32 %v5464_v21, %v5256_v19  ;;  %v1371_v19 = vadd.f32 %v5464_v21, %v5285_v59  ;;  %v3542_v59 = vld [vmem:[%s6484_s0 + $0x264] sm:$0xf] }
 0x190   :  { %2656 = vmatpush.bf16.msrb.mxu2 %v4283_v61 }
 0x191   :  { %v5513_v13 = vadd.f32 %v1532_v4, %v1490_v49  ;;  %2699 = vmatpush.bf16.msrb.mxu3 %v5212_v7  ;;  %v1450_v24 = vadd.f32 %v1449_v30, %v1407_v53  ;;  %1582 = vmatmul.bf16.gmra.mxu0 %v3483_v27  ;;  %v3515_v49 = vor.u32 %v4152_v1, %v3514_v55  ;;  %v4159_v55 = vld [vmem:[%s6484_s0 + $0x27c] sm:$0xf0]  ;;  %v3745_v1 = vld [vmem:[%s6484_s0 + $0x3b8] sm:$0xf] }
 0x192   :  { %3574 = vmatmul.msk.bf16.gmra.mxu1 %vm705_vm0, %v3487_v54  ;;  %v3511_v54 = vor.u32 %v4148_v38, %v3508_v2  ;;  %v3722_v53 = vor.u32 %v4188_v5, %v3719_v40  ;;  %v4155_v38 = vld [vmem:[%s6484_s0 + $0x260] sm:$0xf]  ;;  %v3536_v2 = vld [vmem:[%s6484_s0 + $0x278] sm:$0xf0]  ;;  %v3747_v5 = vld [vmem:[%s6484_s0 + $0x3d4] sm:$0xf0]  ;;  %v1374_v40 = vadd.f32 %v5464_v21, %v5290_v12  ;;  %v1376_v12 = vadd.f32 %v5464_v21, %v5319_v41 }
 0x193   :  { %2002 = vmatmul.bf16.gmra.mxu2 %v3690_v45  ;;  %v3570_v41 = vld [vmem:[%s6484_s0 + $0x29c] sm:$0xf] }
 0x194   :  { %2045 = vmatmul.bf16.gmra.mxu3 %v3694_v10  ;;  %v3718_v10 = vor.u32 %v4191_v8, %v3717_v36  ;;  %v4198_v36 = vld [vmem:[%s6484_s0 + $0x3d0] sm:$0xf0]  ;;  %v4195_v8 = vld [vmem:[%s6484_s0 + $0x3bc] sm:$0xf] }
 0x196   :  { %v1492_v51 = vpop.f32.mrf.mxu2  ;;  %v1408_v26 = vpop.f32.mrf.mxu0 }
 0x197   :  { %v1535_v20 = vpop.f32.mrf.mxu3  ;;  %v1493_v32 = vadd.f32 %v1492_v51, %v1450_v24  ;;  %v1451_v37 = vpop.f32.mrf.mxu1  ;;  %v1409_v7 = vadd.f32 %v1408_v26, %v1366_v57 }
 0x199   :  { %v5522_v39 = vadd.f32 %v1535_v20, %v1493_v32  ;;  %v1452_v35 = vadd.f32 %v1451_v37, %v1409_v7 }
 0x19e   :  { %v1494_v4 = vpop.f32.mrf.mxu2  ;;  %v1411_v30 = vpop.f32.mrf.mxu0 }
 0x19f   :  { %v1537_v27 = vpop.f32.mrf.mxu3  ;;  %v1495_v50 = vadd.f32 %v1494_v4, %v1452_v35  ;;  %v1454_v45 = vpop.f32.mrf.mxu1  ;;  %v1412_v61 = vadd.f32 %v1411_v30, %v1369_v43 }
 0x1a1   :  { %v5550_v28 = vadd.f32 %v1537_v27, %v1495_v50  ;;  %v1455_v24 = vadd.f32 %v1454_v45, %v1412_v61  ;;  %1587 = vmatmul.bf16.gmra.mxu0 %v3511_v54  ;;  %v3539_v27 = vor.u32 %v4155_v38, %v3536_v2  ;;  %v3543_v54 = vor.u32 %v4159_v55, %v3542_v59  ;;  %v4162_v38 = vld [vmem:[%s6484_s0 + $0x298] sm:$0xf]  ;;  %v3564_v2 = vld [vmem:[%s6484_s0 + $0x2b0] sm:$0xf0]  ;;  %v3773_v55 = vld [vmem:[%s6484_s0 + $0x3f0] sm:$0xf] }
 0x1a2   :  { %3575 = vmatmul.msk.bf16.gmra.mxu1 %vm705_vm0, %v3515_v49  ;;  %v3746_v45 = vor.u32 %v4198_v36, %v3745_v1  ;;  %v4166_v59 = vld [vmem:[%s6484_s0 + $0x2b4] sm:$0xf0]  ;;  %v4205_v1 = vld [vmem:[%s6484_s0 + $0x408] sm:$0xf0]  ;;  %v4202_v36 = vld [vmem:[%s6484_s0 + $0x3f4] sm:$0xf] }
 0x1a3   :  { %2007 = vmatmul.bf16.gmra.mxu2 %v3718_v10  ;;  %v3750_v10 = vor.u32 %v4195_v8, %v3747_v5  ;;  %v3775_v8 = vld [vmem:[%s6484_s0 + $0x40c] sm:$0xf0]  ;;  %v1379_v5 = vadd.f32 %v5464_v21, %v5324_v44  ;;  %v1381_v44 = vadd.f32 %v5464_v21, %v5339_v17 }
 0x1a4   :  { %2050 = vmatmul.bf16.gmra.mxu3 %v3722_v53 }
 0x1a6   :  { %v1497_v57 = vpop.f32.mrf.mxu2  ;;  %v1413_v32 = vpop.f32.mrf.mxu0 }
 0x1a7   :  { %v1540_v51 = vpop.f32.mrf.mxu3  ;;  %v1498_v20 = vadd.f32 %v1497_v57, %v1455_v24  ;;  %v1456_v26 = vpop.f32.mrf.mxu1  ;;  %v1414_v37 = vadd.f32 %v1413_v32, %v1371_v19 }
 0x1a9   :  { %v5555_v7 = vadd.f32 %v1540_v51, %v1498_v20  ;;  %v1457_v35 = vadd.f32 %v1456_v26, %v1414_v37 }
 0x1ae   :  { %v1499_v43 = vpop.f32.mrf.mxu2  ;;  %v1416_v50 = vpop.f32.mrf.mxu0 }
 0x1af   :  { %v1542_v4 = vpop.f32.mrf.mxu3  ;;  %v1500_v49 = vadd.f32 %v1499_v43, %v1457_v35  ;;  %v1459_v30 = vpop.f32.mrf.mxu1  ;;  %v1417_v53 = vadd.f32 %v1416_v50, %v1374_v40 }
 0x1b1   :  { %v5583_v61 = vadd.f32 %v1542_v4, %v1500_v49  ;;  %v1460_v24 = vadd.f32 %v1459_v30, %v1417_v53  ;;  %1592 = vmatmul.bf16.gmra.mxu0 %v3539_v27  ;;  %v3567_v4 = vor.u32 %v4162_v38, %v3564_v2  ;;  %v3571_v27 = vor.u32 %v4166_v59, %v3570_v41 }
 0x1b2   :  { %3576 = vmatmul.msk.bf16.gmra.mxu1 %vm705_vm0, %v3543_v54  ;;  %v3774_v30 = vor.u32 %v4205_v1, %v3773_v55  ;;  %v1235_v41 = vunpack.c.h.b16 %v5335_v9  ;;  %v1384_v1 = vadd.f32 %v5464_v21, %v5344_v6  ;;  %v1386_v9 = vadd.f32 %v5464_v21, %v5373_v56  ;;  %v4168_v56 = vld [vmem:[%s6484_s0 + $0x2e4] sm:$0xf] }
 0x1b3   :  { %2012 = vmatmul.bf16.gmra.mxu2 %v3746_v45  ;;  %v3778_v45 = vor.u32 %v4202_v36, %v3775_v8 }
 0x1b4   :  { %2055 = vmatmul.bf16.gmra.mxu3 %v3750_v10 }
 0x1b6   :  { %v1502_v19 = vpop.f32.mrf.mxu2  ;;  %v1418_v20 = vpop.f32.mrf.mxu0 }
 0x1b7   :  { %v1545_v57 = vpop.f32.mrf.mxu3  ;;  %v1503_v51 = vadd.f32 %v1502_v19, %v1460_v24  ;;  %v1461_v32 = vpop.f32.mrf.mxu1  ;;  %v1419_v26 = vadd.f32 %v1418_v20, %v1376_v12 }
 0x1b9   :  { %v5588_v37 = vadd.f32 %v1545_v57, %v1503_v51  ;;  %v1462_v35 = vadd.f32 %v1461_v32, %v1419_v26  ;;  %v3403_v32 = vld [vmem:[%s6484_s0 + $0x2d4] sm:$0xf] }
 0x1ba   :  { %v1236_v17 = vunpack.c.l.b16 %v3403_v32  ;;  %v4171_v32 = vld [vmem:[%s6484_s0 + $0x2f8] sm:$0xf0] }
 0x1be   :  { %v1504_v40 = vpop.f32.mrf.mxu2  ;;  %v1421_v49 = vpop.f32.mrf.mxu0 }
 0x1bf   :  { %v1547_v43 = vpop.f32.mrf.mxu3  ;;  %v1505_v54 = vadd.f32 %v1504_v40, %v1462_v35  ;;  %v1464_v50 = vpop.f32.mrf.mxu1  ;;  %v1422_v10 = vadd.f32 %v1421_v49, %v1379_v5  ;;  %v3627_v35 = vld [vmem:[%s6484_s0 + $0x428] sm:$0xff]  ;;  %v1284_v5 = vpack.c.b16 %v1235_v41, %v1235_v41  ;;  %v1285_v40 = vpack.c.b16 %v1236_v17, %v1236_v17 }
 0x1c0   :  { %v1865_v59 = vunpack.c.l.b16 %v3627_v35  ;;  %v1866_v55 = vunpack.c.h.b16 %v3627_v35  ;;  %v3649_v35 = vld [vmem:[%s6484_s0 + $0x2e8] sm:$0xf]  ;;  %v4169_v41 = vld [vmem:[%s6484_s0 + $0x2ec] sm:$0xf] }
 0x1c1   :  { %v5616_v53 = vadd.f32 %v1547_v43, %v1505_v54  ;;  %v1465_v24 = vadd.f32 %v1464_v50, %v1422_v10  ;;  %1597 = vmatmul.bf16.gmra.mxu0 %v3567_v4  ;;  %v3651_v17 = vld [vmem:[%s6484_s0 + $0x304] sm:$0xf0] }
 0x1c2   :  { %3577 = vmatmul.msk.bf16.gmra.mxu1 %vm705_vm0, %v3571_v27  ;;  %v1914_v54 = vpack.c.b16 %v1865_v59, %v1865_v59  ;;  %v1915_v49 = vpack.c.b16 %v1866_v55, %v1866_v55  ;;  %v1389_v59 = vadd.f32 %v5464_v21, %v5394_v47  ;;  %v4285_v47 = vld [vmem:[%s6482_s1 + $0x178] sm:$0xff] }
 0x1c3   :  { %2017 = vmatmul.bf16.gmra.mxu2 %v3774_v30 }
 0x1c4   :  { %2060 = vmatmul.bf16.gmra.mxu3 %v3778_v45 }
 0x1c6   :  { %v1507_v12 = vpop.f32.mrf.mxu2  ;;  %v1423_v51 = vpop.f32.mrf.mxu0 }
 0x1c7   :  { %v1550_v19 = vpop.f32.mrf.mxu3  ;;  %v1508_v57 = vadd.f32 %v1507_v12, %v1465_v24  ;;  %v1466_v20 = vpop.f32.mrf.mxu1  ;;  %v1424_v26 = vadd.f32 %v1423_v51, %v1381_v44 }
 0x1c9   :  { %v5627_v38 = vadd.f32 %v1550_v19, %v1508_v57  ;;  %v1467_v2 = vadd.f32 %v1466_v20, %v1424_v26  ;;  %v3641_v20 = vld [vmem:[%s6484_s0 + $0x2e0] sm:$0xf] }
 0x1ca   :  { %v3643_v26 = vld [vmem:[%s6484_s0 + $0x2fc] sm:$0xf0] }
 0x1ce   :  { %v1509_v36 = vpop.f32.mrf.mxu2  ;;  %v1426_v4 = vpop.f32.mrf.mxu0 }
 0x1cf   :  { %v1552_v8 = vpop.f32.mrf.mxu3  ;;  %v1510_v43 = vadd.f32 %v1509_v36, %v1467_v2  ;;  %v1469_v27 = vpop.f32.mrf.mxu1  ;;  %v1427_v50 = vadd.f32 %v1426_v4, %v1384_v1  ;;  %v4172_v2 = vld [vmem:[%s6484_s0 + $0x300] sm:$0xf0]  ;;  %v3642_v36 = vor.u32 %v4171_v32, %v3641_v20  ;;  %v4290_v20 = vld [vmem:[%s6482_s1 + $0x130] sm:$0xff]  ;;  %v3669_v32 = vld [vmem:[%s6484_s0 + $0x318] sm:$0xf] }
 0x1d0   :  { %v3650_v4 = vor.u32 %v4172_v2, %v3649_v35  ;;  %v3671_v35 = vld [vmem:[%s6484_s0 + $0x334] sm:$0xf0]  ;;  %v4179_v2 = vld [vmem:[%s6484_s0 + $0x338] sm:$0xf0] }
 0x1d1   :  { %v5632_v30 = vadd.f32 %v1552_v8, %v1510_v43  ;;  %v1470_v45 = vadd.f32 %v1469_v27, %v1427_v50  ;;  %1602 = vmatmul.bf16.gmra.mxu0 %v1284_v5  ;;  %v3646_v8 = vor.u32 %v4168_v56, %v3643_v26  ;;  %v3654_v27 = vor.u32 %v4169_v41, %v3651_v17  ;;  %v4178_v56 = vld [vmem:[%s6484_s0 + $0x330] sm:$0xf0]  ;;  %v4175_v26 = vld [vmem:[%s6484_s0 + $0x31c] sm:$0xf]  ;;  %v4176_v41 = vld [vmem:[%s6484_s0 + $0x324] sm:$0xf] }
 0x1d2   :  { %3578 = vmatmul.msk.bf16.gmra.mxu1 %vm705_vm0, %v1285_v40  ;;  %v3679_v17 = vld [vmem:[%s6484_s0 + $0x33c] sm:$0xf0] }
 0x1d3   :  { %2022 = vmatmul.bf16.gmra.mxu2 %v1914_v54 }
 0x1d4   :  { %2065 = vmatmul.bf16.gmra.mxu3 %v1915_v49 }
 0x1d6   :  { %v1512_v6 = vpop.f32.mrf.mxu2  ;;  %v1428_v44 = vpop.f32.mrf.mxu0 }
 0x1d7   :  { %v1555_v10 = vpop.f32.mrf.mxu3  ;;  %v1513_v24 = vadd.f32 %v1512_v6, %v1470_v45  ;;  %v1471_v12 = vpop.f32.mrf.mxu1  ;;  %v1429_v19 = vadd.f32 %v1428_v44, %v1386_v9  ;;  %v4286_v45 = vld [vmem:[%s6482_s1 + $0xf8] sm:$0xff] }
 0x1d8   :  { %v4287_v9 = vld [vmem:[%s6482_s1 + $0x138] sm:$0xff] }
 0x1d9   :  { %v5637_v57 = vadd.f32 %v1555_v10, %v1513_v24  ;;  %v1472_v51 = vadd.f32 %v1471_v12, %v1429_v19  ;;  %v4288_v19 = vld [vmem:[%s6482_s1 + $0x170] sm:$0xff] }
 0x1de   :  { %v1514_v55 = vpop.f32.mrf.mxu2  ;;  %v1431_v40 = vpop.f32.mrf.mxu0 }
 0x1df   :  { %v1557_v1 = vpop.f32.mrf.mxu3  ;;  %v1515_v5 = vadd.f32 %v1514_v55, %v1472_v51  ;;  %v1474_v43 = vpop.f32.mrf.mxu1  ;;  %v1432_v54 = vadd.f32 %v1431_v40, %v1389_v59  ;;  %v4289_v51 = vld [vmem:[%s6482_s1 + $0xf0] sm:$0xff]  ;;  %v4291_v59 = vld [vmem:[%s6482_s1 + $0x168] sm:$0xff] }
 0x1e0   :  { %v4292_v55 = vld [vmem:[%s6482_s1 + $0x128] sm:$0xff] }
 0x1e1   :  { %v5665_v49 = vadd.f32 %v1557_v1, %v1515_v5  ;;  %v1475_v50 = vadd.f32 %v1474_v43, %v1432_v54  ;;  %2078 = vmatmul.bf16.vlgmr.msra.gmra.mxu0 %v3642_v36  ;;  %v3674_v5 = vor.u32 %v4175_v26, %v3671_v35  ;;  %v3699_v26 = vld [vmem:[%s6484_s0 + $0x36c] sm:$0xf0]  ;;  %v3705_v35 = vld [vmem:[%s6484_s0 + $0x358] sm:$0xf] }
 0x1e2   :  { %2121 = vmatmul.bf16.vlgmr.msra.gmra.mxu1 %v3646_v8  ;;  %2735 = vmatpush.bf16.msra.mxu0 %v4286_v45  ;;  %v3670_v8 = vor.u32 %v4178_v56, %v3669_v32  ;;  %v1028_v45 = vmax.f32 %v5148_v34, 0.0  ;;  %v3697_v56 = vld [vmem:[%s6484_s0 + $0x350] sm:$0xf] }
 0x1e3   :  { %2164 = vmatmul.bf16.vlgmr.msra.gmra.mxu2 %v3650_v4  ;;  %2778 = vmatpush.bf16.msra.mxu1 %v4287_v9  ;;  %v4295_v9 = vld [vmem:[%s6482_s1 + $0x158] sm:$0xff] }
 0x1e4   :  { %2207 = vmatmul.bf16.vlgmr.msra.gmra.mxu3 %v3654_v27  ;;  %2821 = vmatpush.bf16.msra.mxu2 %v4285_v47  ;;  %v3682_v27 = vor.u32 %v4176_v41, %v3679_v17  ;;  %v4183_v17 = vld [vmem:[%s6484_s0 + $0x35c] sm:$0xf] }
 0x1e5   :  { %2870 = vmatpush.bf16.msra.mxu3 %v5385_v3 }
 0x1e6   :  { %v1517_v6 = vpop.f32.mrf.mxu2  ;;  %v1433_v44 = vpop.f32.mrf.mxu0  ;;  %2736 = vmatpush.bf16.msra.mxu0 %v4289_v51  ;;  %v4297_v51 = vld [vmem:[%s6482_s1 + $0x150] sm:$0xff] }
 0x1e7   :  { %v1560_v10 = vpop.f32.mrf.mxu3  ;;  %v1518_v24 = vadd.f32 %v1517_v6, %v1475_v50  ;;  %v1476_v12 = vpop.f32.mrf.mxu1  ;;  %2779 = vmatpush.bf16.msra.mxu1 %v4290_v20  ;;  %v4293_v50 = vld [vmem:[%s6482_s1 + $0x160] sm:$0xff]  ;;  %v4298_v20 = vld [vmem:[%s6482_s1 + $0x110] sm:$0xff] }
 0x1e8   :  { %2822 = vmatpush.bf16.msra.mxu2 %v4288_v19 }
 0x1e9   :  { %v5683_v3 = vadd.f32 %v1560_v10, %v1518_v24  ;;  %2871 = vmatpush.bf16.msra.mxu3 %v5404_v33  ;;  %v3677_v33 = vld [vmem:[%s6484_s0 + $0x320] sm:$0xf] }
 0x1ea   :  { %2737 = vmatpush.bf16.msra.mxu0 %v5114_v25  ;;  %v3678_v4 = vor.u32 %v4179_v2, %v3677_v33  ;;  %v4294_v25 = vld [vmem:[%s6482_s1 + $0x120] sm:$0xff]  ;;  %v4186_v33 = vld [vmem:[%s6484_s0 + $0x370] sm:$0xf0]  ;;  %v1029_v2 = vmax.f32 %v5205_v0, 0.0  ;;  %v4300_v0 = vld [vmem:[%s6482_s1 + $0x108] sm:$0xff] }
 0x1eb   :  { %2780 = vmatpush.bf16.msra.mxu1 %v4292_v55  ;;  %v4299_v55 = vld [vmem:[%s6482_s1 + $0x148] sm:$0xff] }
 0x1ec   :  { %2823 = vmatpush.bf16.msra.mxu2 %v4291_v59  ;;  %v3707_v59 = vld [vmem:[%s6484_s0 + $0x374] sm:$0xf0] }
 0x1ee   :  { %v1519_v1 = vpop.f32.mrf.mxu2  ;;  %v1573_v40 = vpop.f32.mrf.mxu0  ;;  %2738 = vmatpush.bf16.msra.mxu0 %v5129_v52  ;;  %v4296_v52 = vld [vmem:[%s6482_s1 + $0x118] sm:$0xff] }
 0x1ef   :  { %v1562_v36 = vpop.f32.mrf.mxu3  ;;  %v1616_v43 = vpop.f32.mrf.mxu1  ;;  %v1574_v54 = vadd.f32 %v1573_v40, %v5471_v22  ;;  %2781 = vmatpush.bf16.msra.mxu1 %v4294_v25 }
 0x1f0   :  { %2824 = vmatpush.bf16.msra.mxu2 %v4293_v50  ;;  %v3710_v50 = vor.u32 %v4183_v17, %v3707_v59 }
 0x1f1   :  { %v1617_v47 = vadd.f32 %v1616_v43, %v1574_v54  ;;  %2083 = vmatmul.bf16.gmra.mxu0 %v3670_v8  ;;  %v3706_v54 = vor.u32 %v4186_v33, %v3705_v35  ;;  %v4190_v35 = vld [vmem:[%s6484_s0 + $0x394] sm:$0xf]  ;;  %v3735_v33 = vld [vmem:[%s6484_s0 + $0x3ac] sm:$0xf0] }
 0x1f2   :  { %2126 = vmatmul.bf16.gmra.mxu1 %v3674_v5  ;;  %2739 = vmatpush.bf16.msra.mxu0 %v5143_v60 }
 0x1f3   :  { %2169 = vmatmul.bf16.gmra.mxu2 %v3678_v4  ;;  %v1650_v22 = vmax.f32 %v1617_v47, 0.0  ;;  %2782 = vmatpush.bf16.msra.mxu1 %v4296_v52 }
 0x1f4   :  { %2212 = vmatmul.bf16.gmra.mxu3 %v3682_v27  ;;  %2825 = vmatpush.bf16.msra.mxu2 %v4295_v9 }
 0x1f5   :  { %v5736_v6 = vmax.f32 %v1028_v45, %v1650_v22  ;;  %v4302_v45 = vld [vmem:[%s6482_s1 + $0x100] sm:$0xff] }
 0x1f6   :  { %v1993_v10 = vpop.f32.mrf.mxu2  ;;  %v1575_v34 = vpop.f32.mrf.mxu0  ;;  %2740 = vmatpush.bf16.msra.mxu0 %v5162_v58  ;;  %v4182_v58 = vld [vmem:[%s6484_s0 + $0x354] sm:$0xf] }
 0x1f7   :  { %v2036_v24 = vpop.f32.mrf.mxu3  ;;  %v1994_v44 = vadd.f32 %v5464_v21, %v1993_v10  ;;  %v1618_v12 = vpop.f32.mrf.mxu1  ;;  %v1576_v19 = vadd.f32 %v1575_v34, %v5513_v13  ;;  %2783 = vmatpush.bf16.msra.mxu1 %v4298_v20  ;;  %v4185_v13 = vld [vmem:[%s6484_s0 + $0x368] sm:$0xf0]  ;;  %v3702_v40 = vor.u32 %v4182_v58, %v3699_v26  ;;  %v3725_v20 = vld [vmem:[%s6484_s0 + $0x388] sm:$0xf]  ;;  %v1031_v58 = vmax.f32 %v5253_v16, 0.0 }
 0x1f8   :  { %2826 = vmatpush.bf16.msra.mxu2 %v4297_v51  ;;  %v3698_v5 = vor.u32 %v4185_v13, %v3697_v56  ;;  %v3727_v56 = vld [vmem:[%s6484_s0 + $0x3a4] sm:$0xf0]  ;;  %v4193_v13 = vld [vmem:[%s6484_s0 + $0x3a8] sm:$0xf0] }
 0x1f9   :  { %v5744_v60 = vadd.f32 %v2036_v24, %v1994_v44  ;;  %v1619_v32 = vadd.f32 %v1618_v12, %v1576_v19 }
 0x1fa   :  { %2741 = vmatpush.bf16.msra.mxu0 %v5200_v62  ;;  %v4301_v62 = vld [vmem:[%s6482_s1 + $0x140] sm:$0xff] }
 0x1fb   :  { %v1651_v41 = vmax.f32 %v1619_v32, 0.0  ;;  %2784 = vmatpush.bf16.msra.mxu1 %v4300_v0  ;;  %v4189_v32 = vld [vmem:[%s6484_s0 + $0x38c] sm:$0xf] }
 0x1fc   :  { %2827 = vmatpush.bf16.msra.mxu2 %v4299_v55  ;;  %v3730_v55 = vor.u32 %v4189_v32, %v3727_v56 }
 0x1fd   :  { %v5781_v1 = vmax.f32 %v1029_v2, %v1651_v41 }
 0x1fe   :  { %v1995_v36 = vpop.f32.mrf.mxu2  ;;  %v1578_v4 = vpop.f32.mrf.mxu0  ;;  %2742 = vmatpush.bf16.msra.mxu0 %v5219_v46 }
 0x1ff   :  { %v2038_v8 = vpop.f32.mrf.mxu3  ;;  %v1996_v43 = vadd.f32 %v5464_v21, %v1995_v36  ;;  %v1621_v27 = vpop.f32.mrf.mxu1  ;;  %v1579_v25 = vadd.f32 %v1578_v4, %v5522_v39  ;;  %2785 = vmatpush.bf16.msra.mxu1 %v4302_v45  ;;  %v1030_v39 = vmax.f32 %v5224_v48, 0.0  ;;  %v4192_v48 = vld [vmem:[%s6484_s0 + $0x3a0] sm:$0xf0] }
 0x200   :  { %2828 = vmatpush.bf16.msra.mxu2 %v4301_v62  ;;  %v3726_v59 = vor.u32 %v4192_v48, %v3725_v20  ;;  %v4197_v20 = vld [vmem:[%s6484_s0 + $0x3cc] sm:$0xf]  ;;  %v3763_v48 = vld [vmem:[%s6484_s0 + $0x3e4] sm:$0xf0] }
 0x201   :  { %v5789_v47 = vadd.f32 %v2038_v8, %v1996_v43  ;;  %v1622_v22 = vadd.f32 %v1621_v27, %v1579_v25  ;;  %2088 = vmatmul.bf16.gmra.mxu0 %v3698_v5  ;;  %v3738_v5 = vor.u32 %v4190_v35, %v3735_v33  ;;  %v1032_v27 = vmax.f32 %v5258_v63, 0.0  ;;  %v4199_v63 = vld [vmem:[%s6484_s0 + $0x3d8] sm:$0xf0] }
 0x202   :  { %2131 = vmatmul.bf16.gmra.mxu1 %v3702_v40 }
 0x203   :  { %2174 = vmatmul.bf16.gmra.mxu2 %v3706_v54  ;;  %v1652_v9 = vmax.f32 %v1622_v22, 0.0 }
 0x204   :  { %2217 = vmatmul.bf16.gmra.mxu3 %v3710_v50 }
 0x205   :  { %v5795_v52 = vmax.f32 %v1030_v39, %v1652_v9 }
 0x206   :  { %v1998_v10 = vpop.f32.mrf.mxu2  ;;  %v1580_v44 = vpop.f32.mrf.mxu0 }
 0x207   :  { %v2041_v24 = vpop.f32.mrf.mxu3  ;;  %v1999_v46 = vadd.f32 %v5464_v21, %v1998_v10  ;;  %v1623_v34 = vpop.f32.mrf.mxu1  ;;  %v1581_v12 = vadd.f32 %v1580_v44, %v5550_v28  ;;  %v3733_v28 = vld [vmem:[%s6484_s0 + $0x390] sm:$0xf]  ;;  %v3755_v44 = vld [vmem:[%s6484_s0 + $0x3dc] sm:$0xf0] }
 0x208   :  { %v3734_v16 = vor.u32 %v4193_v13, %v3733_v28 }
 0x209   :  { %v5799_v19 = vadd.f32 %v2041_v24, %v1999_v46  ;;  %v1624_v51 = vadd.f32 %v1623_v34, %v1581_v12  ;;  %v3753_v24 = vld [vmem:[%s6484_s0 + $0x3c0] sm:$0xf]  ;;  %v4196_v46 = vld [vmem:[%s6484_s0 + $0x3c4] sm:$0xf]  ;;  %v1033_v12 = vmax.f32 %v5287_v31, 0.0 }
 0x20a   :  { %v4200_v34 = vld [vmem:[%s6484_s0 + $0x3e0] sm:$0xf0]  ;;  %v3754_v13 = vor.u32 %v4199_v63, %v3753_v24  ;;  %v3791_v63 = vld [vmem:[%s6484_s0 + $0x41c] sm:$0xf0] }
 0x20b   :  { %v1653_v26 = vmax.f32 %v1624_v51, 0.0  ;;  %v4204_v24 = vld [vmem:[%s6484_s0 + $0x404] sm:$0xf] }
 0x20d   :  { %v5826_v2 = vmax.f32 %v1031_v58, %v1653_v26  ;;  %v3758_v58 = vor.u32 %v4196_v46, %v3755_v44 }
 0x20e   :  { %v2000_v41 = vpop.f32.mrf.mxu2  ;;  %v1583_v36 = vpop.f32.mrf.mxu0 }
 0x20f   :  { %v2043_v17 = vpop.f32.mrf.mxu3  ;;  %v2001_v0 = vadd.f32 %v5464_v21, %v2000_v41  ;;  %v1626_v8 = vpop.f32.mrf.mxu1  ;;  %v1584_v40 = vadd.f32 %v1583_v36, %v5555_v7  ;;  %v3766_v41 = vor.u32 %v4197_v20, %v3763_v48 }
 0x211   :  { %v5830_v43 = vadd.f32 %v2043_v17, %v2001_v0  ;;  %v1627_v4 = vadd.f32 %v1626_v8, %v1584_v40  ;;  %2093 = vmatmul.bf16.gmra.mxu0 %v3726_v59  ;;  %v1034_v0 = vmax.f32 %v5292_v11, 0.0  ;;  %v4206_v11 = vld [vmem:[%s6484_s0 + $0x410] sm:$0xf0] }
 0x212   :  { %2136 = vmatmul.bf16.gmra.mxu1 %v3730_v55 }
 0x213   :  { %2179 = vmatmul.bf16.gmra.mxu2 %v3734_v16  ;;  %v1654_v54 = vmax.f32 %v1627_v4, 0.0 }
 0x214   :  { %2222 = vmatmul.bf16.gmra.mxu3 %v3738_v5 }
 0x215   :  { %v5833_v50 = vmax.f32 %v1032_v27, %v1654_v54 }
 0x216   :  { %v2003_v25 = vpop.f32.mrf.mxu2  ;;  %v1585_v22 = vpop.f32.mrf.mxu0 }
 0x217   :  { %v2046_v62 = vpop.f32.mrf.mxu3  ;;  %v2004_v45 = vadd.f32 %v5464_v21, %v2003_v25  ;;  %v1628_v39 = vpop.f32.mrf.mxu1  ;;  %v1586_v7 = vadd.f32 %v1585_v22, %v5583_v61  ;;  %v3761_v61 = vld [vmem:[%s6484_s0 + $0x3c8] sm:$0xf]  ;;  %v3783_v22 = vld [vmem:[%s6484_s0 + $0x414] sm:$0xf0] }
 0x218   :  { %v3762_v31 = vor.u32 %v4200_v34, %v3761_v61 }
 0x219   :  { %v5837_v9 = vadd.f32 %v2046_v62, %v2004_v45  ;;  %v1629_v10 = vadd.f32 %v1628_v39, %v1586_v7  ;;  %v3781_v62 = vld [vmem:[%s6484_s0 + $0x3f8] sm:$0xf]  ;;  %v4203_v45 = vld [vmem:[%s6484_s0 + $0x3fc] sm:$0xf]  ;;  %v1035_v7 = vmax.f32 %v5321_v23, 0.0 }
 0x21a   :  { %v4207_v39 = vld [vmem:[%s6484_s0 + $0x418] sm:$0xf0]  ;;  %v3782_v34 = vor.u32 %v4206_v11, %v3781_v62 }
 0x21b   :  { %v1655_v51 = vmax.f32 %v1629_v10, 0.0 }
 0x21d   :  { %v5864_v32 = vmax.f32 %v1033_v12, %v1655_v51  ;;  %v3786_v12 = vor.u32 %v4203_v45, %v3783_v22 }
 0x21e   :  { %v2005_v56 = vpop.f32.mrf.mxu2  ;;  %v1588_v35 = vpop.f32.mrf.mxu0 }
 0x21f   :  { %v2048_v28 = vpop.f32.mrf.mxu3  ;;  %v2006_v26 = vadd.f32 %v5464_v21, %v2005_v56  ;;  %v1631_v33 = vpop.f32.mrf.mxu1  ;;  %v1589_v17 = vadd.f32 %v1588_v35, %v5588_v37  ;;  %v3794_v56 = vor.u32 %v4204_v24, %v3791_v63 }
 0x221   :  { %v5868_v59 = vadd.f32 %v2048_v28, %v2006_v26  ;;  %v1632_v55 = vadd.f32 %v1631_v33, %v1589_v17  ;;  %2098 = vmatmul.bf16.gmra.mxu0 %v3754_v13  ;;  %v1036_v26 = vmax.f32 %v5326_v29, 0.0 }
 0x222   :  { %2141 = vmatmul.bf16.gmra.mxu1 %v3758_v58 }
 0x223   :  { %2184 = vmatmul.bf16.gmra.mxu2 %v3762_v31  ;;  %v1656_v36 = vmax.f32 %v1632_v55, 0.0 }
 0x224   :  { %2227 = vmatmul.bf16.gmra.mxu3 %v3766_v41 }
 0x225   :  { %v5871_v8 = vmax.f32 %v1034_v0, %v1656_v36 }
 0x226   :  { %v2008_v16 = vpop.f32.mrf.mxu2  ;;  %v1590_v4 = vpop.f32.mrf.mxu0 }
 0x227   :  { %v2051_v5 = vpop.f32.mrf.mxu3  ;;  %v2009_v40 = vadd.f32 %v5464_v21, %v2008_v16  ;;  %v1633_v27 = vpop.f32.mrf.mxu1  ;;  %v1591_v37 = vadd.f32 %v1590_v4, %v5616_v53  ;;  %v3789_v53 = vld [vmem:[%s6484_s0 + $0x400] sm:$0xf]  ;;  %v3629_v16 = vld [vmem:[%s6484_s0 + $0x438] sm:$0xff] }
 0x228   :  { %v3790_v23 = vor.u32 %v4207_v39, %v3789_v53 }
 0x229   :  { %v5875_v54 = vadd.f32 %v2051_v5, %v2009_v40  ;;  %v1634_v25 = vadd.f32 %v1633_v27, %v1591_v37  ;;  %v1869_v27 = vunpack.c.l.b16 %v3629_v16  ;;  %v1870_v37 = vunpack.c.h.b16 %v3629_v16 }
 0x22b   :  { %v1657_v10 = vmax.f32 %v1634_v25, 0.0  ;;  %v1037_v25 = vmax.f32 %v5341_v42, 0.0  ;;  %v1918_v24 = vpack.c.b16 %v1869_v27, %v1869_v27  ;;  %v1919_v63 = vpack.c.b16 %v1870_v37, %v1870_v37 }
 0x22c   :  { %v1038_v42 = vmax.f32 %v5346_v14, 0.0  ;;  %v4173_v14 = vld [vmem:[%s6484_s0 + $0x308] sm:$0xf0] }
 0x22d   :  { %v5902_v46 = vmax.f32 %v1035_v7, %v1657_v10 }
 0x22e   :  { %v2010_v44 = vpop.f32.mrf.mxu2  ;;  %v1593_v20 = vpop.f32.mrf.mxu0 }
 0x22f   :  { %v2053_v61 = vpop.f32.mrf.mxu3  ;;  %v2011_v51 = vadd.f32 %v5464_v21, %v2010_v44  ;;  %v1636_v48 = vpop.f32.mrf.mxu1  ;;  %v1594_v28 = vadd.f32 %v1593_v20, %v5627_v38  ;;  %v3628_v38 = vld [vmem:[%s6484_s0 + $0x430] sm:$0xff] }
 0x230   :  { %v1867_v40 = vunpack.c.l.b16 %v3628_v38  ;;  %v1868_v4 = vunpack.c.h.b16 %v3628_v38  ;;  %v3868_v38 = vld [vmem:[%s6484_s0 + $0x44c] sm:$0xf] }
 0x231   :  { %v5906_v13 = vadd.f32 %v2053_v61, %v2011_v51  ;;  %v1637_v58 = vadd.f32 %v1636_v48, %v1594_v28  ;;  %2103 = vmatmul.bf16.gmra.mxu0 %v3782_v34 }
 0x232   :  { %2146 = vmatmul.bf16.gmra.mxu1 %v3786_v12  ;;  %v1916_v53 = vpack.c.b16 %v1867_v40, %v1867_v40 }
 0x233   :  { %2189 = vmatmul.bf16.gmra.mxu2 %v3790_v23  ;;  %v1658_v35 = vmax.f32 %v1637_v58, 0.0 }
 0x234   :  { %2232 = vmatmul.bf16.gmra.mxu3 %v3794_v56 }
 0x235   :  { %v5909_v33 = vmax.f32 %v1036_v26, %v1658_v35  ;;  %v3657_v35 = vld [vmem:[%s6484_s0 + $0x2f0] sm:$0xf] }
 0x236   :  { %v2013_v31 = vpop.f32.mrf.mxu2  ;;  %v1595_v55 = vpop.f32.mrf.mxu0 }
 0x237   :  { %v2056_v41 = vpop.f32.mrf.mxu3  ;;  %v2014_v17 = vadd.f32 %v5464_v21, %v2013_v31  ;;  %v1638_v0 = vpop.f32.mrf.mxu1  ;;  %v1596_v36 = vadd.f32 %v1595_v55, %v5632_v30  ;;  %v1917_v30 = vpack.c.b16 %v1868_v4, %v1868_v4  ;;  %v3860_v31 = vld [vmem:[%s6484_s0 + $0x444] sm:$0xf]  ;;  %v1039_v55 = vmax.f32 %v5375_v18, 0.0 }
 0x238   :  { %v3658_v4 = vor.u32 %v4173_v14, %v3657_v35 }
 0x239   :  { %v5919_v29 = vadd.f32 %v2056_v41, %v2014_v17  ;;  %v1639_v5 = vadd.f32 %v1638_v0, %v1596_v36  ;;  %v4212_v41 = vld [vmem:[%s6484_s0 + $0x45c] sm:$0xf0]  ;;  %v3862_v17 = vld [vmem:[%s6484_s0 + $0x460] sm:$0xf0]  ;;  %v4213_v36 = vld [vmem:[%s6484_s0 + $0x464] sm:$0xf0] }
 0x23a   :  { %v3861_v27 = vor.u32 %v4212_v41, %v3860_v31 }
 0x23b   :  { %v1659_v62 = vmax.f32 %v1639_v5, 0.0 }
 0x23d   :  { %v5922_v11 = vmax.f32 %v1037_v25, %v1659_v62 }
 0x23e   :  { %v2015_v45 = vpop.f32.mrf.mxu2  ;;  %v1598_v7 = vpop.f32.mrf.mxu0 }
 0x23f   :  { %v2058_v22 = vpop.f32.mrf.mxu3  ;;  %v2016_v39 = vadd.f32 %v5464_v21, %v2015_v45  ;;  %v1641_v10 = vpop.f32.mrf.mxu1  ;;  %v1599_v44 = vadd.f32 %v1598_v7, %v5637_v57  ;;  %v3869_v45 = vor.u32 %v4213_v36, %v3868_v38 }
 0x241   :  { %v5926_v61 = vadd.f32 %v2058_v22, %v2016_v39  ;;  %v1642_v34 = vadd.f32 %v1641_v10, %v1599_v44  ;;  %2108 = vmatmul.bf16.gmra.mxu0 %v1916_v53  ;;  %v1040_v39 = vmax.f32 %v5396_v15, 0.0  ;;  %v3888_v15 = vld [vmem:[%s6484_s0 + $0x47c] sm:$0xf] }
 0x242   :  { %2151 = vmatmul.bf16.gmra.mxu1 %v1917_v30 }
 0x243   :  { %2194 = vmatmul.bf16.gmra.mxu2 %v1918_v24  ;;  %v1660_v12 = vmax.f32 %v1642_v34, 0.0 }
 0x244   :  { %2237 = vmatmul.bf16.gmra.mxu3 %v1919_v63 }
 0x245   :  { %v5929_v51 = vmax.f32 %v1038_v42, %v1660_v12  ;;  %v3685_v12 = vld [vmem:[%s6484_s0 + $0x328] sm:$0xf] }
 0x246   :  { %v2018_v20 = vpop.f32.mrf.mxu2  ;;  %v1600_v56 = vpop.f32.mrf.mxu0 }
 0x247   :  { %v2061_v48 = vpop.f32.mrf.mxu3  ;;  %v2019_v23 = vadd.f32 %v5464_v21, %v2018_v20  ;;  %v1643_v28 = vpop.f32.mrf.mxu1  ;;  %v1601_v57 = vadd.f32 %v1600_v56, %v5665_v49  ;;  %v4209_v49 = vld [vmem:[%s6484_s0 + $0x448] sm:$0xf]  ;;  %v4180_v20 = vld [vmem:[%s6484_s0 + $0x340] sm:$0xf0] }
 0x248   :  { %v3865_v18 = vor.u32 %v4209_v49, %v3862_v17  ;;  %v3896_v56 = vld [vmem:[%s6484_s0 + $0x484] sm:$0xf]  ;;  %v3686_v35 = vor.u32 %v4180_v20, %v3685_v12 }
 0x249   :  { %v5933_v58 = vadd.f32 %v2061_v48, %v2019_v23  ;;  %v1644_v26 = vadd.f32 %v1643_v28, %v1601_v57  ;;  %v4216_v48 = vld [vmem:[%s6484_s0 + $0x480] sm:$0xf]  ;;  %v3890_v23 = vld [vmem:[%s6484_s0 + $0x498] sm:$0xf0] }
 0x24a   :  { %v4220_v28 = vld [vmem:[%s6484_s0 + $0x49c] sm:$0xf0]  ;;  %v3893_v49 = vor.u32 %v4216_v48, %v3890_v23 }
 0x24b   :  { %v1661_v0 = vmax.f32 %v1644_v26, 0.0  ;;  %v3897_v17 = vor.u32 %v4220_v28, %v3896_v56 }
 0x24d   :  { %v5960_v16 = vmax.f32 %v1039_v55, %v1661_v0 }
 0x24e   :  { %v2020_v5 = vpop.f32.mrf.mxu2  ;;  %v1603_v25 = vpop.f32.mrf.mxu0 }
 0x24f   :  { %v2063_v40 = vpop.f32.mrf.mxu3  ;;  %v2021_v37 = vadd.f32 %v5464_v21, %v2020_v5  ;;  %v1646_v62 = vpop.f32.mrf.mxu1  ;;  %v1604_v22 = vadd.f32 %v1603_v25, %v5683_v3 }
 0x251   :  { %v5964_v53 = vadd.f32 %v2063_v40, %v2021_v37  ;;  %v1647_v30 = vadd.f32 %v1646_v62, %v1604_v22  ;;  %3799 = vmatmul.msk.bf16.vlgmr.msrb.gmra.mxu0 %vm705_vm0, %v3658_v4  ;;  %v4187_v62 = vld [vmem:[%s6484_s0 + $0x378] sm:$0xf0]  ;;  %v3918_v22 = vld [vmem:[%s6484_s0 + $0x4d0] sm:$0xf0] }
 0x252   :  { %2614 = vmatmul.bf16.vlgmr.msrb.gmra.mxu1 %v3861_v27 }
 0x253   :  { %2657 = vmatmul.bf16.vlgmr.msrb.gmra.mxu2 %v3865_v18  ;;  %v1662_v7 = vmax.f32 %v1647_v30, 0.0  ;;  %v3916_v18 = vld [vmem:[%s6484_s0 + $0x4b4] sm:$0xf]  ;;  %v3924_v30 = vld [vmem:[%s6484_s0 + $0x4bc] sm:$0xf] }
 0x254   :  { %2700 = vmatmul.bf16.vlgmr.msrb.gmra.mxu3 %v3869_v45  ;;  %v4226_v45 = vld [vmem:[%s6484_s0 + $0x4cc] sm:$0xf0] }
 0x255   :  { %v5968_v10 = vmax.f32 %v1040_v39, %v1662_v7  ;;  %v4227_v39 = vld [vmem:[%s6484_s0 + $0x4d4] sm:$0xf0] }
 0x256   :  { %v2023_v24 = vpop.f32.mrf.mxu2  ;;  %v1605_v34 = vpop.f32.mrf.mxu0 }
 0x257   :  { %v2066_v63 = vpop.f32.mrf.mxu3  ;;  %v2024_v44 = vadd.f32 %v5464_v21, %v2023_v24  ;;  %v1648_v42 = vpop.f32.mrf.mxu1  ;;  %v4219_v21 = vld [vmem:[%s6484_s0 + $0x494] sm:$0xf0] }
 0x258   :  { %v3889_v14 = vor.u32 %v4219_v21, %v3888_v15  ;;  %v3925_v15 = vor.u32 %v4227_v39, %v3924_v30 }
 0x259   :  { %v5971_v3 = vadd.f32 %v2066_v63, %v2024_v44  ;;  %v3917_v44 = vor.u32 %v4226_v45, %v3916_v18 }
 0x25e   :  { %v2025_v57 = vpop.f32.mrf.mxu2  ;;  %v2079_v31 = vpop.f32.mrf.mxu0 }
 0x25f   :  { %v2068_v26 = vpop.f32.mrf.mxu3  ;;  %v2122_v41 = vpop.f32.mrf.mxu1  ;;  %v2080_v55 = vadd.f32 %v2079_v31, %v5744_v60  ;;  %v3713_v60 = vld [vmem:[%s6484_s0 + $0x360] sm:$0xf] }
 0x260   :  { %v3714_v63 = vor.u32 %v4187_v62, %v3713_v60 }
 0x261   :  { %v2123_v0 = vadd.f32 %v2122_v41, %v2080_v55  ;;  %3800 = vmatmul.msk.bf16.gmra.mxu0 %vm705_vm0, %v3686_v35  ;;  %v4233_v55 = vld [vmem:[%s6484_s0 + $0x504] sm:$0xf0] }
 0x262   :  { %2619 = vmatmul.bf16.gmra.mxu1 %v3889_v14 }
 0x263   :  { %2662 = vmatmul.bf16.gmra.mxu2 %v3893_v49  ;;  %v4194_v49 = vld [vmem:[%s6484_s0 + $0x3b0] sm:$0xf0] }
 0x264   :  { %2705 = vmatmul.bf16.gmra.mxu3 %v3897_v17  ;;  %v3944_v17 = vld [vmem:[%s6484_s0 + $0x4ec] sm:$0xf] }
 0x266   :  { %v2165_v38 = vpop.f32.mrf.mxu2  ;;  %v2081_v40 = vpop.f32.mrf.mxu0 }
 0x267   :  { %v2208_v36 = vpop.f32.mrf.mxu3  ;;  %v2166_v5 = vadd.f32 %v2165_v38, %v2123_v0  ;;  %v2124_v4 = vpop.f32.mrf.mxu1  ;;  %v2082_v27 = vadd.f32 %v2081_v40, %v5789_v47  ;;  %v4223_v47 = vld [vmem:[%s6484_s0 + $0x4b8] sm:$0xf]  ;;  %v3946_v0 = vld [vmem:[%s6484_s0 + $0x508] sm:$0xf0]  ;;  %v3952_v38 = vld [vmem:[%s6484_s0 + $0x4f4] sm:$0xf] }
 0x268   :  { %v3921_v20 = vor.u32 %v4223_v47, %v3918_v22 }
 0x269   :  { %v6000_v37 = vadd.f32 %v2208_v36, %v2166_v5  ;;  %v2125_v25 = vadd.f32 %v2124_v4, %v2082_v27  ;;  %v4234_v36 = vld [vmem:[%s6484_s0 + $0x50c] sm:$0xf0]  ;;  %v3945_v27 = vor.u32 %v4233_v55, %v3944_v17 }
 0x26a   :  { %v3953_v45 = vor.u32 %v4234_v36, %v3952_v38 }
 0x26e   :  { %v2167_v7 = vpop.f32.mrf.mxu2  ;;  %v2084_v42 = vpop.f32.mrf.mxu0 }
 0x26f   :  { %v2210_v24 = vpop.f32.mrf.mxu3  ;;  %v2168_v34 = vadd.f32 %v2167_v7, %v2125_v25  ;;  %v2127_v12 = vpop.f32.mrf.mxu1  ;;  %v2085_v21 = vadd.f32 %v2084_v42, %v5799_v19  ;;  %v3741_v19 = vld [vmem:[%s6484_s0 + $0x398] sm:$0xf] }
 0x270   :  { %v3742_v4 = vor.u32 %v4194_v49, %v3741_v19 }
 0x271   :  { %v6027_v48 = vadd.f32 %v2210_v24, %v2168_v34  ;;  %v2128_v23 = vadd.f32 %v2127_v12, %v2085_v21  ;;  %3801 = vmatmul.msk.bf16.gmra.mxu0 %vm705_vm0, %v3714_v63  ;;  %v4240_v21 = vld [vmem:[%s6484_s0 + $0x53c] sm:$0xf0] }
 0x272   :  { %2624 = vmatmul.bf16.gmra.mxu1 %v3917_v44 }
 0x273   :  { %2667 = vmatmul.bf16.gmra.mxu2 %v3921_v20  ;;  %v4201_v20 = vld [vmem:[%s6484_s0 + $0x3e8] sm:$0xf0] }
 0x274   :  { %2710 = vmatmul.bf16.gmra.mxu3 %v3925_v15  ;;  %v3972_v15 = vld [vmem:[%s6484_s0 + $0x524] sm:$0xf] }
 0x276   :  { %v2170_v56 = vpop.f32.mrf.mxu2  ;;  %v2086_v26 = vpop.f32.mrf.mxu0 }
 0x277   :  { %v2213_v28 = vpop.f32.mrf.mxu3  ;;  %v2171_v57 = vadd.f32 %v2170_v56, %v2128_v23  ;;  %v2129_v35 = vpop.f32.mrf.mxu1  ;;  %v2087_v14 = vadd.f32 %v2086_v26, %v5830_v43  ;;  %v4230_v43 = vld [vmem:[%s6484_s0 + $0x4f0] sm:$0xf]  ;;  %v3974_v23 = vld [vmem:[%s6484_s0 + $0x540] sm:$0xf0]  ;;  %v3980_v56 = vld [vmem:[%s6484_s0 + $0x52c] sm:$0xf] }
 0x278   :  { %v3949_v18 = vor.u32 %v4230_v43, %v3946_v0 }
 0x279   :  { %v6031_v31 = vadd.f32 %v2213_v28, %v2171_v57  ;;  %v2130_v41 = vadd.f32 %v2129_v35, %v2087_v14  ;;  %v4241_v28 = vld [vmem:[%s6484_s0 + $0x544] sm:$0xf0]  ;;  %v3973_v14 = vor.u32 %v4240_v21, %v3972_v15 }
 0x27a   :  { %v3981_v55 = vor.u32 %v4241_v28, %v3980_v56 }
 0x27e   :  { %v2172_v5 = vpop.f32.mrf.mxu2  ;;  %v2089_v60 = vpop.f32.mrf.mxu0 }
 0x27f   :  { %v2215_v40 = vpop.f32.mrf.mxu3  ;;  %v2173_v25 = vadd.f32 %v2172_v5, %v2130_v41  ;;  %v2132_v62 = vpop.f32.mrf.mxu1  ;;  %v2090_v47 = vadd.f32 %v2089_v60, %v5837_v9  ;;  %v3769_v9 = vld [vmem:[%s6484_s0 + $0x3d0] sm:$0xf] }
 0x280   :  { %v3770_v35 = vor.u32 %v4201_v20, %v3769_v9 }
 0x281   :  { %v6058_v22 = vadd.f32 %v2215_v40, %v2173_v25  ;;  %v2133_v30 = vadd.f32 %v2132_v62, %v2090_v47  ;;  %3802 = vmatmul.msk.bf16.gmra.mxu0 %vm705_vm0, %v3742_v4  ;;  %v4247_v47 = vld [vmem:[%s6484_s0 + $0x574] sm:$0xf0] }
 0x282   :  { %2629 = vmatmul.bf16.gmra.mxu1 %v3945_v27 }
 0x283   :  { %2672 = vmatmul.bf16.gmra.mxu2 %v3949_v18  ;;  %v4208_v18 = vld [vmem:[%s6484_s0 + $0x420] sm:$0xf0] }
 0x284   :  { %2715 = vmatmul.bf16.gmra.mxu3 %v3953_v45  ;;  %v4000_v45 = vld [vmem:[%s6484_s0 + $0x55c] sm:$0xf] }
 0x286   :  { %v2175_v39 = vpop.f32.mrf.mxu2  ;;  %v2091_v63 = vpop.f32.mrf.mxu0 }
 0x287   :  { %v2218_v7 = vpop.f32.mrf.mxu3  ;;  %v2176_v24 = vadd.f32 %v2175_v39, %v2133_v30  ;;  %v2134_v44 = vpop.f32.mrf.mxu1  ;;  %v2092_v34 = vadd.f32 %v2091_v63, %v5868_v59  ;;  %v4237_v59 = vld [vmem:[%s6484_s0 + $0x528] sm:$0xf]  ;;  %v4002_v30 = vld [vmem:[%s6484_s0 + $0x578] sm:$0xf0]  ;;  %v4008_v39 = vld [vmem:[%s6484_s0 + $0x564] sm:$0xf] }
 0x288   :  { %v3977_v17 = vor.u32 %v4237_v59, %v3974_v23 }
 0x289   :  { %v6062_v42 = vadd.f32 %v2218_v7, %v2176_v24  ;;  %v2135_v12 = vadd.f32 %v2134_v44, %v2092_v34  ;;  %v4248_v7 = vld [vmem:[%s6484_s0 + $0x57c] sm:$0xf0]  ;;  %v4001_v34 = vor.u32 %v4247_v47, %v4000_v45 }
 0x28a   :  { %v4009_v21 = vor.u32 %v4248_v7, %v4008_v39 }
 0x28e   :  { %v2177_v57 = vpop.f32.mrf.mxu2  ;;  %v2094_v19 = vpop.f32.mrf.mxu0 }
 0x28f   :  { %v2220_v26 = vpop.f32.mrf.mxu3  ;;  %v2178_v41 = vadd.f32 %v2177_v57, %v2135_v12  ;;  %v2137_v49 = vpop.f32.mrf.mxu1  ;;  %v2095_v43 = vadd.f32 %v2094_v19, %v5875_v54  ;;  %v3797_v54 = vld [vmem:[%s6484_s0 + $0x408] sm:$0xf] }
 0x290   :  { %v3798_v44 = vor.u32 %v4208_v18, %v3797_v54 }
 0x291   :  { %v6089_v0 = vadd.f32 %v2220_v26, %v2178_v41  ;;  %v2138_v38 = vadd.f32 %v2137_v49, %v2095_v43  ;;  %3803 = vmatmul.msk.bf16.gmra.mxu0 %vm705_vm0, %v3770_v35  ;;  %v3630_v41 = vld [vmem:[%s6484_s0 + $0x440] sm:$0xf] }
 0x292   :  { %2634 = vmatmul.bf16.gmra.mxu1 %v3973_v14  ;;  %v6133_v49 = vld [vmem:[%s6484_s0 + $0x59c] sm:$0xff]  ;;  %v1871_v43 = vunpack.c.l.b16 %v3630_v41 }
 0x293   :  { %2677 = vmatmul.bf16.gmra.mxu2 %v3977_v17 }
 0x294   :  { %2720 = vmatmul.bf16.gmra.mxu3 %v3981_v55 }
 0x296   :  { %v2180_v36 = vpop.f32.mrf.mxu2  ;;  %v2096_v4 = vpop.f32.mrf.mxu0 }
 0x297   :  { %v2223_v5 = vpop.f32.mrf.mxu3  ;;  %v2181_v40 = vadd.f32 %v2180_v36, %v2138_v38  ;;  %v2139_v27 = vpop.f32.mrf.mxu1  ;;  %v2097_v25 = vadd.f32 %v2096_v4, %v5906_v13  ;;  %v4244_v13 = vld [vmem:[%s6484_s0 + $0x560] sm:$0xf] }
 0x298   :  { %v4005_v15 = vor.u32 %v4244_v13, %v4002_v30 }
 0x299   :  { %v6093_v60 = vadd.f32 %v2223_v5, %v2181_v40  ;;  %v2140_v62 = vadd.f32 %v2139_v27, %v2097_v25  ;;  %v2489_v5 = vunpack.c.l.b16 %v6133_v49  ;;  %v1920_v27 = vpack.c.b16 %v1871_v43, %v1871_v43 }
 0x29b   :  { %v2538_v45 = vpack.c.b16 %v2489_v5, %v2489_v5 }
 0x29e   :  { %v2182_v24 = vpop.f32.mrf.mxu2  ;;  %v2099_v9 = vpop.f32.mrf.mxu0 }
 0x29f   :  { %v2225_v63 = vpop.f32.mrf.mxu3  ;;  %v2183_v12 = vadd.f32 %v2182_v24, %v2140_v62  ;;  %v2142_v20 = vpop.f32.mrf.mxu1  ;;  %v2100_v59 = vadd.f32 %v2099_v9, %v5919_v29  ;;  %v3854_v29 = vld [vmem:[%s6484_s0 + $0x594] sm:$0xff] }
 0x2a0   :  { %v2487_v38 = vunpack.c.l.b16 %v3854_v29  ;;  %v2488_v36 = vunpack.c.h.b16 %v3854_v29 }
 0x2a1   :  { %v6120_v23 = vadd.f32 %v2225_v63, %v2183_v12  ;;  %v2143_v56 = vadd.f32 %v2142_v20, %v2100_v59  ;;  %3804 = vmatmul.msk.bf16.gmra.mxu0 %vm705_vm0, %v3798_v44  ;;  %v3870_v20 = vld [vmem:[%s6484_s0 + $0x468] sm:$0xf0]  ;;  %v3878_v59 = vld [vmem:[%s6484_s0 + $0x470] sm:$0xf0] }
 0x2a2   :  { %2639 = vmatmul.bf16.gmra.mxu1 %v4001_v34  ;;  %v2536_v25 = vpack.c.b16 %v2487_v38, %v2487_v38  ;;  %v2537_v18 = vpack.c.b16 %v2488_v36, %v2488_v36 }
 0x2a3   :  { %2682 = vmatmul.bf16.gmra.mxu2 %v4005_v15  ;;  %v3876_v15 = vld [vmem:[%s6484_s0 + $0x454] sm:$0xf] }
 0x2a4   :  { %2725 = vmatmul.bf16.gmra.mxu3 %v4009_v21  ;;  %v4214_v21 = vld [vmem:[%s6484_s0 + $0x46c] sm:$0xf0] }
 0x2a6   :  { %v2185_v28 = vpop.f32.mrf.mxu2  ;;  %v2101_v35 = vpop.f32.mrf.mxu0 }
 0x2a7   :  { %v2228_v57 = vpop.f32.mrf.mxu3  ;;  %v2186_v26 = vadd.f32 %v2185_v28, %v2143_v56  ;;  %v2144_v14 = vpop.f32.mrf.mxu1  ;;  %v2102_v19 = vadd.f32 %v2101_v35, %v5926_v61  ;;  %v3884_v56 = vld [vmem:[%s6484_s0 + $0x45c] sm:$0xf]  ;;  %v4215_v28 = vld [vmem:[%s6484_s0 + $0x474] sm:$0xf0] }
 0x2a8   :  { %v3885_v43 = vor.u32 %v4215_v28, %v3884_v56 }
 0x2a9   :  { %v6135_v17 = vadd.f32 %v2228_v57, %v2186_v26  ;;  %v2145_v55 = vadd.f32 %v2144_v14, %v2102_v19  ;;  %v3877_v14 = vor.u32 %v4214_v21, %v3876_v15 }
 0x2ae   :  { %v2187_v40 = vpop.f32.mrf.mxu2  ;;  %v2104_v54 = vpop.f32.mrf.mxu0 }
 0x2af   :  { %v2230_v4 = vpop.f32.mrf.mxu3  ;;  %v2188_v62 = vadd.f32 %v2187_v40, %v2145_v55  ;;  %v2147_v61 = vpop.f32.mrf.mxu1  ;;  %v2105_v47 = vadd.f32 %v2104_v54, %v5933_v58  ;;  %v4210_v58 = vld [vmem:[%s6484_s0 + $0x450] sm:$0xf] }
 0x2b0   :  { %v3873_v35 = vor.u32 %v4210_v58, %v3870_v20 }
 0x2b1   :  { %v6139_v13 = vadd.f32 %v2230_v4, %v2188_v62  ;;  %v2148_v30 = vadd.f32 %v2147_v61, %v2105_v47  ;;  %3805 = vmatmul.msk.bf16.gmra.mxu0 %vm705_vm0, %v1920_v27  ;;  %v4217_v61 = vld [vmem:[%s6484_s0 + $0x488] sm:$0xf]  ;;  %v4218_v47 = vld [vmem:[%s6484_s0 + $0x490] sm:$0xf] }
 0x2b2   :  { %2644 = vmatmul.bf16.gmra.mxu1 %v2536_v25 }
 0x2b3   :  { %2687 = vmatmul.bf16.gmra.mxu2 %v2537_v18  ;;  %v3904_v18 = vld [vmem:[%s6484_s0 + $0x48c] sm:$0xf] }
 0x2b4   :  { %2730 = vmatmul.bf16.gmra.mxu3 %v2538_v45  ;;  %v4221_v45 = vld [vmem:[%s6484_s0 + $0x4a4] sm:$0xf0] }
 0x2b6   :  { %v2190_v39 = vpop.f32.mrf.mxu2  ;;  %v2106_v63 = vpop.f32.mrf.mxu0 }
 0x2b7   :  { %v2233_v7 = vpop.f32.mrf.mxu3  ;;  %v2191_v24 = vadd.f32 %v2190_v39, %v2148_v30  ;;  %v2149_v44 = vpop.f32.mrf.mxu1  ;;  %v2107_v34 = vadd.f32 %v2106_v63, %v5964_v53  ;;  %v4211_v53 = vld [vmem:[%s6484_s0 + $0x458] sm:$0xf]  ;;  %v3906_v30 = vld [vmem:[%s6484_s0 + $0x4a8] sm:$0xf0]  ;;  %v3912_v39 = vld [vmem:[%s6484_s0 + $0x494] sm:$0xf] }
 0x2b8   :  { %v3881_v55 = vor.u32 %v4211_v53, %v3878_v59  ;;  %v3909_v20 = vor.u32 %v4218_v47, %v3906_v30  ;;  %v6205_v53 = vld [vmem:[%s6483_s2] ss:$0 sm:$0xff] }
 0x2b9   :  { %v6143_v12 = vadd.f32 %v2233_v7, %v2191_v24  ;;  %v2150_v9 = vadd.f32 %v2149_v44, %v2107_v34  ;;  %v4222_v7 = vld [vmem:[%s6484_s0 + $0x4ac] sm:$0xf0]  ;;  %v3905_v34 = vor.u32 %v4221_v45, %v3904_v18 }
 0x2ba   :  { %v3913_v15 = vor.u32 %v4222_v7, %v3912_v39 }
 0x2be   :  { %v2192_v57 = vpop.f32.mrf.mxu2  ;;  %v2109_v29 = vpop.f32.mrf.mxu0 }
 0x2bf   :  { %v2235_v26 = vpop.f32.mrf.mxu3  ;;  %v2193_v41 = vadd.f32 %v2192_v57, %v2150_v9  ;;  %v2152_v19 = vpop.f32.mrf.mxu1  ;;  %v2110_v38 = vadd.f32 %v2109_v29, %v5971_v3  ;;  %v3898_v3 = vld [vmem:[%s6484_s0 + $0x4a0] sm:$0xf0]  ;;  %v3926_v29 = vld [vmem:[%s6484_s0 + $0x4d8] sm:$0xf0] }
 0x2c0   :  { %v3901_v44 = vor.u32 %v4217_v61, %v3898_v3 }
 0x2c1   :  { %v6170_v36 = vadd.f32 %v2235_v26, %v2193_v41  ;;  %v2153_v5 = vadd.f32 %v2152_v19, %v2110_v38  ;;  %2743 = vmatmul.bf16.vlgmr.msra.gmra.mxu0 %v3873_v35  ;;  %v4224_v41 = vld [vmem:[%s6484_s0 + $0x4c0] sm:$0xf]  ;;  %v3932_v19 = vld [vmem:[%s6484_s0 + $0x4c4] sm:$0xf]  ;;  %v3940_v38 = vld [vmem:[%s6484_s0 + $0x4cc] sm:$0xf] }
 0x2c2   :  { %2786 = vmatmul.bf16.vlgmr.msra.gmra.mxu1 %v3877_v14 }
 0x2c3   :  { %2829 = vmatmul.bf16.vlgmr.msra.gmra.mxu2 %v3881_v55  ;;  %v4228_v55 = vld [vmem:[%s6484_s0 + $0x4dc] sm:$0xf0] }
 0x2c4   :  { %4026 = vmatmul.msk.bf16.vlgmr.msra.gmra.mxu3 %vm705_vm0, %v3885_v43  ;;  %v3934_v43 = vld [vmem:[%s6484_s0 + $0x4e0] sm:$0xf0] }
 0x2c6   :  { %v2195_v40 = vpop.f32.mrf.mxu2  ;;  %v2111_v25 = vpop.f32.mrf.mxu0 }
 0x2c7   :  { %v2238_v4 = vpop.f32.mrf.mxu3  ;;  %v2196_v27 = vadd.f32 %v2195_v40, %v2153_v5  ;;  %v2154_v62 = vpop.f32.mrf.mxu1  ;;  %v4229_v5 = vld [vmem:[%s6484_s0 + $0x4e4] sm:$0xf0]  ;;  %v3929_v25 = vor.u32 %v4224_v41, %v3926_v29 }
 0x2c8   :  { %v3933_v62 = vor.u32 %v4228_v55, %v3932_v19  ;;  %v3941_v47 = vor.u32 %v4229_v5, %v3940_v38 }
 0x2c9   :  { %v6173_v54 = vadd.f32 %v2238_v4, %v2196_v27 }
 0x2ce   :  { %v2197_v24 = vpop.f32.mrf.mxu2  ;;  %v2251_v9 = vpop.f32.mrf.mxu0 }
 0x2cf   :  { %v2240_v63 = vpop.f32.mrf.mxu3  ;;  %v2615_v58 = vpop.f32.mrf.mxu1  ;;  %v6200_v21 = vadd.f32 %v2251_v9, %v6000_v37 }
 0x2d0   :  { %v2616_v59 = vadd.f32 %v6205_v53, %v2615_v58 }
 0x2d1   :  { %2748 = vmatmul.bf16.gmra.mxu0 %v3901_v44 }
 0x2d2   :  { %2791 = vmatmul.bf16.gmra.mxu1 %v3905_v34 }
 0x2d3   :  { %2834 = vmatmul.bf16.gmra.mxu2 %v3909_v20 }
 0x2d4   :  { %4027 = vmatmul.msk.bf16.gmra.mxu3 %vm705_vm0, %v3913_v15  ;;  %v3954_v15 = vld [vmem:[%s6484_s0 + $0x510] sm:$0xf0] }
 0x2d6   :  { %v2658_v56 = vpop.f32.mrf.mxu2  ;;  %v2253_v26 = vpop.f32.mrf.mxu0 }
 0x2d7   :  { %v2701_v28 = vpop.f32.mrf.mxu3  ;;  %v2659_v57 = vadd.f32 %v2658_v56, %v2616_v59  ;;  %v2617_v35 = vpop.f32.mrf.mxu1  ;;  %v6210_v37 = vadd.f32 %v2253_v26, %v6027_v48  ;;  %v4225_v48 = vld [vmem:[%s6484_s0 + $0x4c8] sm:$0xf]  ;;  %v3960_v59 = vld [vmem:[%s6484_s0 + $0x4fc] sm:$0xf]  ;;  %v4235_v56 = vld [vmem:[%s6484_s0 + $0x514] sm:$0xf0] }
 0x2d8   :  { %v2618_v40 = vadd.f32 %v6205_v53, %v2617_v35  ;;  %v3937_v45 = vor.u32 %v4225_v48, %v3934_v43  ;;  %v4236_v26 = vld [vmem:[%s6484_s0 + $0x51c] sm:$0xf0]  ;;  %v3961_v55 = vor.u32 %v4235_v56, %v3960_v59 }
 0x2d9   :  { %v6212_v14 = vadd.f32 %v2701_v28, %v2659_v57  ;;  %v3962_v28 = vld [vmem:[%s6484_s0 + $0x518] sm:$0xf0]  ;;  %v3968_v57 = vld [vmem:[%s6484_s0 + $0x504] sm:$0xf] }
 0x2de   :  { %v2660_v4 = vpop.f32.mrf.mxu2  ;;  %v2256_v3 = vpop.f32.mrf.mxu0 }
 0x2df   :  { %v2703_v27 = vpop.f32.mrf.mxu3  ;;  %v2661_v61 = vadd.f32 %v2660_v4, %v2618_v40  ;;  %v2620_v18 = vpop.f32.mrf.mxu1  ;;  %v6240_v30 = vadd.f32 %v2256_v3, %v6031_v31  ;;  %v4231_v31 = vld [vmem:[%s6484_s0 + $0x4f8] sm:$0xf]  ;;  %v3969_v40 = vor.u32 %v4236_v26, %v3968_v57 }
 0x2e0   :  { %v2621_v7 = vadd.f32 %v6205_v53, %v2620_v18  ;;  %v3957_v19 = vor.u32 %v4231_v31, %v3954_v15  ;;  %v4243_v31 = vld [vmem:[%s6484_s0 + $0x554] sm:$0xf0] }
 0x2e1   :  { %v6242_v39 = vadd.f32 %v2703_v27, %v2661_v61  ;;  %2753 = vmatmul.bf16.gmra.mxu0 %v3929_v25 }
 0x2e2   :  { %2796 = vmatmul.bf16.gmra.mxu1 %v3933_v62 }
 0x2e3   :  { %2839 = vmatmul.bf16.gmra.mxu2 %v3937_v45 }
 0x2e4   :  { %4028 = vmatmul.msk.bf16.gmra.mxu3 %vm705_vm0, %v3941_v47 }
 0x2e6   :  { %v2663_v24 = vpop.f32.mrf.mxu2  ;;  %v2258_v34 = vpop.f32.mrf.mxu0 }
 0x2e7   :  { %v2706_v63 = vpop.f32.mrf.mxu3  ;;  %v2664_v44 = vadd.f32 %v2663_v24, %v2621_v7  ;;  %v2622_v9 = vpop.f32.mrf.mxu1  ;;  %v6247_v58 = vadd.f32 %v2258_v34, %v6058_v22  ;;  %v4232_v22 = vld [vmem:[%s6484_s0 + $0x500] sm:$0xf]  ;;  %v3982_v24 = vld [vmem:[%s6484_s0 + $0x548] sm:$0xf0]  ;;  %v3990_v34 = vld [vmem:[%s6484_s0 + $0x550] sm:$0xf0] }
 0x2e8   :  { %v2623_v35 = vadd.f32 %v6205_v53, %v2622_v9  ;;  %v3965_v5 = vor.u32 %v4232_v22, %v3962_v28  ;;  %v3996_v9 = vld [vmem:[%s6484_s0 + $0x53c] sm:$0xf] }
 0x2e9   :  { %v6249_v20 = vadd.f32 %v2706_v63, %v2664_v44  ;;  %v3988_v63 = vld [vmem:[%s6484_s0 + $0x534] sm:$0xf]  ;;  %v4242_v44 = vld [vmem:[%s6484_s0 + $0x54c] sm:$0xf0] }
 0x2ea   :  { %v3989_v28 = vor.u32 %v4242_v44, %v3988_v63  ;;  %v4250_v63 = vld [vmem:[%s6484_s0 + $0x58c] sm:$0xf0] }
 0x2ee   :  { %v2665_v41 = vpop.f32.mrf.mxu2  ;;  %v2261_v43 = vpop.f32.mrf.mxu0 }
 0x2ef   :  { %v2708_v29 = vpop.f32.mrf.mxu3  ;;  %v2666_v48 = vadd.f32 %v2665_v41, %v2623_v35  ;;  %v2625_v38 = vpop.f32.mrf.mxu1  ;;  %v6277_v4 = vadd.f32 %v2261_v43, %v6062_v42  ;;  %v4238_v42 = vld [vmem:[%s6484_s0 + $0x530] sm:$0xf] }
 0x2f0   :  { %v2626_v25 = vadd.f32 %v6205_v53, %v2625_v38  ;;  %v3985_v22 = vor.u32 %v4238_v42, %v3982_v24  ;;  %v4018_v42 = vld [vmem:[%s6484_s0 + $0x588] sm:$0xf0]  ;;  %v4024_v24 = vld [vmem:[%s6484_s0 + $0x574] sm:$0xf] }
 0x2f1   :  { %v6279_v27 = vadd.f32 %v2708_v29, %v2666_v48  ;;  %2758 = vmatmul.bf16.gmra.mxu0 %v3957_v19  ;;  %v3997_v29 = vor.u32 %v4243_v31, %v3996_v9 }
 0x2f2   :  { %2801 = vmatmul.bf16.gmra.mxu1 %v3961_v55 }
 0x2f3   :  { %2844 = vmatmul.bf16.gmra.mxu2 %v3965_v5 }
 0x2f4   :  { %4029 = vmatmul.msk.bf16.gmra.mxu3 %vm705_vm0, %v3969_v40 }
 0x2f6   :  { %v2668_v62 = vpop.f32.mrf.mxu2  ;;  %v2263_v18 = vpop.f32.mrf.mxu0 }
 0x2f7   :  { %v2711_v61 = vpop.f32.mrf.mxu3  ;;  %v2669_v3 = vadd.f32 %v2668_v62, %v2626_v25  ;;  %v2627_v45 = vpop.f32.mrf.mxu1  ;;  %v6284_v47 = vadd.f32 %v2263_v18, %v6089_v0  ;;  %v4239_v0 = vld [vmem:[%s6484_s0 + $0x538] sm:$0xf]  ;;  %v4016_v18 = vld [vmem:[%s6484_s0 + $0x56c] sm:$0xf] }
 0x2f8   :  { %v2628_v15 = vadd.f32 %v6205_v53, %v2627_v45  ;;  %v3993_v41 = vor.u32 %v4239_v0, %v3990_v34  ;;  %v4249_v45 = vld [vmem:[%s6484_s0 + $0x584] sm:$0xf0] }
 0x2f9   :  { %v6286_v7 = vadd.f32 %v2711_v61, %v2669_v3  ;;  %v4010_v3 = vld [vmem:[%s6484_s0 + $0x580] sm:$0xf0]  ;;  %v4017_v31 = vor.u32 %v4249_v45, %v4016_v18 }
 0x2fe   :  { %v2670_v59 = vpop.f32.mrf.mxu2  ;;  %v2266_v26 = vpop.f32.mrf.mxu0 }
 0x2ff   :  { %v2713_v56 = vpop.f32.mrf.mxu3  ;;  %v2671_v57 = vadd.f32 %v2670_v59, %v2628_v15  ;;  %v2630_v35 = vpop.f32.mrf.mxu1  ;;  %v6314_v19 = vadd.f32 %v2266_v26, %v6093_v60  ;;  %v4245_v60 = vld [vmem:[%s6484_s0 + $0x568] sm:$0xf] }
 0x300   :  { %v2631_v48 = vadd.f32 %v6205_v53, %v2630_v35  ;;  %v4013_v9 = vor.u32 %v4245_v60, %v4010_v3  ;;  %v2490_v60 = vunpack.c.h.b16 %v6133_v49 }
 0x301   :  { %v6316_v55 = vadd.f32 %v2713_v56, %v2671_v57  ;;  %2763 = vmatmul.bf16.gmra.mxu0 %v3985_v22 }
 0x302   :  { %2806 = vmatmul.bf16.gmra.mxu1 %v3989_v28  ;;  %v4025_v28 = vor.u32 %v4250_v63, %v4024_v24  ;;  %v2539_v63 = vpack.c.b16 %v2490_v60, %v2490_v60 }
 0x303   :  { %2849 = vmatmul.bf16.gmra.mxu2 %v3993_v41 }
 0x304   :  { %4030 = vmatmul.msk.bf16.gmra.mxu3 %vm705_vm0, %v3997_v29 }
 0x306   :  { %v2673_v43 = vpop.f32.mrf.mxu2  ;;  %v2268_v40 = vpop.f32.mrf.mxu0 }
 0x307   :  { %v2716_v38 = vpop.f32.mrf.mxu3  ;;  %v2674_v5 = vadd.f32 %v2673_v43, %v2631_v48  ;;  %v2632_v25 = vpop.f32.mrf.mxu1  ;;  %v6321_v62 = vadd.f32 %v2268_v40, %v6120_v23  ;;  %v4246_v23 = vld [vmem:[%s6484_s0 + $0x570] sm:$0xf]  ;;  %v3857_v40 = vld [vmem:[%s6484_s0 + $0x5ac] sm:$0xf] }
 0x308   :  { %v2633_v44 = vadd.f32 %v6205_v53, %v2632_v25  ;;  %v4021_v22 = vor.u32 %v4246_v23, %v4018_v42  ;;  %v2493_v45 = vunpack.c.l.b16 %v3857_v40 }
 0x309   :  { %v6323_v61 = vadd.f32 %v2716_v38, %v2674_v5  ;;  %v3856_v5 = vld [vmem:[%s6484_s0 + $0x5a4] sm:$0xff] }
 0x30a   :  { %v2491_v3 = vunpack.c.l.b16 %v3856_v5  ;;  %v2492_v18 = vunpack.c.h.b16 %v3856_v5 }
 0x30e   :  { %v2675_v0 = vpop.f32.mrf.mxu2  ;;  %v2271_v59 = vpop.f32.mrf.mxu0 }
 0x30f   :  { %v2718_v34 = vpop.f32.mrf.mxu3  ;;  %v2676_v15 = vadd.f32 %v2675_v0, %v2633_v44  ;;  %v2635_v56 = vpop.f32.mrf.mxu1  ;;  %v6351_v57 = vadd.f32 %v2271_v59, %v6135_v17  ;;  %v2540_v44 = vpack.c.b16 %v2491_v3, %v2491_v3 }
 0x310   :  { %v2636_v35 = vadd.f32 %v6205_v53, %v2635_v56 }
 0x311   :  { %v6353_v26 = vadd.f32 %v2718_v34, %v2676_v15  ;;  %2768 = vmatmul.bf16.gmra.mxu0 %v4013_v9  ;;  %v2541_v9 = vpack.c.b16 %v2492_v18, %v2492_v18 }
 0x312   :  { %2811 = vmatmul.bf16.gmra.mxu1 %v4017_v31  ;;  %v2542_v31 = vpack.c.b16 %v2493_v45, %v2493_v45 }
 0x313   :  { %2854 = vmatmul.bf16.gmra.mxu2 %v4021_v22 }
 0x314   :  { %4031 = vmatmul.msk.bf16.gmra.mxu3 %vm705_vm0, %v4025_v28 }
 0x316   :  { %v2678_v41 = vpop.f32.mrf.mxu2  ;;  %v2273_v43 = vpop.f32.mrf.mxu0 }
 0x317   :  { %v2721_v29 = vpop.f32.mrf.mxu3  ;;  %v2679_v48 = vadd.f32 %v2678_v41, %v2636_v35  ;;  %v2637_v38 = vpop.f32.mrf.mxu1  ;;  %v6361_v17 = vadd.f32 %v2273_v43, %v6139_v13 }
 0x318   :  { %v2638_v23 = vadd.f32 %v6205_v53, %v2637_v38 }
 0x319   :  { %v6366_v25 = vadd.f32 %v2721_v29, %v2679_v48 }
 0x31e   :  { %v2680_v42 = vpop.f32.mrf.mxu2  ;;  %v2276_v13 = vpop.f32.mrf.mxu0 }
 0x31f   :  { %v2723_v24 = vpop.f32.mrf.mxu3  ;;  %v2681_v0 = vadd.f32 %v2680_v42, %v2638_v23  ;;  %v2640_v34 = vpop.f32.mrf.mxu1  ;;  %v6371_v15 = vadd.f32 %v2276_v13, %v6143_v12 }
 0x320   :  { %v2641_v49 = vadd.f32 %v6205_v53, %v2640_v34 }
 0x321   :  { %v6373_v59 = vadd.f32 %v2723_v24, %v2681_v0  ;;  %2773 = vmatmul.bf16.gmra.mxu0 %v2539_v63 }
 0x322   :  { %2816 = vmatmul.bf16.gmra.mxu1 %v2540_v44 }
 0x323   :  { %2859 = vmatmul.bf16.gmra.mxu2 %v2541_v9 }
 0x324   :  { %4032 = vmatmul.msk.bf16.gmra.mxu3 %vm705_vm0, %v2542_v31 }
 0x326   :  { %v2683_v56 = vpop.f32.mrf.mxu2  ;;  %v2278_v35 = vpop.f32.mrf.mxu0 }
 0x327   :  { %v2726_v22 = vpop.f32.mrf.mxu3  ;;  %v2684_v28 = vadd.f32 %v2683_v56, %v2641_v49  ;;  %v2642_v41 = vpop.f32.mrf.mxu1  ;;  %v6378_v29 = vadd.f32 %v2278_v35, %v6170_v36 }
 0x328   :  { %v2643_v12 = vadd.f32 %v6205_v53, %v2642_v41 }
 0x329   :  { %v6380_v48 = vadd.f32 %v2726_v22, %v2684_v28 }
 0x32e   :  { %v2685_v43 = vpop.f32.mrf.mxu2  ;;  %v2281_v40 = vpop.f32.mrf.mxu0 }
 0x32f   :  { %v2728_v38 = vpop.f32.mrf.mxu3  ;;  %v2686_v5 = vadd.f32 %v2685_v43, %v2643_v12  ;;  %v2645_v60 = vpop.f32.mrf.mxu1  ;;  %v6384_v3 = vadd.f32 %v2281_v40, %v6173_v54  ;;  %v2285_v12 = vmax.f32 %v6200_v21, 0.0 }
 0x330   :  { %v2646_v45 = vadd.f32 %v6205_v53, %v2645_v60 }
 0x331   :  { %v6386_v18 = vadd.f32 %v2728_v38, %v2686_v5 }
 0x336   :  { %v2688_v23 = vpop.f32.mrf.mxu2  ;;  %v2283_v24 = vpop.f32.mrf.mxu0 }
 0x337   :  { %v2731_v42 = vpop.f32.mrf.mxu3  ;;  %v2689_v36 = vadd.f32 %v2688_v23, %v2646_v45  ;;  %v2647_v63 = vpop.f32.mrf.mxu1 }
 0x339   :  { %v6389_v44 = vadd.f32 %v2731_v42, %v2689_v36 }
 0x33e   :  { %v2690_v0 = vpop.f32.mrf.mxu2  ;;  %v2744_v34 = vpop.f32.mrf.mxu0 }
 0x33f   :  { %v2733_v13 = vpop.f32.mrf.mxu3  ;;  %v2787_v9 = vpop.f32.mrf.mxu1  ;;  %v2745_v31 = vadd.f32 %v2744_v34, %v6212_v14  ;;  %v2286_v0 = vmax.f32 %v6210_v37, 0.0  ;;  %v2287_v37 = vmax.f32 %v6240_v30, 0.0  ;;  %v2288_v30 = vmax.f32 %v6247_v58, 0.0 }
 0x340   :  { %v2289_v58 = vmax.f32 %v6277_v4, 0.0  ;;  %v2290_v4 = vmax.f32 %v6284_v47, 0.0  ;;  %v2291_v47 = vmax.f32 %v6314_v19, 0.0  ;;  %v2292_v19 = vmax.f32 %v6321_v62, 0.0 }
 0x341   :  { %v2788_v49 = vadd.f32 %v2787_v9, %v2745_v31  ;;  %v2293_v62 = vmax.f32 %v6351_v57, 0.0  ;;  %v2294_v57 = vmax.f32 %v6361_v17, 0.0  ;;  %v2295_v17 = vmax.f32 %v6371_v15, 0.0 }
 0x342   :  { %v2296_v15 = vmax.f32 %v6378_v29, 0.0 }
 0x346   :  { %v2830_v54 = vpop.f32.mrf.mxu2  ;;  %v2746_v28 = vpop.f32.mrf.mxu0 }
 0x347   :  { %v2873_v56 = vpop.f32.mrf.mxu3  ;;  %v2831_v22 = vadd.f32 %v2830_v54, %v2788_v49  ;;  %v2789_v35 = vpop.f32.mrf.mxu1  ;;  %v2747_v41 = vadd.f32 %v2746_v28, %v6242_v39 }
 0x349   :  { %v2874_v53 = vadd.f32 %v2873_v56, %v2831_v22  ;;  %v2790_v5 = vadd.f32 %v2789_v35, %v2747_v41 }
 0x34b   :  { %v2907_v43 = vmax.f32 %v2874_v53, 0.0 }
 0x34d   :  { %v2920_v38 = vmax.f32 %v2285_v12, %v2907_v43 }
 0x34e   :  { %v2832_v40 = vpop.f32.mrf.mxu2  ;;  %v2749_v14 = vpop.f32.mrf.mxu0 }
 0x34f   :  { %v2875_v60 = vpop.f32.mrf.mxu3  ;;  %v2933_v45 = vmax.f32 %v5736_v6, %v2920_v38  ;;  %v2833_v23 = vadd.f32 %v2832_v40, %v2790_v5  ;;  %v2792_v42 = vpop.f32.mrf.mxu1  ;;  %v2750_v63 = vadd.f32 %v2749_v14, %v6249_v20 }
 0x351   :  { %v2946_v36 = vpack.c.bf16 %v2933_v45, %v2933_v45  ;;  %v2876_v24 = vadd.f32 %v2875_v60, %v2833_v23  ;;  %v2793_v13 = vadd.f32 %v2792_v42, %v2750_v63 }
 0x353   :  { %2960 = vst.msk [vmem:[%s6485_s3] sm:$0xf] %vm2959_vm1, %v2946_v36  ;;  %v2908_v21 = vmax.f32 %v2876_v24, 0.0 }
 0x355   :  { %v2921_v39 = vmax.f32 %v2286_v0, %v2908_v21 }
 0x356   :  { %v2835_v34 = vpop.f32.mrf.mxu2  ;;  %v2751_v49 = vpop.f32.mrf.mxu0 }
 0x357   :  { %v2878_v6 = vpop.f32.mrf.mxu3  ;;  %v2934_v9 = vmax.f32 %v5781_v1, %v2921_v39  ;;  %v2836_v31 = vadd.f32 %v2835_v34, %v2793_v13  ;;  %v2794_v54 = vpop.f32.mrf.mxu1  ;;  %v2752_v20 = vadd.f32 %v2751_v49, %v6279_v27 }
 0x359   :  { %v2947_v56 = vpack.c.bf16 %v2934_v9, %v2934_v9  ;;  %v2879_v22 = vadd.f32 %v2878_v6, %v2836_v31  ;;  %v2795_v53 = vadd.f32 %v2794_v54, %v2752_v20 }
 0x35b   :  { %2961 = vst.msk [vmem:[%s6485_s3 + $0x4] sm:$0xf] %vm2959_vm1, %v2947_v56  ;;  %v2909_v28 = vmax.f32 %v2879_v22, 0.0 }
 0x35d   :  { %v2922_v35 = vmax.f32 %v2287_v37, %v2909_v28 }
 0x35e   :  { %v2837_v41 = vpop.f32.mrf.mxu2  ;;  %v2754_v38 = vpop.f32.mrf.mxu0 }
 0x35f   :  { %v2880_v12 = vpop.f32.mrf.mxu3  ;;  %v2935_v1 = vmax.f32 %v5795_v52, %v2922_v35  ;;  %v2838_v43 = vadd.f32 %v2837_v41, %v2795_v53  ;;  %v2797_v5 = vpop.f32.mrf.mxu1  ;;  %v2755_v27 = vadd.f32 %v2754_v38, %v6286_v7 }
 0x361   :  { %v2948_v40 = vpack.c.bf16 %v2935_v1, %v2935_v1  ;;  %v2881_v60 = vadd.f32 %v2880_v12, %v2838_v43  ;;  %v2798_v14 = vadd.f32 %v2797_v5, %v2755_v27 }
 0x363   :  { %2962 = vst.msk [vmem:[%s6485_s3 + $0x8] sm:$0xf] %vm2959_vm1, %v2948_v40  ;;  %v2910_v45 = vmax.f32 %v2881_v60, 0.0 }
 0x365   :  { %v2923_v23 = vmax.f32 %v2288_v30, %v2910_v45 }
 0x366   :  { %v2840_v42 = vpop.f32.mrf.mxu2  ;;  %v2756_v63 = vpop.f32.mrf.mxu0 }
 0x367   :  { %v2883_v36 = vpop.f32.mrf.mxu3  ;;  %v2936_v52 = vmax.f32 %v5826_v2, %v2923_v23  ;;  %v2841_v24 = vadd.f32 %v2840_v42, %v2798_v14  ;;  %v2799_v0 = vpop.f32.mrf.mxu1  ;;  %v2757_v7 = vadd.f32 %v2756_v63, %v6316_v55 }
 0x369   :  { %v2949_v21 = vpack.c.bf16 %v2936_v52, %v2936_v52  ;;  %v2884_v39 = vadd.f32 %v2883_v36, %v2841_v24  ;;  %v2800_v6 = vadd.f32 %v2799_v0, %v2757_v7 }
 0x36b   :  { %2963 = vst.msk [vmem:[%s6485_s3 + $0xc] sm:$0xf] %vm2959_vm1, %v2949_v21  ;;  %v2911_v13 = vmax.f32 %v2884_v39, 0.0 }
 0x36d   :  { %v2924_v34 = vmax.f32 %v2289_v58, %v2911_v13 }
 0x36e   :  { %v2842_v9 = vpop.f32.mrf.mxu2  ;;  %v2759_v54 = vpop.f32.mrf.mxu0 }
 0x36f   :  { %v2885_v31 = vpop.f32.mrf.mxu3  ;;  %v2937_v2 = vmax.f32 %v5833_v50, %v2924_v34  ;;  %v2843_v49 = vadd.f32 %v2842_v9, %v2800_v6  ;;  %v2802_v56 = vpop.f32.mrf.mxu1  ;;  %v2760_v55 = vadd.f32 %v2759_v54, %v6323_v61 }
 0x371   :  { %v2950_v22 = vpack.c.bf16 %v2937_v2, %v2937_v2  ;;  %v2886_v20 = vadd.f32 %v2885_v31, %v2843_v49  ;;  %v2803_v35 = vadd.f32 %v2802_v56, %v2760_v55 }
 0x373   :  { %2964 = vst.msk [vmem:[%s6485_s3 + $0x10] sm:$0xf] %vm2959_vm1, %v2950_v22  ;;  %v2912_v37 = vmax.f32 %v2886_v20, 0.0 }
 0x375   :  { %v2925_v28 = vmax.f32 %v2290_v4, %v2912_v37 }
 0x376   :  { %v2845_v53 = vpop.f32.mrf.mxu2  ;;  %v2761_v1 = vpop.f32.mrf.mxu0 }
 0x377   :  { %v2888_v41 = vpop.f32.mrf.mxu3  ;;  %v2938_v50 = vmax.f32 %v5864_v32, %v2925_v28  ;;  %v2846_v12 = vadd.f32 %v2845_v53, %v2803_v35  ;;  %v2804_v43 = vpop.f32.mrf.mxu1  ;;  %v2762_v61 = vadd.f32 %v2761_v1, %v6353_v26 }
 0x379   :  { %v2951_v38 = vpack.c.bf16 %v2938_v50, %v2938_v50  ;;  %v2889_v5 = vadd.f32 %v2888_v41, %v2846_v12  ;;  %v2805_v27 = vadd.f32 %v2804_v43, %v2762_v61 }
 0x37b   :  { %2965 = vst.msk [vmem:[%s6485_s3 + $0x14] sm:$0xf] %vm2959_vm1, %v2951_v38  ;;  %v2913_v40 = vmax.f32 %v2889_v5, 0.0 }
 0x37d   :  { %v2926_v60 = vmax.f32 %v2291_v47, %v2913_v40 }
 0x37e   :  { %v2847_v30 = vpop.f32.mrf.mxu2  ;;  %v2764_v14 = vpop.f32.mrf.mxu0 }
 0x37f   :  { %v2890_v45 = vpop.f32.mrf.mxu3  ;;  %v2939_v32 = vmax.f32 %v5871_v8, %v2926_v60  ;;  %v2848_v23 = vadd.f32 %v2847_v30, %v2805_v27  ;;  %v2807_v42 = vpop.f32.mrf.mxu1  ;;  %v2765_v26 = vadd.f32 %v2764_v14, %v6366_v25 }
 0x381   :  { %v2952_v36 = vpack.c.bf16 %v2939_v32, %v2939_v32  ;;  %v2891_v52 = vadd.f32 %v2890_v45, %v2848_v23  ;;  %v2808_v0 = vadd.f32 %v2807_v42, %v2765_v26 }
 0x383   :  { %2966 = vst.msk [vmem:[%s6485_s3 + $0x18] sm:$0xf] %vm2959_vm1, %v2952_v36  ;;  %v2914_v24 = vmax.f32 %v2891_v52, 0.0 }
 0x385   :  { %v2927_v63 = vmax.f32 %v2292_v19, %v2914_v24 }
 0x386   :  { %v2850_v21 = vpop.f32.mrf.mxu2  ;;  %v2766_v58 = vpop.f32.mrf.mxu0 }
 0x387   :  { %v2893_v39 = vpop.f32.mrf.mxu3  ;;  %v2940_v8 = vmax.f32 %v5902_v46, %v2927_v63  ;;  %v2851_v7 = vadd.f32 %v2850_v21, %v2808_v0  ;;  %v2809_v13 = vpop.f32.mrf.mxu1  ;;  %v2767_v25 = vadd.f32 %v2766_v58, %v6373_v59 }
 0x389   :  { %v2953_v34 = vpack.c.bf16 %v2940_v8, %v2940_v8  ;;  %v2894_v6 = vadd.f32 %v2893_v39, %v2851_v7  ;;  %v2810_v2 = vadd.f32 %v2809_v13, %v2767_v25 }
 0x38b   :  { %2967 = vst.msk [vmem:[%s6485_s3 + $0x1c] sm:$0xf] %vm2959_vm1, %v2953_v34  ;;  %v2915_v9 = vmax.f32 %v2894_v6, 0.0 }
 0x38d   :  { %v2928_v31 = vmax.f32 %v2293_v62, %v2915_v9 }
 0x38e   :  { %v2852_v49 = vpop.f32.mrf.mxu2  ;;  %v2769_v22 = vpop.f32.mrf.mxu0 }
 0x38f   :  { %v2895_v54 = vpop.f32.mrf.mxu3  ;;  %v2941_v46 = vmax.f32 %v5909_v33, %v2928_v31  ;;  %v2853_v56 = vadd.f32 %v2852_v49, %v2810_v2  ;;  %v2812_v20 = vpop.f32.mrf.mxu1  ;;  %v2770_v59 = vadd.f32 %v2769_v22, %v6380_v48 }
 0x391   :  { %v2954_v55 = vpack.c.bf16 %v2941_v46, %v2941_v46  ;;  %v2896_v4 = vadd.f32 %v2895_v54, %v2853_v56  ;;  %v2813_v35 = vadd.f32 %v2812_v20, %v2770_v59 }
 0x393   :  { %2968 = vst.msk [vmem:[%s6485_s3 + $0x20] sm:$0xf] %vm2959_vm1, %v2954_v55  ;;  %v2916_v37 = vmax.f32 %v2896_v4, 0.0 }
 0x395   :  { %v2929_v28 = vmax.f32 %v2294_v57, %v2916_v37 }
 0x396   :  { %v2855_v53 = vpop.f32.mrf.mxu2  ;;  %v2771_v12 = vpop.f32.mrf.mxu0 }
 0x397   :  { %v2898_v41 = vpop.f32.mrf.mxu3  ;;  %v2942_v33 = vmax.f32 %v5922_v11, %v2929_v28  ;;  %v2856_v50 = vadd.f32 %v2855_v53, %v2813_v35  ;;  %v2814_v1 = vpop.f32.mrf.mxu1  ;;  %v2772_v48 = vadd.f32 %v2771_v12, %v6386_v18 }
 0x399   :  { %v2955_v43 = vpack.c.bf16 %v2942_v33, %v2942_v33  ;;  %v2899_v38 = vadd.f32 %v2898_v41, %v2856_v50  ;;  %v2815_v47 = vadd.f32 %v2814_v1, %v2772_v48 }
 0x39b   :  { %2969 = vst.msk [vmem:[%s6485_s3 + $0x24] sm:$0xf] %vm2959_vm1, %v2955_v43  ;;  %v2917_v5 = vmax.f32 %v2899_v38, 0.0 }
 0x39d   :  { %v2930_v61 = vmax.f32 %v2295_v17, %v2917_v5 }
 0x39e   :  { %v2857_v40 = vpop.f32.mrf.mxu2  ;;  %v2774_v30 = vpop.f32.mrf.mxu0 }
 0x39f   :  { %v2900_v60 = vpop.f32.mrf.mxu3  ;;  %v2943_v11 = vmax.f32 %v5929_v51, %v2930_v61  ;;  %v2858_v27 = vadd.f32 %v2857_v40, %v2815_v47  ;;  %v2817_v45 = vpop.f32.mrf.mxu1  ;;  %v2775_v18 = vadd.f32 %v2774_v30, %v6389_v44  ;;  %v2297_v44 = vmax.f32 %v6384_v3, 0.0 }
 0x3a1   :  { %v2956_v32 = vpack.c.bf16 %v2943_v11, %v2943_v11  ;;  %v2901_v23 = vadd.f32 %v2900_v60, %v2858_v27  ;;  %v2818_v36 = vadd.f32 %v2817_v45, %v2775_v18 }
 0x3a3   :  { %2970 = vst.msk [vmem:[%s6485_s3 + $0x28] sm:$0xf] %vm2959_vm1, %v2956_v32  ;;  %v2918_v14 = vmax.f32 %v2901_v23, 0.0 }
 0x3a5   :  { %v2931_v42 = vmax.f32 %v2296_v15, %v2918_v14 }
 0x3a6   :  { %v2860_v52 = vpop.f32.mrf.mxu2  ;;  %v2776_v24 = vpop.f32.mrf.mxu0 }
 0x3a7   :  { %v2903_v26 = vpop.f32.mrf.mxu3  ;;  %v2944_v51 = vmax.f32 %v5960_v16, %v2931_v42  ;;  %v2861_v19 = vadd.f32 %v2860_v52, %v2818_v36  ;;  %v2819_v63 = vpop.f32.mrf.mxu1 }
 0x3a9   :  { %v2957_v0 = vpack.c.bf16 %v2944_v51, %v2944_v51  ;;  %v2904_v21 = vadd.f32 %v2903_v26, %v2861_v19 }
 0x3ab   :  { %2971 = vst.msk [vmem:[%s6485_s3 + $0x2c] sm:$0xf] %vm2959_vm1, %v2957_v0  ;;  %v2919_v29 = vmax.f32 %v2904_v21, 0.0 }
 0x3ad   :  { %v2932_v39 = vmax.f32 %v2297_v44, %v2919_v29 }
 0x3ae   :  { %v2862_v8 = vpop.f32.mrf.mxu2 }
 0x3af   :  { %v2905_v7 = vpop.f32.mrf.mxu3  ;;  %v2945_v58 = vmax.f32 %v5968_v10, %v2932_v39 }
 0x3b1   :  { %v2958_v13 = vpack.c.bf16 %v2945_v58, %v2945_v58 }
 0x3b3   :  { %2972 = vst.msk [vmem:[%s6485_s3 + $0x30] sm:$0xf] %vm2959_vm1, %v2958_v13 }

</bundles_post_ra>
